<compile_context>
chip_gen: v7x
topology: tpu7x:2x2x1
jax: 0.10.0
libtpu: 0.0.40
codegen_flags: <defaults>
</compile_context>

<pallas_src>
import functools

import jax
import jax.numpy as jnp
from jax.experimental import pallas as pl
from jax.experimental.pallas import tpu as pltpu

_LANE = 128
_VMEM_LIMIT = 32 * 1024 * 1024
_EPS = 1e-5


def _round_up(x, m):
    return (x + m - 1) // m * m


def _compiler_params():
    return pltpu.CompilerParams(
        dimension_semantics=("parallel",),
        vmem_limit_bytes=_VMEM_LIMIT,
    )


def _pick_tm(M, Fp, Cp):
    """Largest row tile (<=512) whose double-buffered working set fits comfortably."""
    if M <= 512:
        return _round_up(M, 16)
    tm = 512
    budget = 12 * 1024 * 1024
    while tm > 64 and (2 * tm * Fp * 2 + 2 * Fp * Cp * 2 + 2 * tm * Cp * 4) > budget:
        tm //= 2
    return tm


# ---------------------------------------------------------------------------
# Pallas kernels
# ---------------------------------------------------------------------------
def _gemm_act_kernel(p_ref, w_ref, o_ref, *, act):
    """bf16 GEMM (f32 accumulate) + activation for one (TM, Cp) output tile."""
    y = jnp.dot(p_ref[...], w_ref[...], preferred_element_type=jnp.float32)
    if act == "leaky":
        y = jnp.where(y >= 0.0, y, 0.2 * y)
    elif act == "sigmoid":
        y = jax.nn.sigmoid(y)
    o_ref[...] = y


def _gemm_stats_kernel(p_ref, w_ref, y_ref, s_ref, q_ref):
    """BN pass 1: GEMM + per-tile partial per-channel sum / sum-of-squares."""
    y = jnp.dot(p_ref[...], w_ref[...], preferred_element_type=jnp.float32)
    y_ref[...] = y
    tm, cp = y.shape
    yg = y.reshape(tm // 8, 8, cp)          # sublane-aligned split, no relayout
    s_ref[...] = jnp.sum(yg, axis=0)[None]
    q_ref[...] = jnp.sum(yg * yg, axis=0)[None]


def _bn_act_kernel(y_ref, scale_ref, shift_ref, o_ref):
    """BN pass 2: per-channel affine (folded mean/var/gamma/beta) + LeakyReLU."""
    y = y_ref[...] * scale_ref[...] + shift_ref[...]
    o_ref[...] = jnp.where(y >= 0.0, y, 0.2 * y)


# ---------------------------------------------------------------------------
# Glue: channels-last im2col (pure data rearrangement, plain JAX)
# ---------------------------------------------------------------------------
def _im2col_nhwc(x, k, stride, pad):
    # x: (N, H, W, C) -> patches (N*OH*OW, k*k*C), feature order (kh, kw, C)
    N, H, W, C = x.shape
    xp = jnp.pad(x, ((0, 0), (pad, pad), (pad, pad), (0, 0)))
    OH = (H + 2 * pad - k) // stride + 1
    OW = (W + 2 * pad - k) // stride + 1
    cols = []
    for i in range(k):
        for j in range(k):
            cols.append(xp[:, i:i + stride * OH:stride, j:j + stride * OW:stride, :])
    patches = jnp.stack(cols, axis=3)                   # (N, OH, OW, k*k, C)
    return patches.reshape(N * OH * OW, k * k * C), OH, OW


# ---------------------------------------------------------------------------
# One conv(+BN)(+act) layer via pallas_call(s)
# ---------------------------------------------------------------------------
def _conv_layer(x, w, gamma, beta, *, stride, pad, use_bn, act):
    # x: (N, H, W, C) float32; w: (Cout, Cin, k, k) (PyTorch OIHW)
    N, H, W, C = x.shape
    Cout, Cin, k, _ = w.shape
    assert Cin == C

    patches, OH, OW = _im2col_nhwc(x, k, stride, pad)   # (M, F) f32
    M, F = patches.shape
    wmat = jnp.transpose(w, (2, 3, 1, 0)).reshape(F, Cout)   # (kh,kw,Cin) x Cout

    Fp = _round_up(F, _LANE)
    Cp = _round_up(Cout, _LANE)
    TM = _pick_tm(M, Fp, Cp)
    Mp = _round_up(M, TM)
    G = Mp // TM

    # Zero padding keeps the GEMM and the batch statistics exact.
    patches = jnp.pad(patches, ((0, Mp - M), (0, Fp - F))).astype(jnp.bfloat16)
    wmat = jnp.pad(wmat, ((0, Fp - F), (0, Cp - Cout))).astype(jnp.bfloat16)

    p_spec = pl.BlockSpec((TM, Fp), lambda i: (i, 0))
    w_spec = pl.BlockSpec((Fp, Cp), lambda i: (0, 0))     # resident across grid
    y_spec = pl.BlockSpec((TM, Cp), lambda i: (i, 0))

    gemm_bytes = Mp * Fp * 2 + Fp * Cp * 2 + Mp * Cp * 4

    if not use_bn:
        kern = functools.partial(_gemm_act_kernel, act=act)
        out = pl.pallas_call(
            kern,
            out_shape=jax.ShapeDtypeStruct((Mp, Cp), jnp.float32),
            grid=(G,),
            in_specs=[p_spec, w_spec],
            out_specs=y_spec,
            compiler_params=_compiler_params(),
            cost_estimate=pl.CostEstimate(
                flops=2 * Mp * Fp * Cp,
                transcendentals=Mp * Cp if act == "sigmoid" else 0,
                bytes_accessed=gemm_bytes),
        )(patches, wmat)
    else:
        # ---- Pass 1: GEMM + per-tile partial batch statistics --------------
        s_spec = pl.BlockSpec((1, 8, Cp), lambda i: (i, 0, 0))
        y, psum, psq = pl.pallas_call(
            _gemm_stats_kernel,
            out_shape=(jax.ShapeDtypeStruct((Mp, Cp), jnp.float32),
                       jax.ShapeDtypeStruct((G, 8, Cp), jnp.float32),
                       jax.ShapeDtypeStruct((G, 8, Cp), jnp.float32)),
            grid=(G,),
            in_specs=[p_spec, w_spec],
            out_specs=(y_spec, s_spec, s_spec),
            compiler_params=_compiler_params(),
            cost_estimate=pl.CostEstimate(
                flops=2 * Mp * Fp * Cp + 3 * Mp * Cp,
                transcendentals=0,
                bytes_accessed=gemm_bytes + 2 * G * 8 * Cp * 4),
        )(patches, wmat)

        # Tiny cross-tile reduction + fold BN into per-channel scale/shift.
        # Padded rows/channels are exact zeros -> dividing by the true M is exact.
        mean = jnp.sum(psum, axis=(0, 1)) / M                 # (Cp,)
        ex2 = jnp.sum(psq, axis=(0, 1)) / M
        var = jnp.maximum(ex2 - mean * mean, 0.0)             # biased variance
        g_p = jnp.pad(gamma, ((0, 0), (0, Cp - Cout)))
        b_p = jnp.pad(beta, ((0, 0), (0, Cp - Cout)))
        scale = g_p * jax.lax.rsqrt(var + _EPS)[None, :]      # (1, Cp)
        shift = b_p - mean[None, :] * scale

        # ---- Pass 2: fused normalize + LeakyReLU, in place over y ----------
        out = pl.pallas_call(
            _bn_act_kernel,
            out_shape=jax.ShapeDtypeStruct((Mp, Cp), jnp.float32),
            grid=(G,),
            in_specs=[y_spec,
                      pl.BlockSpec((1, Cp), lambda i: (0, 0)),
                      pl.BlockSpec((1, Cp), lambda i: (0, 0))],
            out_specs=y_spec,
            input_output_aliases={0: 0},
            compiler_params=_compiler_params(),
            cost_estimate=pl.CostEstimate(
                flops=3 * Mp * Cp,
                transcendentals=0,
                bytes_accessed=2 * Mp * Cp * 4 + 2 * Cp * 4),
        )(y, scale.astype(jnp.float32), shift.astype(jnp.float32))

    # Strip padding; stay channels-last for the next layer.
    return out[:M, :Cout].reshape(N, OH, OW, Cout)


# ---------------------------------------------------------------------------
# Parameters (deterministic init mirroring weights_init)
# ---------------------------------------------------------------------------
def init_params(key, in_dim, feature_dim):
    fd = feature_dim
    chans = [(in_dim, fd), (fd, 2 * fd), (2 * fd, 4 * fd), (4 * fd, 8 * fd), (8 * fd, 1)]
    params = []
    for ci, co in chans:
        key, kw, kg = jax.random.split(key, 3)
        w = 0.02 * jax.random.normal(kw, (co, ci, 4, 4), jnp.float32)      # Conv: N(0, 0.02)
        gamma = 1.0 + 0.02 * jax.random.normal(kg, (1, co), jnp.float32)   # BN weight: N(1, 0.02)
        beta = jnp.zeros((1, co), jnp.float32)                             # BN bias: 0
        params.append((w, gamma, beta))
    return params


# ---------------------------------------------------------------------------
# Full discriminator forward (external API is NCHW, like the PyTorch module)
# ---------------------------------------------------------------------------
def dcgan_discriminator_forward(x, params):
    cfg = [
        dict(stride=2, pad=1, use_bn=False, act="leaky"),
        dict(stride=2, pad=1, use_bn=True, act="leaky"),
        dict(stride=2, pad=1, use_bn=True, act="leaky"),
        dict(stride=2, pad=1, use_bn=True, act="leaky"),
        dict(stride=1, pad=0, use_bn=False, act="sigmoid"),
    ]
    h = jnp.transpose(x, (0, 2, 3, 1))            # NCHW -> NHWC once at the boundary
    for (w, g, b), c in zip(params, cfg):
        h = _conv_layer(h, w, g, b, **c)
    return h.reshape(-1)                          # .view(-1)


# ---------------------------------------------------------------------------
# Pure-JAX reference (mirrors the kernel's bf16 GEMM / f32 BN for a tight check)
# ---------------------------------------------------------------------------
def _ref_forward(x, params):
    def conv(x, w, s, p):
        return jax.lax.conv_general_dilated(
            x.astype(jnp.bfloat16), w.astype(jnp.bfloat16), (s, s), [(p, p), (p, p)],
            dimension_numbers=("NCHW", "OIHW", "NCHW"),
            preferred_element_type=jnp.float32)

    def bn(y, g, b):
        mean = jnp.mean(y, axis=(0, 2, 3), keepdims=True)
        var = jnp.mean((y - mean) ** 2, axis=(0, 2, 3), keepdims=True)
        return (y - mean) * jax.lax.rsqrt(var + _EPS) * g.reshape(1, -1, 1, 1) \
               + b.reshape(1, -1, 1, 1)

    lrelu = lambda v: jnp.where(v >= 0.0, v, 0.2 * v)
    (w1, _, _), (w2, g2, b2), (w3, g3, b3), (w4, g4, b4), (w5, _, _) = params
    x = lrelu(conv(x, w1, 2, 1))
    x = lrelu(bn(conv(x, w2, 2, 1), g2, b2))
    x = lrelu(bn(conv(x, w3, 2, 1), g3, b3))
    x = lrelu(bn(conv(x, w4, 2, 1), g4, b4))
    x = jax.nn.sigmoid(conv(x, w5, 1, 0))
    return x.reshape(-1)


if __name__ == "__main__":
    key = jax.random.PRNGKey(0)
    key, kx = jax.random.split(key)

    # Spatial must be 64 so the final 4x4/s1/p0 conv yields 1x1; keep batch and
    # feature_dim small.
    batch, in_dim, feature_dim, spatial = 2, 3, 16, 64
    x = jax.random.normal(kx, (batch, in_dim, spatial, spatial), jnp.float32)

    params = init_params(key, in_dim, feature_dim)

    out = jax.jit(dcgan_discriminator_forward)(x, params)
    out = jax.block_until_ready(out)

    ref = _ref_forward(x, params)
    assert out.shape == (batch,), out.shape
    assert jnp.allclose(out, ref, atol=1e-2, rtol=1e-2), (out, ref)

    print("KERNEL_OK")
</pallas_src>

<mosaic_0001>
module attributes {stable_mosaic.version = 11 : i64} {
  func.func @_gemm_act_kernel(%arg0: i32, %arg1: memref<512x128xbf16, #tpu.memory_space<vmem>>, %arg2: memref<128x128xbf16, #tpu.memory_space<vmem>>, %arg3: memref<512x128xf32, #tpu.memory_space<vmem>>) attributes {dimension_semantics = [#tpu.dimension_semantics<parallel>], iteration_bounds = array<i64: 4>, scalar_prefetch = 0 : i64, scratch_operands = 0 : i64, tpu.core_type = #tpu.core_type<tc>, window_params = [{transform_indices = @transform_0, window_bounds = array<i64: 512, 128>}, {pipeline_mode = #tpu.pipeline_mode<synchronous>, transform_indices = @transform_1, window_bounds = array<i64: 128, 128>}, {transform_indices = @transform_2, window_bounds = array<i64: 512, 128>}]} {
    %c0 = arith.constant 0 : index
    %c0_0 = arith.constant 0 : index
    %0 = vector.load %arg1[%c0, %c0_0] : memref<512x128xbf16, #tpu.memory_space<vmem>>, vector<512x128xbf16>
    %c0_1 = arith.constant 0 : index
    %c0_2 = arith.constant 0 : index
    %1 = vector.load %arg2[%c0_1, %c0_2] : memref<128x128xbf16, #tpu.memory_space<vmem>>, vector<128x128xbf16>
    %cst = arith.constant dense<0.000000e+00> : vector<512x128xf32>
    %2 = tpu.matmul %0, %1, %cst {dimension_numbers = #tpu.dot_dimension_numbers<[1], [0], [0], [1], [0, 0, 1, 1], [], []>} : vector<512x128xbf16>, vector<128x128xbf16>, vector<512x128xf32> -> vector<512x128xf32>
    %cst_3 = arith.constant 0.000000e+00 : f32
    %3 = vector.broadcast %cst_3 : f32 to vector<512x128xf32>
    %4 = arith.cmpf oge, %2, %3 : vector<512x128xf32>
    %cst_4 = arith.constant 2.000000e-01 : f32
    %5 = vector.broadcast %cst_4 : f32 to vector<512x128xf32>
    %6 = arith.mulf %5, %2 : vector<512x128xf32>
    %7 = arith.select %4, %2, %6 : vector<512x128xi1>, vector<512x128xf32>
    %c0_5 = arith.constant 0 : index
    %c0_6 = arith.constant 0 : index
    %8 = vector.load %arg3[%c0_5, %c0_6] : memref<512x128xf32, #tpu.memory_space<vmem>>, vector<512x128xf32>
    tpu.vector_store %arg3[%c0_5, %c0_6], %7 {strides = array<i32>} : memref<512x128xf32, #tpu.memory_space<vmem>>, vector<512x128xf32>,
    return
  }
  func.func @transform_0(%arg0: i32) -> (i32, i32) {
    %c0_i32 = arith.constant 0 : i32
    %c0_i32_0 = arith.constant 0 : i32
    return %arg0, %c0_i32 : i32, i32
  }
  func.func @transform_1(%arg0: i32) -> (i32, i32) {
    %c0_i32 = arith.constant 0 : i32
    %c0_i32_0 = arith.constant 0 : i32
    %c0_i32_1 = arith.constant 0 : i32
    return %c0_i32, %c0_i32_0 : i32, i32
  }
  func.func @transform_2(%arg0: i32) -> (i32, i32) {
    %c0_i32 = arith.constant 0 : i32
    %c0_i32_0 = arith.constant 0 : i32
    return %arg0, %c0_i32 : i32, i32
  }
}

module attributes {stable_mosaic.version = 11 : i64} {
  func.func @_gemm_stats_kernel(%arg0: i32, %arg1: memref<512x256xbf16, #tpu.memory_space<vmem>>, %arg2: memref<256x128xbf16, #tpu.memory_space<vmem>>, %arg3: memref<512x128xf32, #tpu.memory_space<vmem>>, %arg4: memref<1x8x128xf32, #tpu.memory_space<vmem>>, %arg5: memref<1x8x128xf32, #tpu.memory_space<vmem>>) attributes {dimension_semantics = [#tpu.dimension_semantics<parallel>], iteration_bounds = array<i64: 1>, scalar_prefetch = 0 : i64, scratch_operands = 0 : i64, tpu.core_type = #tpu.core_type<tc>, window_params = [{transform_indices = @transform_0, window_bounds = array<i64: 512, 256>}, {pipeline_mode = #tpu.pipeline_mode<synchronous>, transform_indices = @transform_1, window_bounds = array<i64: 256, 128>}, {transform_indices = @transform_2, window_bounds = array<i64: 512, 128>}, {transform_indices = @transform_3, window_bounds = array<i64: 1, 8, 128>}, {transform_indices = @transform_4, window_bounds = array<i64: 1, 8, 128>}]} {
    %c0 = arith.constant 0 : index
    %c0_0 = arith.constant 0 : index
    %0 = vector.load %arg1[%c0, %c0_0] : memref<512x256xbf16, #tpu.memory_space<vmem>>, vector<512x256xbf16>
    %c0_1 = arith.constant 0 : index
    %c0_2 = arith.constant 0 : index
    %1 = vector.load %arg2[%c0_1, %c0_2] : memref<256x128xbf16, #tpu.memory_space<vmem>>, vector<256x128xbf16>
    %cst = arith.constant dense<0.000000e+00> : vector<512x128xf32>
    %2 = tpu.matmul %0, %1, %cst {dimension_numbers = #tpu.dot_dimension_numbers<[1], [0], [0], [1], [0, 0, 1, 1], [], []>} : vector<512x256xbf16>, vector<256x128xbf16>, vector<512x128xf32> -> vector<512x128xf32>
    %c0_3 = arith.constant 0 : index
    %c0_4 = arith.constant 0 : index
    %3 = vector.load %arg3[%c0_3, %c0_4] : memref<512x128xf32, #tpu.memory_space<vmem>>, vector<512x128xf32>
    tpu.vector_store %arg3[%c0_3, %c0_4], %2 {strides = array<i32>} : memref<512x128xf32, #tpu.memory_space<vmem>>, vector<512x128xf32>,
    %4 = vector.shape_cast %2 : vector<512x128xf32> to vector<64x8x128xf32>
    %cst_5 = arith.constant dense<0.000000e+00> : vector<8x128xf32>
    %5 = vector.multi_reduction <add>, %4, %cst_5 [0] : vector<64x8x128xf32> to vector<8x128xf32>
    %6 = vector.shape_cast %5 : vector<8x128xf32> to vector<1x8x128xf32>
    %c0_6 = arith.constant 0 : index
    %c0_7 = arith.constant 0 : index
    %c0_8 = arith.constant 0 : index
    %7 = vector.load %arg4[%c0_6, %c0_7, %c0_8] : memref<1x8x128xf32, #tpu.memory_space<vmem>>, vector<1x8x128xf32>
    tpu.vector_store %arg4[%c0_6, %c0_7, %c0_8], %6 {strides = array<i32>} : memref<1x8x128xf32, #tpu.memory_space<vmem>>, vector<1x8x128xf32>,
    %8 = arith.mulf %4, %4 : vector<64x8x128xf32>
    %cst_9 = arith.constant dense<0.000000e+00> : vector<8x128xf32>
    %9 = vector.multi_reduction <add>, %8, %cst_9 [0] : vector<64x8x128xf32> to vector<8x128xf32>
    %10 = vector.shape_cast %9 : vector<8x128xf32> to vector<1x8x128xf32>
    %c0_10 = arith.constant 0 : index
    %c0_11 = arith.constant 0 : index
    %c0_12 = arith.constant 0 : index
    %11 = vector.load %arg5[%c0_10, %c0_11, %c0_12] : memref<1x8x128xf32, #tpu.memory_space<vmem>>, vector<1x8x128xf32>
    tpu.vector_store %arg5[%c0_10, %c0_11, %c0_12], %10 {strides = array<i32>} : memref<1x8x128xf32, #tpu.memory_space<vmem>>, vector<1x8x128xf32>,
    return
  }
  func.func @transform_0(%arg0: i32) -> (i32, i32) {
    %c0_i32 = arith.constant 0 : i32
    %c0_i32_0 = arith.constant 0 : i32
    return %arg0, %c0_i32 : i32, i32
  }
  func.func @transform_1(%arg0: i32) -> (i32, i32) {
    %c0_i32 = arith.constant 0 : i32
    %c0_i32_0 = arith.constant 0 : i32
    %c0_i32_1 = arith.constant 0 : i32
    return %c0_i32, %c0_i32_0 : i32, i32
  }
  func.func @transform_2(%arg0: i32) -> (i32, i32) {
    %c0_i32 = arith.constant 0 : i32
    %c0_i32_0 = arith.constant 0 : i32
    return %arg0, %c0_i32 : i32, i32
  }
  func.func @transform_3(%arg0: i32) -> (i32, i32, i32) {
    %c0_i32 = arith.constant 0 : i32
    %c0_i32_0 = arith.constant 0 : i32
    %c0_i32_1 = arith.constant 0 : i32
    return %arg0, %c0_i32, %c0_i32_0 : i32, i32, i32
  }
  func.func @transform_4(%arg0: i32) -> (i32, i32, i32) {
    %c0_i32 = arith.constant 0 : i32
    %c0_i32_0 = arith.constant 0 : i32
    %c0_i32_1 = arith.constant 0 : i32
    return %arg0, %c0_i32, %c0_i32_0 : i32, i32, i32
  }
}

module attributes {stable_mosaic.version = 11 : i64} {
  func.func @_bn_act_kernel(%arg0: i32, %arg1: memref<512x128xf32, #tpu.memory_space<vmem>>, %arg2: memref<1x128xf32, #tpu.memory_space<vmem>>, %arg3: memref<1x128xf32, #tpu.memory_space<vmem>>, %arg4: memref<512x128xf32, #tpu.memory_space<vmem>>) attributes {dimension_semantics = [#tpu.dimension_semantics<parallel>], iteration_bounds = array<i64: 1>, scalar_prefetch = 0 : i64, scratch_operands = 0 : i64, tpu.core_type = #tpu.core_type<tc>, window_params = [{transform_indices = @transform_0, window_bounds = array<i64: 512, 128>}, {pipeline_mode = #tpu.pipeline_mode<synchronous>, transform_indices = @transform_1, window_bounds = array<i64: 1, 128>}, {pipeline_mode = #tpu.pipeline_mode<synchronous>, transform_indices = @transform_2, window_bounds = array<i64: 1, 128>}, {transform_indices = @transform_3, window_bounds = array<i64: 512, 128>}]} {
    %c0 = arith.constant 0 : index
    %c0_0 = arith.constant 0 : index
    %0 = vector.load %arg1[%c0, %c0_0] : memref<512x128xf32, #tpu.memory_space<vmem>>, vector<512x128xf32>
    %c0_1 = arith.constant 0 : index
    %c0_2 = arith.constant 0 : index
    %1 = vector.load %arg2[%c0_1, %c0_2] : memref<1x128xf32, #tpu.memory_space<vmem>>, vector<1x128xf32>
    %2 = vector.broadcast %1 : vector<1x128xf32> to vector<512x128xf32>
    %3 = arith.mulf %0, %2 : vector<512x128xf32>
    %c0_3 = arith.constant 0 : index
    %c0_4 = arith.constant 0 : index
    %4 = vector.load %arg3[%c0_3, %c0_4] : memref<1x128xf32, #tpu.memory_space<vmem>>, vector<1x128xf32>
    %5 = vector.broadcast %4 : vector<1x128xf32> to vector<512x128xf32>
    %6 = arith.addf %3, %5 : vector<512x128xf32>
    %cst = arith.constant 0.000000e+00 : f32
    %7 = vector.broadcast %cst : f32 to vector<512x128xf32>
    %8 = arith.cmpf oge, %6, %7 : vector<512x128xf32>
    %cst_5 = arith.constant 2.000000e-01 : f32
    %9 = vector.broadcast %cst_5 : f32 to vector<512x128xf32>
    %10 = arith.mulf %9, %6 : vector<512x128xf32>
    %11 = arith.select %8, %6, %10 : vector<512x128xi1>, vector<512x128xf32>
    %c0_6 = arith.constant 0 : index
    %c0_7 = arith.constant 0 : index
    %12 = vector.load %arg4[%c0_6, %c0_7] : memref<512x128xf32, #tpu.memory_space<vmem>>, vector<512x128xf32>
    tpu.vector_store %arg4[%c0_6, %c0_7], %11 {strides = array<i32>} : memref<512x128xf32, #tpu.memory_space<vmem>>, vector<512x128xf32>,
    return
  }
  func.func @transform_0(%arg0: i32) -> (i32, i32) {
    %c0_i32 = arith.constant 0 : i32
    %c0_i32_0 = arith.constant 0 : i32
    return %arg0, %c0_i32 : i32, i32
  }
  func.func @transform_1(%arg0: i32) -> (i32, i32) {
    %c0_i32 = arith.constant 0 : i32
    %c0_i32_0 = arith.constant 0 : i32
    %c0_i32_1 = arith.constant 0 : i32
    return %c0_i32, %c0_i32_0 : i32, i32
  }
  func.func @transform_2(%arg0: i32) -> (i32, i32) {
    %c0_i32 = arith.constant 0 : i32
    %c0_i32_0 = arith.constant 0 : i32
    %c0_i32_1 = arith.constant 0 : i32
    return %c0_i32, %c0_i32_0 : i32, i32
  }
  func.func @transform_3(%arg0: i32) -> (i32, i32) {
    %c0_i32 = arith.constant 0 : i32
    %c0_i32_0 = arith.constant 0 : i32
    return %arg0, %c0_i32 : i32, i32
  }
}

module attributes {stable_mosaic.version = 11 : i64} {
  func.func @_gemm_stats_kernel(%arg0: i32, %arg1: memref<128x512xbf16, #tpu.memory_space<vmem>>, %arg2: memref<512x128xbf16, #tpu.memory_space<vmem>>, %arg3: memref<128x128xf32, #tpu.memory_space<vmem>>, %arg4: memref<1x8x128xf32, #tpu.memory_space<vmem>>, %arg5: memref<1x8x128xf32, #tpu.memory_space<vmem>>) attributes {dimension_semantics = [#tpu.dimension_semantics<parallel>], iteration_bounds = array<i64: 1>, scalar_prefetch = 0 : i64, scratch_operands = 0 : i64, tpu.core_type = #tpu.core_type<tc>, window_params = [{transform_indices = @transform_0, window_bounds = array<i64: 128, 512>}, {pipeline_mode = #tpu.pipeline_mode<synchronous>, transform_indices = @transform_1, window_bounds = array<i64: 512, 128>}, {transform_indices = @transform_2, window_bounds = array<i64: 128, 128>}, {transform_indices = @transform_3, window_bounds = array<i64: 1, 8, 128>}, {transform_indices = @transform_4, window_bounds = array<i64: 1, 8, 128>}]} {
    %c0 = arith.constant 0 : index
    %c0_0 = arith.constant 0 : index
    %0 = vector.load %arg1[%c0, %c0_0] : memref<128x512xbf16, #tpu.memory_space<vmem>>, vector<128x512xbf16>
    %c0_1 = arith.constant 0 : index
    %c0_2 = arith.constant 0 : index
    %1 = vector.load %arg2[%c0_1, %c0_2] : memref<512x128xbf16, #tpu.memory_space<vmem>>, vector<512x128xbf16>
    %cst = arith.constant dense<0.000000e+00> : vector<128x128xf32>
    %2 = tpu.matmul %0, %1, %cst {dimension_numbers = #tpu.dot_dimension_numbers<[1], [0], [0], [1], [0, 0, 1, 1], [], []>} : vector<128x512xbf16>, vector<512x128xbf16>, vector<128x128xf32> -> vector<128x128xf32>
    %c0_3 = arith.constant 0 : index
    %c0_4 = arith.constant 0 : index
    %3 = vector.load %arg3[%c0_3, %c0_4] : memref<128x128xf32, #tpu.memory_space<vmem>>, vector<128x128xf32>
    tpu.vector_store %arg3[%c0_3, %c0_4], %2 {strides = array<i32>} : memref<128x128xf32, #tpu.memory_space<vmem>>, vector<128x128xf32>,
    %4 = vector.shape_cast %2 : vector<128x128xf32> to vector<16x8x128xf32>
    %cst_5 = arith.constant dense<0.000000e+00> : vector<8x128xf32>
    %5 = vector.multi_reduction <add>, %4, %cst_5 [0] : vector<16x8x128xf32> to vector<8x128xf32>
    %6 = vector.shape_cast %5 : vector<8x128xf32> to vector<1x8x128xf32>
    %c0_6 = arith.constant 0 : index
    %c0_7 = arith.constant 0 : index
    %c0_8 = arith.constant 0 : index
    %7 = vector.load %arg4[%c0_6, %c0_7, %c0_8] : memref<1x8x128xf32, #tpu.memory_space<vmem>>, vector<1x8x128xf32>
    tpu.vector_store %arg4[%c0_6, %c0_7, %c0_8], %6 {strides = array<i32>} : memref<1x8x128xf32, #tpu.memory_space<vmem>>, vector<1x8x128xf32>,
    %8 = arith.mulf %4, %4 : vector<16x8x128xf32>
    %cst_9 = arith.constant dense<0.000000e+00> : vector<8x128xf32>
    %9 = vector.multi_reduction <add>, %8, %cst_9 [0] : vector<16x8x128xf32> to vector<8x128xf32>
    %10 = vector.shape_cast %9 : vector<8x128xf32> to vector<1x8x128xf32>
    %c0_10 = arith.constant 0 : index
    %c0_11 = arith.constant 0 : index
    %c0_12 = arith.constant 0 : index
    %11 = vector.load %arg5[%c0_10, %c0_11, %c0_12] : memref<1x8x128xf32, #tpu.memory_space<vmem>>, vector<1x8x128xf32>
    tpu.vector_store %arg5[%c0_10, %c0_11, %c0_12], %10 {strides = array<i32>} : memref<1x8x128xf32, #tpu.memory_space<vmem>>, vector<1x8x128xf32>,
    return
  }
  func.func @transform_0(%arg0: i32) -> (i32, i32) {
    %c0_i32 = arith.constant 0 : i32
    %c0_i32_0 = arith.constant 0 : i32
    return %arg0, %c0_i32 : i32, i32
  }
  func.func @transform_1(%arg0: i32) -> (i32, i32) {
    %c0_i32 = arith.constant 0 : i32
    %c0_i32_0 = arith.constant 0 : i32
    %c0_i32_1 = arith.constant 0 : i32
    return %c0_i32, %c0_i32_0 : i32, i32
  }
  func.func @transform_2(%arg0: i32) -> (i32, i32) {
    %c0_i32 = arith.constant 0 : i32
    %c0_i32_0 = arith.constant 0 : i32
    return %arg0, %c0_i32 : i32, i32
  }
  func.func @transform_3(%arg0: i32) -> (i32, i32, i32) {
    %c0_i32 = arith.constant 0 : i32
    %c0_i32_0 = arith.constant 0 : i32
    %c0_i32_1 = arith.constant 0 : i32
    return %arg0, %c0_i32, %c0_i32_0 : i32, i32, i32
  }
  func.func @transform_4(%arg0: i32) -> (i32, i32, i32) {
    %c0_i32 = arith.constant 0 : i32
    %c0_i32_0 = arith.constant 0 : i32
    %c0_i32_1 = arith.constant 0 : i32
    return %arg0, %c0_i32, %c0_i32_0 : i32, i32, i32
  }
}

module attributes {stable_mosaic.version = 11 : i64} {
  func.func @_bn_act_kernel(%arg0: i32, %arg1: memref<128x128xf32, #tpu.memory_space<vmem>>, %arg2: memref<1x128xf32, #tpu.memory_space<vmem>>, %arg3: memref<1x128xf32, #tpu.memory_space<vmem>>, %arg4: memref<128x128xf32, #tpu.memory_space<vmem>>) attributes {dimension_semantics = [#tpu.dimension_semantics<parallel>], iteration_bounds = array<i64: 1>, scalar_prefetch = 0 : i64, scratch_operands = 0 : i64, tpu.core_type = #tpu.core_type<tc>, window_params = [{transform_indices = @transform_0, window_bounds = array<i64: 128, 128>}, {pipeline_mode = #tpu.pipeline_mode<synchronous>, transform_indices = @transform_1, window_bounds = array<i64: 1, 128>}, {pipeline_mode = #tpu.pipeline_mode<synchronous>, transform_indices = @transform_2, window_bounds = array<i64: 1, 128>}, {transform_indices = @transform_3, window_bounds = array<i64: 128, 128>}]} {
    %c0 = arith.constant 0 : index
    %c0_0 = arith.constant 0 : index
    %0 = vector.load %arg1[%c0, %c0_0] : memref<128x128xf32, #tpu.memory_space<vmem>>, vector<128x128xf32>
    %c0_1 = arith.constant 0 : index
    %c0_2 = arith.constant 0 : index
    %1 = vector.load %arg2[%c0_1, %c0_2] : memref<1x128xf32, #tpu.memory_space<vmem>>, vector<1x128xf32>
    %2 = vector.broadcast %1 : vector<1x128xf32> to vector<128x128xf32>
    %3 = arith.mulf %0, %2 : vector<128x128xf32>
    %c0_3 = arith.constant 0 : index
    %c0_4 = arith.constant 0 : index
    %4 = vector.load %arg3[%c0_3, %c0_4] : memref<1x128xf32, #tpu.memory_space<vmem>>, vector<1x128xf32>
    %5 = vector.broadcast %4 : vector<1x128xf32> to vector<128x128xf32>
    %6 = arith.addf %3, %5 : vector<128x128xf32>
    %cst = arith.constant 0.000000e+00 : f32
    %7 = vector.broadcast %cst : f32 to vector<128x128xf32>
    %8 = arith.cmpf oge, %6, %7 : vector<128x128xf32>
    %cst_5 = arith.constant 2.000000e-01 : f32
    %9 = vector.broadcast %cst_5 : f32 to vector<128x128xf32>
    %10 = arith.mulf %9, %6 : vector<128x128xf32>
    %11 = arith.select %8, %6, %10 : vector<128x128xi1>, vector<128x128xf32>
    %c0_6 = arith.constant 0 : index
    %c0_7 = arith.constant 0 : index
    %12 = vector.load %arg4[%c0_6, %c0_7] : memref<128x128xf32, #tpu.memory_space<vmem>>, vector<128x128xf32>
    tpu.vector_store %arg4[%c0_6, %c0_7], %11 {strides = array<i32>} : memref<128x128xf32, #tpu.memory_space<vmem>>, vector<128x128xf32>,
    return
  }
  func.func @transform_0(%arg0: i32) -> (i32, i32) {
    %c0_i32 = arith.constant 0 : i32
    %c0_i32_0 = arith.constant 0 : i32
    return %arg0, %c0_i32 : i32, i32
  }
  func.func @transform_1(%arg0: i32) -> (i32, i32) {
    %c0_i32 = arith.constant 0 : i32
    %c0_i32_0 = arith.constant 0 : i32
    %c0_i32_1 = arith.constant 0 : i32
    return %c0_i32, %c0_i32_0 : i32, i32
  }
  func.func @transform_2(%arg0: i32) -> (i32, i32) {
    %c0_i32 = arith.constant 0 : i32
    %c0_i32_0 = arith.constant 0 : i32
    %c0_i32_1 = arith.constant 0 : i32
    return %c0_i32, %c0_i32_0 : i32, i32
  }
  func.func @transform_3(%arg0: i32) -> (i32, i32) {
    %c0_i32 = arith.constant 0 : i32
    %c0_i32_0 = arith.constant 0 : i32
    return %arg0, %c0_i32 : i32, i32
  }
}

module attributes {stable_mosaic.version = 11 : i64} {
  func.func @_bn_act_kernel(%arg0: i32, %arg1: memref<32x128xf32, #tpu.memory_space<vmem>>, %arg2: memref<1x128xf32, #tpu.memory_space<vmem>>, %arg3: memref<1x128xf32, #tpu.memory_space<vmem>>, %arg4: memref<32x128xf32, #tpu.memory_space<vmem>>) attributes {dimension_semantics = [#tpu.dimension_semantics<parallel>], iteration_bounds = array<i64: 1>, scalar_prefetch = 0 : i64, scratch_operands = 0 : i64, tpu.core_type = #tpu.core_type<tc>, window_params = [{transform_indices = @transform_0, window_bounds = array<i64: 32, 128>}, {pipeline_mode = #tpu.pipeline_mode<synchronous>, transform_indices = @transform_1, window_bounds = array<i64: 1, 128>}, {pipeline_mode = #tpu.pipeline_mode<synchronous>, transform_indices = @transform_2, window_bounds = array<i64: 1, 128>}, {transform_indices = @transform_3, window_bounds = array<i64: 32, 128>}]} {
    %c0 = arith.constant 0 : index
    %c0_0 = arith.constant 0 : index
    %0 = vector.load %arg1[%c0, %c0_0] : memref<32x128xf32, #tpu.memory_space<vmem>>, vector<32x128xf32>
    %c0_1 = arith.constant 0 : index
    %c0_2 = arith.constant 0 : index
    %1 = vector.load %arg2[%c0_1, %c0_2] : memref<1x128xf32, #tpu.memory_space<vmem>>, vector<1x128xf32>
    %2 = vector.broadcast %1 : vector<1x128xf32> to vector<32x128xf32>
    %3 = arith.mulf %0, %2 : vector<32x128xf32>
    %c0_3 = arith.constant 0 : index
    %c0_4 = arith.constant 0 : index
    %4 = vector.load %arg3[%c0_3, %c0_4] : memref<1x128xf32, #tpu.memory_space<vmem>>, vector<1x128xf32>
    %5 = vector.broadcast %4 : vector<1x128xf32> to vector<32x128xf32>
    %6 = arith.addf %3, %5 : vector<32x128xf32>
    %cst = arith.constant 0.000000e+00 : f32
    %7 = vector.broadcast %cst : f32 to vector<32x128xf32>
    %8 = arith.cmpf oge, %6, %7 : vector<32x128xf32>
    %cst_5 = arith.constant 2.000000e-01 : f32
    %9 = vector.broadcast %cst_5 : f32 to vector<32x128xf32>
    %10 = arith.mulf %9, %6 : vector<32x128xf32>
    %11 = arith.select %8, %6, %10 : vector<32x128xi1>, vector<32x128xf32>
    %c0_6 = arith.constant 0 : index
    %c0_7 = arith.constant 0 : index
    %12 = vector.load %arg4[%c0_6, %c0_7] : memref<32x128xf32, #tpu.memory_space<vmem>>, vector<32x128xf32>
    tpu.vector_store %arg4[%c0_6, %c0_7], %11 {strides = array<i32>} : memref<32x128xf32, #tpu.memory_space<vmem>>, vector<32x128xf32>,
    return
  }
  func.func @transform_0(%arg0: i32) -> (i32, i32) {
    %c0_i32 = arith.constant 0 : i32
    %c0_i32_0 = arith.constant 0 : i32
    return %arg0, %c0_i32 : i32, i32
  }
  func.func @transform_1(%arg0: i32) -> (i32, i32) {
    %c0_i32 = arith.constant 0 : i32
    %c0_i32_0 = arith.constant 0 : i32
    %c0_i32_1 = arith.constant 0 : i32
    return %c0_i32, %c0_i32_0 : i32, i32
  }
  func.func @transform_2(%arg0: i32) -> (i32, i32) {
    %c0_i32 = arith.constant 0 : i32
    %c0_i32_0 = arith.constant 0 : i32
    %c0_i32_1 = arith.constant 0 : i32
    return %c0_i32, %c0_i32_0 : i32, i32
  }
  func.func @transform_3(%arg0: i32) -> (i32, i32) {
    %c0_i32 = arith.constant 0 : i32
    %c0_i32_0 = arith.constant 0 : i32
    return %arg0, %c0_i32 : i32, i32
  }
}

module attributes {stable_mosaic.version = 11 : i64} {
  func.func @_gemm_stats_kernel(%arg0: i32, %arg1: memref<32x1024xbf16, #tpu.memory_space<vmem>>, %arg2: memref<1024x128xbf16, #tpu.memory_space<vmem>>, %arg3: memref<32x128xf32, #tpu.memory_space<vmem>>, %arg4: memref<1x8x128xf32, #tpu.memory_space<vmem>>, %arg5: memref<1x8x128xf32, #tpu.memory_space<vmem>>) attributes {dimension_semantics = [#tpu.dimension_semantics<parallel>], iteration_bounds = array<i64: 1>, scalar_prefetch = 0 : i64, scratch_operands = 0 : i64, tpu.core_type = #tpu.core_type<tc>, window_params = [{transform_indices = @transform_0, window_bounds = array<i64: 32, 1024>}, {pipeline_mode = #tpu.pipeline_mode<synchronous>, transform_indices = @transform_1, window_bounds = array<i64: 1024, 128>}, {transform_indices = @transform_2, window_bounds = array<i64: 32, 128>}, {transform_indices = @transform_3, window_bounds = array<i64: 1, 8, 128>}, {transform_indices = @transform_4, window_bounds = array<i64: 1, 8, 128>}]} {
    %c0 = arith.constant 0 : index
    %c0_0 = arith.constant 0 : index
    %0 = vector.load %arg1[%c0, %c0_0] : memref<32x1024xbf16, #tpu.memory_space<vmem>>, vector<32x1024xbf16>
    %c0_1 = arith.constant 0 : index
    %c0_2 = arith.constant 0 : index
    %1 = vector.load %arg2[%c0_1, %c0_2] : memref<1024x128xbf16, #tpu.memory_space<vmem>>, vector<1024x128xbf16>
    %cst = arith.constant dense<0.000000e+00> : vector<32x128xf32>
    %2 = tpu.matmul %0, %1, %cst {dimension_numbers = #tpu.dot_dimension_numbers<[1], [0], [0], [1], [0, 0, 1, 1], [], []>} : vector<32x1024xbf16>, vector<1024x128xbf16>, vector<32x128xf32> -> vector<32x128xf32>
    %c0_3 = arith.constant 0 : index
    %c0_4 = arith.constant 0 : index
    %3 = vector.load %arg3[%c0_3, %c0_4] : memref<32x128xf32, #tpu.memory_space<vmem>>, vector<32x128xf32>
    tpu.vector_store %arg3[%c0_3, %c0_4], %2 {strides = array<i32>} : memref<32x128xf32, #tpu.memory_space<vmem>>, vector<32x128xf32>,
    %4 = vector.shape_cast %2 : vector<32x128xf32> to vector<4x8x128xf32>
    %cst_5 = arith.constant dense<0.000000e+00> : vector<8x128xf32>
    %5 = vector.multi_reduction <add>, %4, %cst_5 [0] : vector<4x8x128xf32> to vector<8x128xf32>
    %6 = vector.shape_cast %5 : vector<8x128xf32> to vector<1x8x128xf32>
    %c0_6 = arith.constant 0 : index
    %c0_7 = arith.constant 0 : index
    %c0_8 = arith.constant 0 : index
    %7 = vector.load %arg4[%c0_6, %c0_7, %c0_8] : memref<1x8x128xf32, #tpu.memory_space<vmem>>, vector<1x8x128xf32>
    tpu.vector_store %arg4[%c0_6, %c0_7, %c0_8], %6 {strides = array<i32>} : memref<1x8x128xf32, #tpu.memory_space<vmem>>, vector<1x8x128xf32>,
    %8 = arith.mulf %4, %4 : vector<4x8x128xf32>
    %cst_9 = arith.constant dense<0.000000e+00> : vector<8x128xf32>
    %9 = vector.multi_reduction <add>, %8, %cst_9 [0] : vector<4x8x128xf32> to vector<8x128xf32>
    %10 = vector.shape_cast %9 : vector<8x128xf32> to vector<1x8x128xf32>
    %c0_10 = arith.constant 0 : index
    %c0_11 = arith.constant 0 : index
    %c0_12 = arith.constant 0 : index
    %11 = vector.load %arg5[%c0_10, %c0_11, %c0_12] : memref<1x8x128xf32, #tpu.memory_space<vmem>>, vector<1x8x128xf32>
    tpu.vector_store %arg5[%c0_10, %c0_11, %c0_12], %10 {strides = array<i32>} : memref<1x8x128xf32, #tpu.memory_space<vmem>>, vector<1x8x128xf32>,
    return
  }
  func.func @transform_0(%arg0: i32) -> (i32, i32) {
    %c0_i32 = arith.constant 0 : i32
    %c0_i32_0 = arith.constant 0 : i32
    return %arg0, %c0_i32 : i32, i32
  }
  func.func @transform_1(%arg0: i32) -> (i32, i32) {
    %c0_i32 = arith.constant 0 : i32
    %c0_i32_0 = arith.constant 0 : i32
    %c0_i32_1 = arith.constant 0 : i32
    return %c0_i32, %c0_i32_0 : i32, i32
  }
  func.func @transform_2(%arg0: i32) -> (i32, i32) {
    %c0_i32 = arith.constant 0 : i32
    %c0_i32_0 = arith.constant 0 : i32
    return %arg0, %c0_i32 : i32, i32
  }
  func.func @transform_3(%arg0: i32) -> (i32, i32, i32) {
    %c0_i32 = arith.constant 0 : i32
    %c0_i32_0 = arith.constant 0 : i32
    %c0_i32_1 = arith.constant 0 : i32
    return %arg0, %c0_i32, %c0_i32_0 : i32, i32, i32
  }
  func.func @transform_4(%arg0: i32) -> (i32, i32, i32) {
    %c0_i32 = arith.constant 0 : i32
    %c0_i32_0 = arith.constant 0 : i32
    %c0_i32_1 = arith.constant 0 : i32
    return %arg0, %c0_i32, %c0_i32_0 : i32, i32, i32
  }
}

module attributes {stable_mosaic.version = 11 : i64} {
  func.func @_gemm_act_kernel(%arg0: i32, %arg1: memref<16x2048xbf16, #tpu.memory_space<vmem>>, %arg2: memref<2048x128xbf16, #tpu.memory_space<vmem>>, %arg3: memref<16x128xf32, #tpu.memory_space<vmem>>) attributes {dimension_semantics = [#tpu.dimension_semantics<parallel>], iteration_bounds = array<i64: 1>, scalar_prefetch = 0 : i64, scratch_operands = 0 : i64, tpu.core_type = #tpu.core_type<tc>, window_params = [{transform_indices = @transform_0, window_bounds = array<i64: 16, 2048>}, {pipeline_mode = #tpu.pipeline_mode<synchronous>, transform_indices = @transform_1, window_bounds = array<i64: 2048, 128>}, {transform_indices = @transform_2, window_bounds = array<i64: 16, 128>}]} {
    %c0 = arith.constant 0 : index
    %c0_0 = arith.constant 0 : index
    %0 = vector.load %arg1[%c0, %c0_0] : memref<16x2048xbf16, #tpu.memory_space<vmem>>, vector<16x2048xbf16>
    %c0_1 = arith.constant 0 : index
    %c0_2 = arith.constant 0 : index
    %1 = vector.load %arg2[%c0_1, %c0_2] : memref<2048x128xbf16, #tpu.memory_space<vmem>>, vector<2048x128xbf16>
    %cst = arith.constant dense<0.000000e+00> : vector<16x128xf32>
    %2 = tpu.matmul %0, %1, %cst {dimension_numbers = #tpu.dot_dimension_numbers<[1], [0], [0], [1], [0, 0, 1, 1], [], []>} : vector<16x2048xbf16>, vector<2048x128xbf16>, vector<16x128xf32> -> vector<16x128xf32>
    %3 = arith.negf %2 : vector<16x128xf32>
    %4 = math.exp %3 : vector<16x128xf32>
    %cst_3 = arith.constant 1.000000e+00 : f32
    %5 = vector.broadcast %cst_3 : f32 to vector<16x128xf32>
    %6 = arith.addf %5, %4 : vector<16x128xf32>
    %7 = arith.divf %5, %6 : vector<16x128xf32>
    %c0_4 = arith.constant 0 : index
    %c0_5 = arith.constant 0 : index
    %8 = vector.load %arg3[%c0_4, %c0_5] : memref<16x128xf32, #tpu.memory_space<vmem>>, vector<16x128xf32>
    tpu.vector_store %arg3[%c0_4, %c0_5], %7 {strides = array<i32>} : memref<16x128xf32, #tpu.memory_space<vmem>>, vector<16x128xf32>,
    return
  }
  func.func @transform_0(%arg0: i32) -> (i32, i32) {
    %c0_i32 = arith.constant 0 : i32
    %c0_i32_0 = arith.constant 0 : i32
    return %arg0, %c0_i32 : i32, i32
  }
  func.func @transform_1(%arg0: i32) -> (i32, i32) {
    %c0_i32 = arith.constant 0 : i32
    %c0_i32_0 = arith.constant 0 : i32
    %c0_i32_1 = arith.constant 0 : i32
    return %c0_i32, %c0_i32_0 : i32, i32
  }
  func.func @transform_2(%arg0: i32) -> (i32, i32) {
    %c0_i32 = arith.constant 0 : i32
    %c0_i32_0 = arith.constant 0 : i32
    return %arg0, %c0_i32 : i32, i32
  }
}

</mosaic_0001>

<bundles_post_ra>
// kernel: dcgan_discriminator_forward.8
= control target key start
LH: loop header
LB: loop body
LE: loop exit
PB: predicated region body
PF: predicated region fallthrough
CT: control target
= control target key end

     0   :  { %s1327_s9 = smov 0   ;;  %s1472_s0 = inlined_call_operand.vmem [shape: bf16[2048,128], index: 0, kind: input, shape index: {}]   ;;  %s1473_s1 = inlined_call_operand.vmem [shape: bf16[128,128], index: 1, kind: input, shape index: {}]   ;;  %s1474_s2 = inlined_call_operand.vmem [shape: f32[2048,128], index: 2, kind: output, shape index: {}]  }
   0x1 LB: > { %s1069_s10 = sadd.s32 4294967295, %s1310_s9   ;;  %p1073_p0 = scmp.ge.s32.totalorder %s1310_s9, 1  ;;  %s1310_s9 = sphi %s1327_s9, %s12_s9  }
   0x2   : > { %p113_p1 = scmp.lt.s32.totalorder %s1310_s9, 5 }
   0x4   : > { %p114_p2 = pnand %p1073_p0, %p113_p1 }
   0x5   : > { %v1264_v0 = vld [vmem:[%s1473_s1] sm:$0xff] (!%p114_p2)   ;;  %s1074_s13 = sshll.u32 (!%p114_p2), %s1069_s10, 6  ;;  %v1265_v1 = vld [vmem:[%s1473_s1 + $0x8] sm:$0xff] (!%p114_p2)   ;;  %v1266_v2 = vld [vmem:[%s1473_s1 + $0x10] sm:$0xff] (!%p114_p2)  }
   0x6   : > { %117 = sbr.rel (%p114_p2) target bundleno = 316 (0x13c), region = 28  ;;  %p136_p3 = scmp.lt.s32.totalorder (!%p114_p2), %s1074_s13, 255  ;;  %1160 = vmatprep.subr.bf16.mxu0 (!%p114_p2), %v1264_v0  ;;  %1240 = vmatprep.subr.bf16.mxu1 (!%p114_p2), %v1264_v0  ;;  %v1267_v3 = vld [vmem:[%s1473_s1 + $0x18] sm:$0xff] (!%p114_p2)   ;;  %v1268_v6 = vld [vmem:[%s1473_s1 + $0x20] sm:$0xff] (!%p114_p2)   ;;  %v1269_v7 = vld [vmem:[%s1473_s1 + $0x28] sm:$0xff] (!%p114_p2)  }
   0x7   : > { %1161 = vmatpush3.bf16.msra.mxu0 (!%p114_p2), %v1264_v0  ;;  %1248 = vmatpush3.bf16.msra.mxu1 (!%p114_p2), %v1264_v0  ;;  %v1270_v8 = vld [vmem:[%s1473_s1 + $0x30] sm:$0xff] (!%p114_p2)   ;;  %v1271_v9 = vld [vmem:[%s1473_s1 + $0x38] sm:$0xff] (!%p114_p2)  }
   0x8   : > { %1162 = vmatprep.subr.bf16.mxu0 (!%p114_p2), %v1265_v1  ;;  %1241 = vmatprep.subr.bf16.mxu1 (!%p114_p2), %v1265_v1 }
   0xb   : > { %1163 = vmatpush3.bf16.msra.mxu0 (!%p114_p2), %v1265_v1  ;;  %1249 = vmatpush3.bf16.msra.mxu1 (!%p114_p2), %v1265_v1 }
   0xc   : > { %1164 = vmatprep.subr.bf16.mxu0 (!%p114_p2), %v1266_v2  ;;  %1242 = vmatprep.subr.bf16.mxu1 (!%p114_p2), %v1266_v2 }
   0xd   : > { %s1476_s13 = smov (!%p136_p3, %s1074_s13), 255 }
   0xe   : > { %s1075_s18 = sshll.u32 %s1476_s13, 2  ;;  %s1077_s4 = sshll.u32 %s1476_s13, 3 }
   0xf   : > { %s1350_s21 = scalar_lea.vmem %s1472_s0, %s1075_s18  ;;  %1165 = vmatpush3.bf16.msra.mxu0 %v1266_v2  ;;  %1250 = vmatpush3.bf16.msra.mxu1 %v1266_v2  ;;  %s1403_s7 = scalar_lea.vmem %s1474_s2, %s1077_s4 }
  0x10   : > { %v1272_v4 = vld [vmem:[%s1350_s21] sm:$0xff]   ;;  %1166 = vmatprep.subr.bf16.mxu0 %v1267_v3  ;;  %1243 = vmatprep.subr.bf16.mxu1 %v1267_v3  ;;  %v1274_v10 = vld [vmem:[%s1350_s21 + $0x8] sm:$0xff]   ;;  %v1276_v12 = vld [vmem:[%s1350_s21 + $0x10] sm:$0xff]  }
  0x11   : > { %v1273_v5 = vld [vmem:[%s1350_s21 + $0x80] sm:$0xff]   ;;  %1176 = vmatprep.mubr.bf16.mxu0 %v1272_v4  ;;  %v1275_v11 = vld [vmem:[%s1350_s21 + $0x88] sm:$0xff]   ;;  %v1277_v13 = vld [vmem:[%s1350_s21 + $0x90] sm:$0xff]  }
  0x12   : > { %1208 = vmatprep.mubr.bf16.mxu1 %v1273_v5  ;;  %v1278_v14 = vld [vmem:[%s1350_s21 + $0x18] sm:$0xff]   ;;  %v1280_v16 = vld [vmem:[%s1350_s21 + $0x20] sm:$0xff]   ;;  %v1282_v18 = vld [vmem:[%s1350_s21 + $0x28] sm:$0xff]  }
  0x13   : > { %1167 = vmatpush3.bf16.msra.mxu0 %v1267_v3  ;;  %1251 = vmatpush3.bf16.msra.mxu1 %v1267_v3  ;;  %v1279_v15 = vld [vmem:[%s1350_s21 + $0x98] sm:$0xff]   ;;  %v1281_v17 = vld [vmem:[%s1350_s21 + $0xa0] sm:$0xff]   ;;  %v1283_v19 = vld [vmem:[%s1350_s21 + $0xa8] sm:$0xff]  }
  0x14   : > { %1168 = vmatprep.subr.bf16.mxu0 %v1268_v6  ;;  %1244 = vmatprep.subr.bf16.mxu1 %v1268_v6  ;;  %v1284_v20 = vld [vmem:[%s1350_s21 + $0x30] sm:$0xff]   ;;  %v1286_v22 = vld [vmem:[%s1350_s21 + $0x38] sm:$0xff]   ;;  %v1288_v24 = vld [vmem:[%s1350_s21 + $0x40] sm:$0xff]  }
  0x15   : > { %v1285_v21 = vld [vmem:[%s1350_s21 + $0xb0] sm:$0xff]   ;;  %v1287_v23 = vld [vmem:[%s1350_s21 + $0xb8] sm:$0xff]   ;;  %v1289_v25 = vld [vmem:[%s1350_s21 + $0xc0] sm:$0xff]  }
  0x16   : > { %v1290_v26 = vld [vmem:[%s1350_s21 + $0x48] sm:$0xff]   ;;  %v1292_v28 = vld [vmem:[%s1350_s21 + $0x50] sm:$0xff]   ;;  %v1294_v30 = vld [vmem:[%s1350_s21 + $0x58] sm:$0xff]  }
  0x17   : > { %1169 = vmatpush3.bf16.msra.mxu0 %v1268_v6  ;;  %1252 = vmatpush3.bf16.msra.mxu1 %v1268_v6  ;;  %v1291_v27 = vld [vmem:[%s1350_s21 + $0xc8] sm:$0xff]   ;;  %v1293_v29 = vld [vmem:[%s1350_s21 + $0xd0] sm:$0xff]   ;;  %v1295_v31 = vld [vmem:[%s1350_s21 + $0xd8] sm:$0xff]  }
  0x18   : > { %1170 = vmatprep.subr.bf16.mxu0 %v1269_v7  ;;  %1245 = vmatprep.subr.bf16.mxu1 %v1269_v7  ;;  %v1296_v32 = vld [vmem:[%s1350_s21 + $0x60] sm:$0xff]   ;;  %v1298_v34 = vld [vmem:[%s1350_s21 + $0x68] sm:$0xff]   ;;  %v1300_v36 = vld [vmem:[%s1350_s21 + $0x70] sm:$0xff]  }
  0x19   : > { %v1297_v33 = vld [vmem:[%s1350_s21 + $0xe0] sm:$0xff]   ;;  %v1299_v35 = vld [vmem:[%s1350_s21 + $0xe8] sm:$0xff]   ;;  %v1301_v37 = vld [vmem:[%s1350_s21 + $0xf0] sm:$0xff]  }
  0x1a   : > { %v1302_v38 = vld [vmem:[%s1350_s21 + $0x78] sm:$0xff]  }
  0x1b   : > { %1171 = vmatpush3.bf16.msra.mxu0 %v1269_v7  ;;  %1253 = vmatpush3.bf16.msra.mxu1 %v1269_v7  ;;  %v1303_v39 = vld [vmem:[%s1350_s21 + $0xf8] sm:$0xff]  }
  0x1c   : > { %1172 = vmatprep.subr.bf16.mxu0 %v1270_v8  ;;  %1246 = vmatprep.subr.bf16.mxu1 %v1270_v8 }
  0x1f   : > { %1173 = vmatpush3.bf16.msra.mxu0 %v1270_v8  ;;  %1254 = vmatpush3.bf16.msra.mxu1 %v1270_v8 }
  0x20   : > { %1174 = vmatprep.subr.bf16.mxu0 %v1271_v9  ;;  %1247 = vmatprep.subr.bf16.mxu1 %v1271_v9 }
  0x23   : > { %1175 = vmatpush3.bf16.msra.mxu0 %v1271_v9  ;;  %1255 = vmatpush3.bf16.msra.mxu1 %v1271_v9 }
  0x26   : > { %1177 = vmatmul.mubr.bf16.vlgmr.msra.gmra.mrb[0].mxu0 %v1274_v10  ;;  %1209 = vmatmul.mubr.bf16.vlgmr.msra.gmra.mrb[0].mxu1 %v1275_v11 }
  0x27   : > { %1180 = vmatprep.mubr.bf16.mxu0 %v1276_v12  ;;  %1212 = vmatprep.mubr.bf16.mxu1 %v1277_v13 }
  0x2e   : > { %1181 = vmatmul.mubr.bf16.gmra.mrb[4].mxu0 %v1278_v14  ;;  %1213 = vmatmul.mubr.bf16.gmra.mrb[4].mxu1 %v1279_v15 }
  0x2f   : > { %1184 = vmatprep.mubr.bf16.mxu0 %v1280_v16  ;;  %1216 = vmatprep.mubr.bf16.mxu1 %v1281_v17 }
  0x36   : > { %1185 = vmatmul.mubr.bf16.gmra.mrb[8].mxu0 %v1282_v18  ;;  %1217 = vmatmul.mubr.bf16.gmra.mrb[8].mxu1 %v1283_v19 }
  0x37   : > { %1188 = vmatprep.mubr.bf16.mxu0 %v1284_v20  ;;  %1220 = vmatprep.mubr.bf16.mxu1 %v1285_v21 }
  0x3e   : > { %1189 = vmatmul.mubr.bf16.gmra.mrb[12].mxu0 %v1286_v22  ;;  %1221 = vmatmul.mubr.bf16.gmra.mrb[12].mxu1 %v1287_v23 }
  0x3f   : > { %1192 = vmatprep.mubr.bf16.mxu0 %v1288_v24  ;;  %1224 = vmatprep.mubr.bf16.mxu1 %v1289_v25 }
  0x46   : > { %1193 = vmatmul.mubr.bf16.gmra.mrb[16].mxu0 %v1290_v26  ;;  %1225 = vmatmul.mubr.bf16.gmra.mrb[16].mxu1 %v1291_v27 }
  0x47   : > { %1196 = vmatprep.mubr.bf16.mxu0 %v1292_v28  ;;  %1228 = vmatprep.mubr.bf16.mxu1 %v1293_v29 }
  0x4e   : > { %1197 = vmatmul.mubr.bf16.gmra.mrb[20].mxu0 %v1294_v30  ;;  %1229 = vmatmul.mubr.bf16.gmra.mrb[20].mxu1 %v1295_v31 }
  0x4f   : > { %1200 = vmatprep.mubr.bf16.mxu0 %v1296_v32  ;;  %1232 = vmatprep.mubr.bf16.mxu1 %v1297_v33 }
  0x56   : > { %1201 = vmatmul.mubr.bf16.gmra.mrb[24].mxu0 %v1298_v34  ;;  %1233 = vmatmul.mubr.bf16.gmra.mrb[24].mxu1 %v1299_v35 }
  0x57   : > { %1204 = vmatprep.mubr.bf16.mxu0 %v1300_v36  ;;  %1236 = vmatprep.mubr.bf16.mxu1 %v1301_v37 }
  0x5e   : > { %1205 = vmatmul.mubr.bf16.gmra.mrb[28].mxu0 %v1302_v38  ;;  %1237 = vmatmul.mubr.bf16.gmra.mrb[28].mxu1 %v1303_v39 }
  0xf9   : > { %v1178_v40 = vpop.f32.mrb[0].mxu0  ;;  %v1210_v41 = vpop.f32.mrb[0].mxu1 }
  0xfa   : > { %vm759_vm0 = vcmp.ge.f32.partialorder %v1178_v40, 0.0  ;;  %v823_v42 = vmul.f32 0.2, %v1178_v40  ;;  %vm791_vm1 = vcmp.ge.f32.partialorder %v1210_v41, 0.0  ;;  %v855_v43 = vmul.f32 0.2, %v1210_v41 }
  0xfb   : > { %v502_v44 = vpop.f32.mrb[1].mxu0  ;;  %v630_v45 = vpop.f32.mrb[1].mxu1 }
  0xfc   : > { %v887_v46 = vsel %vm759_vm0, %v1178_v40, %v823_v42  ;;  %v919_v47 = vsel %vm791_vm1, %v1210_v41, %v855_v43  ;;  %vm757_vm2 = vcmp.ge.f32.partialorder %v502_v44, 0.0  ;;  %v821_v48 = vmul.f32 0.2, %v502_v44  ;;  %v1179_v49 = vpop.f32.mrb[2].mxu0  ;;  %v1211_v50 = vpop.f32.mrb[2].mxu1 }
  0xfd   : > { %951 = vst [vmem:[%s1403_s7 + $0x10] sm:$0xff] %v887_v46  ;;  %983 = vst [vmem:[%s1403_s7 + $0x110] sm:$0xff] %v919_v47  ;;  %vm789_vm3 = vcmp.ge.f32.partialorder %v630_v45, 0.0  ;;  %v853_v51 = vmul.f32 0.2, %v630_v45  ;;  %vm760_vm4 = vcmp.ge.f32.partialorder %v1179_v49, 0.0 }
  0xfe   : > { %v824_v52 = vmul.f32 0.2, %v1179_v49  ;;  %v885_v53 = vsel %vm757_vm2, %v502_v44, %v821_v48  ;;  %vm792_vm5 = vcmp.ge.f32.partialorder %v1211_v50, 0.0  ;;  %v856_v54 = vmul.f32 0.2, %v1211_v50  ;;  %v505_v55 = vpop.f32.mrb[3].mxu0 }
  0xff   : > { %v633_v56 = vpop.f32.mrb[3].mxu1  ;;  %949 = vst [vmem:[%s1403_s7] sm:$0xff] %v885_v53  ;;  %v917_v57 = vsel %vm789_vm3, %v630_v45, %v853_v51  ;;  %vm758_vm6 = vcmp.ge.f32.partialorder %v505_v55, 0.0  ;;  %v822_v59 = vmul.f32 0.2, %v505_v55 }
 0x100   : > { %v888_v58 = vsel %vm760_vm4, %v1179_v49, %v824_v52  ;;  %981 = vst [vmem:[%s1403_s7 + $0x100] sm:$0xff] %v917_v57  ;;  %v920_v60 = vsel %vm792_vm5, %v1211_v50, %v856_v54  ;;  %vm790_vm7 = vcmp.ge.f32.partialorder %v633_v56, 0.0  ;;  %v854_v61 = vmul.f32 0.2, %v633_v56 }
 0x101   : > { %952 = vst [vmem:[%s1403_s7 + $0x18] sm:$0xff] %v888_v58  ;;  %984 = vst [vmem:[%s1403_s7 + $0x118] sm:$0xff] %v920_v60  ;;  %v886_v62 = vsel %vm758_vm6, %v505_v55, %v822_v59  ;;  %v1182_v63 = vpop.f32.mrb[4].mxu0  ;;  %v1214_v0 = vpop.f32.mrb[4].mxu1 }
 0x102   : > { %950 = vst [vmem:[%s1403_s7 + $0x8] sm:$0xff] %v886_v62  ;;  %v918_v1 = vsel %vm790_vm7, %v633_v56, %v854_v61  ;;  %vm763_vm8 = vcmp.ge.f32.partialorder %v1182_v63, 0.0  ;;  %v827_v2 = vmul.f32 0.2, %v1182_v63  ;;  %vm795_vm9 = vcmp.ge.f32.partialorder %v1214_v0, 0.0  ;;  %v518_v3 = vpop.f32.mrb[5].mxu0 }
 0x103   : > { %v646_v4 = vpop.f32.mrb[5].mxu1  ;;  %982 = vst [vmem:[%s1403_s7 + $0x108] sm:$0xff] %v918_v1  ;;  %v859_v5 = vmul.f32 0.2, %v1214_v0  ;;  %vm761_vm10 = vcmp.ge.f32.partialorder %v518_v3, 0.0  ;;  %v1183_v9 = vpop.f32.mrb[6].mxu0 }
 0x104   : > { %v825_v6 = vmul.f32 0.2, %v518_v3  ;;  %vm793_vm11 = vcmp.ge.f32.partialorder %v646_v4, 0.0  ;;  %v891_v7 = vsel %vm763_vm8, %v1182_v63, %v827_v2  ;;  %v857_v8 = vmul.f32 0.2, %v646_v4  ;;  %v1215_v10 = vpop.f32.mrb[6].mxu1 }
 0x105   : > { %955 = vst [vmem:[%s1403_s7 + $0x30] sm:$0xff] %v891_v7  ;;  %v923_v11 = vsel %vm795_vm9, %v1214_v0, %v859_v5  ;;  %vm764_vm12 = vcmp.ge.f32.partialorder %v1183_v9, 0.0  ;;  %v828_v13 = vmul.f32 0.2, %v1183_v9  ;;  %v521_v14 = vpop.f32.mrb[7].mxu0  ;;  %v649_v15 = vpop.f32.mrb[7].mxu1 }
 0x106   : > { %v889_v12 = vsel %vm761_vm10, %v518_v3, %v825_v6  ;;  %987 = vst [vmem:[%s1403_s7 + $0x130] sm:$0xff] %v923_v11  ;;  %v921_v16 = vsel %vm793_vm11, %v646_v4, %v857_v8  ;;  %vm796_vm13 = vcmp.ge.f32.partialorder %v1215_v10, 0.0  ;;  %v860_v17 = vmul.f32 0.2, %v1215_v10 }
 0x107   : > { %953 = vst [vmem:[%s1403_s7 + $0x20] sm:$0xff] %v889_v12  ;;  %vm762_vm14 = vcmp.ge.f32.partialorder %v521_v14, 0.0  ;;  %985 = vst [vmem:[%s1403_s7 + $0x120] sm:$0xff] %v921_v16  ;;  %v892_v18 = vsel %vm764_vm12, %v1183_v9, %v828_v13  ;;  %v826_v19 = vmul.f32 0.2, %v521_v14  ;;  %vm794_vm15 = vcmp.ge.f32.partialorder %v649_v15, 0.0 }
 0x108   : > { %v858_v20 = vmul.f32 0.2, %v649_v15  ;;  %956 = vst [vmem:[%s1403_s7 + $0x38] sm:$0xff] %v892_v18  ;;  %v924_v21 = vsel %vm796_vm13, %v1215_v10, %v860_v17 }
 0x109   : > { %988 = vst [vmem:[%s1403_s7 + $0x138] sm:$0xff] %v924_v21  ;;  %v890_v22 = vsel %vm762_vm14, %v521_v14, %v826_v19  ;;  %v1186_v24 = vpop.f32.mrb[8].mxu0  ;;  %v1218_v25 = vpop.f32.mrb[8].mxu1 }
 0x10a   : > { %v922_v23 = vsel %vm794_vm15, %v649_v15, %v858_v20  ;;  %954 = vst [vmem:[%s1403_s7 + $0x28] sm:$0xff] %v890_v22  ;;  %vm767_vm0 = vcmp.ge.f32.partialorder %v1186_v24, 0.0  ;;  %v831_v26 = vmul.f32 0.2, %v1186_v24  ;;  %vm799_vm1 = vcmp.ge.f32.partialorder %v1218_v25, 0.0  ;;  %v534_v28 = vpop.f32.mrb[9].mxu0 }
 0x10b   : > { %986 = vst [vmem:[%s1403_s7 + $0x128] sm:$0xff] %v922_v23  ;;  %v863_v27 = vmul.f32 0.2, %v1218_v25  ;;  %v662_v29 = vpop.f32.mrb[9].mxu1  ;;  %vm765_vm2 = vcmp.ge.f32.partialorder %v534_v28, 0.0  ;;  %v1187_v33 = vpop.f32.mrb[10].mxu0 }
 0x10c   : > { %v895_v30 = vsel %vm767_vm0, %v1186_v24, %v831_v26  ;;  %v829_v32 = vmul.f32 0.2, %v534_v28  ;;  %v1219_v34 = vpop.f32.mrb[10].mxu1  ;;  %vm797_vm3 = vcmp.ge.f32.partialorder %v662_v29, 0.0  ;;  %v861_v35 = vmul.f32 0.2, %v662_v29 }
 0x10d   : > { %v927_v31 = vsel %vm799_vm1, %v1218_v25, %v863_v27  ;;  %959 = vst [vmem:[%s1403_s7 + $0x50] sm:$0xff] %v895_v30  ;;  %vm768_vm4 = vcmp.ge.f32.partialorder %v1187_v33, 0.0  ;;  %v832_v36 = vmul.f32 0.2, %v1187_v33  ;;  %vm800_vm5 = vcmp.ge.f32.partialorder %v1219_v34, 0.0  ;;  %v537_v39 = vpop.f32.mrb[11].mxu0 }
 0x10e   : > { %991 = vst [vmem:[%s1403_s7 + $0x150] sm:$0xff] %v927_v31  ;;  %v893_v37 = vsel %vm765_vm2, %v534_v28, %v829_v32  ;;  %v864_v38 = vmul.f32 0.2, %v1219_v34  ;;  %v665_v40 = vpop.f32.mrb[11].mxu1  ;;  %v925_v41 = vsel %vm797_vm3, %v662_v29, %v861_v35  ;;  %vm766_vm6 = vcmp.ge.f32.partialorder %v537_v39, 0.0 }
 0x10f   : > { %957 = vst [vmem:[%s1403_s7 + $0x40] sm:$0xff] %v893_v37  ;;  %v896_v42 = vsel %vm768_vm4, %v1187_v33, %v832_v36  ;;  %v830_v43 = vmul.f32 0.2, %v537_v39  ;;  %989 = vst [vmem:[%s1403_s7 + $0x140] sm:$0xff] %v925_v41  ;;  %vm798_vm7 = vcmp.ge.f32.partialorder %v665_v40, 0.0 }
 0x110   : > { %960 = vst [vmem:[%s1403_s7 + $0x58] sm:$0xff] %v896_v42  ;;  %v928_v44 = vsel %vm800_vm5, %v1219_v34, %v864_v38  ;;  %v862_v45 = vmul.f32 0.2, %v665_v40 }
 0x111   : > { %992 = vst [vmem:[%s1403_s7 + $0x158] sm:$0xff] %v928_v44  ;;  %v894_v46 = vsel %vm766_vm6, %v537_v39, %v830_v43  ;;  %v1190_v47 = vpop.f32.mrb[12].mxu0  ;;  %v1222_v48 = vpop.f32.mrb[12].mxu1 }
 0x112   : > { %958 = vst [vmem:[%s1403_s7 + $0x48] sm:$0xff] %v894_v46  ;;  %v926_v49 = vsel %vm798_vm7, %v665_v40, %v862_v45  ;;  %vm771_vm8 = vcmp.ge.f32.partialorder %v1190_v47, 0.0  ;;  %v835_v50 = vmul.f32 0.2, %v1190_v47  ;;  %vm803_vm9 = vcmp.ge.f32.partialorder %v1222_v48, 0.0  ;;  %v550_v51 = vpop.f32.mrb[13].mxu0 }
 0x113   : > { %v678_v52 = vpop.f32.mrb[13].mxu1  ;;  %990 = vst [vmem:[%s1403_s7 + $0x148] sm:$0xff] %v926_v49  ;;  %v867_v53 = vmul.f32 0.2, %v1222_v48  ;;  %vm769_vm10 = vcmp.ge.f32.partialorder %v550_v51, 0.0  ;;  %v1191_v57 = vpop.f32.mrb[14].mxu0 }
 0x114   : > { %v833_v54 = vmul.f32 0.2, %v550_v51  ;;  %vm801_vm11 = vcmp.ge.f32.partialorder %v678_v52, 0.0  ;;  %v899_v55 = vsel %vm771_vm8, %v1190_v47, %v835_v50  ;;  %v865_v56 = vmul.f32 0.2, %v678_v52  ;;  %v1223_v58 = vpop.f32.mrb[14].mxu1 }
 0x115   : > { %963 = vst [vmem:[%s1403_s7 + $0x70] sm:$0xff] %v899_v55  ;;  %v931_v59 = vsel %vm803_vm9, %v1222_v48, %v867_v53  ;;  %vm772_vm12 = vcmp.ge.f32.partialorder %v1191_v57, 0.0  ;;  %v836_v61 = vmul.f32 0.2, %v1191_v57  ;;  %v553_v62 = vpop.f32.mrb[15].mxu0  ;;  %v681_v63 = vpop.f32.mrb[15].mxu1 }
 0x116   : > { %v897_v60 = vsel %vm769_vm10, %v550_v51, %v833_v54  ;;  %995 = vst [vmem:[%s1403_s7 + $0x170] sm:$0xff] %v931_v59  ;;  %v929_v0 = vsel %vm801_vm11, %v678_v52, %v865_v56  ;;  %vm804_vm13 = vcmp.ge.f32.partialorder %v1223_v58, 0.0  ;;  %v868_v1 = vmul.f32 0.2, %v1223_v58 }
 0x117   : > { %961 = vst [vmem:[%s1403_s7 + $0x60] sm:$0xff] %v897_v60  ;;  %vm770_vm14 = vcmp.ge.f32.partialorder %v553_v62, 0.0  ;;  %993 = vst [vmem:[%s1403_s7 + $0x160] sm:$0xff] %v929_v0  ;;  %v900_v2 = vsel %vm772_vm12, %v1191_v57, %v836_v61  ;;  %v834_v3 = vmul.f32 0.2, %v553_v62  ;;  %vm802_vm15 = vcmp.ge.f32.partialorder %v681_v63, 0.0 }
 0x118   : > { %v866_v4 = vmul.f32 0.2, %v681_v63  ;;  %964 = vst [vmem:[%s1403_s7 + $0x78] sm:$0xff] %v900_v2  ;;  %v932_v5 = vsel %vm804_vm13, %v1223_v58, %v868_v1 }
 0x119   : > { %996 = vst [vmem:[%s1403_s7 + $0x178] sm:$0xff] %v932_v5  ;;  %v898_v6 = vsel %vm770_vm14, %v553_v62, %v834_v3  ;;  %v1194_v8 = vpop.f32.mrb[16].mxu0  ;;  %v1226_v9 = vpop.f32.mrb[16].mxu1 }
 0x11a   : > { %v930_v7 = vsel %vm802_vm15, %v681_v63, %v866_v4  ;;  %962 = vst [vmem:[%s1403_s7 + $0x68] sm:$0xff] %v898_v6  ;;  %vm775_vm0 = vcmp.ge.f32.partialorder %v1194_v8, 0.0  ;;  %v839_v10 = vmul.f32 0.2, %v1194_v8  ;;  %vm807_vm1 = vcmp.ge.f32.partialorder %v1226_v9, 0.0  ;;  %v566_v12 = vpop.f32.mrb[17].mxu0 }
 0x11b   : > { %994 = vst [vmem:[%s1403_s7 + $0x168] sm:$0xff] %v930_v7  ;;  %v871_v11 = vmul.f32 0.2, %v1226_v9  ;;  %v694_v13 = vpop.f32.mrb[17].mxu1  ;;  %vm773_vm2 = vcmp.ge.f32.partialorder %v566_v12, 0.0  ;;  %v1195_v17 = vpop.f32.mrb[18].mxu0 }
 0x11c   : > { %v903_v14 = vsel %vm775_vm0, %v1194_v8, %v839_v10  ;;  %v837_v16 = vmul.f32 0.2, %v566_v12  ;;  %v1227_v18 = vpop.f32.mrb[18].mxu1  ;;  %vm805_vm3 = vcmp.ge.f32.partialorder %v694_v13, 0.0  ;;  %v869_v19 = vmul.f32 0.2, %v694_v13 }
 0x11d   : > { %v935_v15 = vsel %vm807_vm1, %v1226_v9, %v871_v11  ;;  %967 = vst [vmem:[%s1403_s7 + $0x90] sm:$0xff] %v903_v14  ;;  %vm776_vm4 = vcmp.ge.f32.partialorder %v1195_v17, 0.0  ;;  %v840_v20 = vmul.f32 0.2, %v1195_v17  ;;  %vm808_vm5 = vcmp.ge.f32.partialorder %v1227_v18, 0.0  ;;  %v569_v23 = vpop.f32.mrb[19].mxu0 }
 0x11e   : > { %999 = vst [vmem:[%s1403_s7 + $0x190] sm:$0xff] %v935_v15  ;;  %v901_v21 = vsel %vm773_vm2, %v566_v12, %v837_v16  ;;  %v872_v22 = vmul.f32 0.2, %v1227_v18  ;;  %v697_v24 = vpop.f32.mrb[19].mxu1  ;;  %v933_v25 = vsel %vm805_vm3, %v694_v13, %v869_v19  ;;  %vm774_vm6 = vcmp.ge.f32.partialorder %v569_v23, 0.0 }
 0x11f   : > { %965 = vst [vmem:[%s1403_s7 + $0x80] sm:$0xff] %v901_v21  ;;  %v904_v26 = vsel %vm776_vm4, %v1195_v17, %v840_v20  ;;  %v838_v27 = vmul.f32 0.2, %v569_v23  ;;  %997 = vst [vmem:[%s1403_s7 + $0x180] sm:$0xff] %v933_v25  ;;  %vm806_vm7 = vcmp.ge.f32.partialorder %v697_v24, 0.0 }
 0x120   : > { %968 = vst [vmem:[%s1403_s7 + $0x98] sm:$0xff] %v904_v26  ;;  %v936_v28 = vsel %vm808_vm5, %v1227_v18, %v872_v22  ;;  %v870_v29 = vmul.f32 0.2, %v697_v24 }
 0x121   : > { %1000 = vst [vmem:[%s1403_s7 + $0x198] sm:$0xff] %v936_v28  ;;  %v902_v30 = vsel %vm774_vm6, %v569_v23, %v838_v27  ;;  %v1198_v31 = vpop.f32.mrb[20].mxu0  ;;  %v1230_v32 = vpop.f32.mrb[20].mxu1 }
 0x122   : > { %966 = vst [vmem:[%s1403_s7 + $0x88] sm:$0xff] %v902_v30  ;;  %v934_v33 = vsel %vm806_vm7, %v697_v24, %v870_v29  ;;  %vm779_vm8 = vcmp.ge.f32.partialorder %v1198_v31, 0.0  ;;  %v843_v34 = vmul.f32 0.2, %v1198_v31  ;;  %vm811_vm9 = vcmp.ge.f32.partialorder %v1230_v32, 0.0  ;;  %v582_v35 = vpop.f32.mrb[21].mxu0 }
 0x123   : > { %v710_v36 = vpop.f32.mrb[21].mxu1  ;;  %998 = vst [vmem:[%s1403_s7 + $0x188] sm:$0xff] %v934_v33  ;;  %v875_v37 = vmul.f32 0.2, %v1230_v32  ;;  %vm777_vm10 = vcmp.ge.f32.partialorder %v582_v35, 0.0  ;;  %v1199_v41 = vpop.f32.mrb[22].mxu0 }
 0x124   : > { %v841_v38 = vmul.f32 0.2, %v582_v35  ;;  %vm809_vm11 = vcmp.ge.f32.partialorder %v710_v36, 0.0  ;;  %v907_v39 = vsel %vm779_vm8, %v1198_v31, %v843_v34  ;;  %v873_v40 = vmul.f32 0.2, %v710_v36  ;;  %v1231_v42 = vpop.f32.mrb[22].mxu1 }
 0x125   : > { %971 = vst [vmem:[%s1403_s7 + $0xb0] sm:$0xff] %v907_v39  ;;  %v939_v43 = vsel %vm811_vm9, %v1230_v32, %v875_v37  ;;  %vm780_vm12 = vcmp.ge.f32.partialorder %v1199_v41, 0.0  ;;  %v844_v45 = vmul.f32 0.2, %v1199_v41  ;;  %v585_v46 = vpop.f32.mrb[23].mxu0  ;;  %v713_v47 = vpop.f32.mrb[23].mxu1 }
 0x126   : > { %v905_v44 = vsel %vm777_vm10, %v582_v35, %v841_v38  ;;  %1003 = vst [vmem:[%s1403_s7 + $0x1b0] sm:$0xff] %v939_v43  ;;  %v937_v48 = vsel %vm809_vm11, %v710_v36, %v873_v40  ;;  %vm812_vm13 = vcmp.ge.f32.partialorder %v1231_v42, 0.0  ;;  %v876_v49 = vmul.f32 0.2, %v1231_v42 }
 0x127   : > { %969 = vst [vmem:[%s1403_s7 + $0xa0] sm:$0xff] %v905_v44  ;;  %vm778_vm14 = vcmp.ge.f32.partialorder %v585_v46, 0.0  ;;  %1001 = vst [vmem:[%s1403_s7 + $0x1a0] sm:$0xff] %v937_v48  ;;  %v908_v50 = vsel %vm780_vm12, %v1199_v41, %v844_v45  ;;  %v842_v51 = vmul.f32 0.2, %v585_v46  ;;  %vm810_vm15 = vcmp.ge.f32.partialorder %v713_v47, 0.0 }
 0x128   : > { %v874_v52 = vmul.f32 0.2, %v713_v47  ;;  %972 = vst [vmem:[%s1403_s7 + $0xb8] sm:$0xff] %v908_v50  ;;  %v940_v53 = vsel %vm812_vm13, %v1231_v42, %v876_v49 }
 0x129   : > { %1004 = vst [vmem:[%s1403_s7 + $0x1b8] sm:$0xff] %v940_v53  ;;  %v906_v54 = vsel %vm778_vm14, %v585_v46, %v842_v51  ;;  %v1202_v56 = vpop.f32.mrb[24].mxu0  ;;  %v1234_v57 = vpop.f32.mrb[24].mxu1 }
 0x12a   : > { %v938_v55 = vsel %vm810_vm15, %v713_v47, %v874_v52  ;;  %970 = vst [vmem:[%s1403_s7 + $0xa8] sm:$0xff] %v906_v54  ;;  %vm783_vm0 = vcmp.ge.f32.partialorder %v1202_v56, 0.0  ;;  %v847_v58 = vmul.f32 0.2, %v1202_v56  ;;  %vm815_vm1 = vcmp.ge.f32.partialorder %v1234_v57, 0.0  ;;  %v598_v60 = vpop.f32.mrb[25].mxu0 }
 0x12b   : > { %1002 = vst [vmem:[%s1403_s7 + $0x1a8] sm:$0xff] %v938_v55  ;;  %v879_v59 = vmul.f32 0.2, %v1234_v57  ;;  %v726_v61 = vpop.f32.mrb[25].mxu1  ;;  %vm781_vm2 = vcmp.ge.f32.partialorder %v598_v60, 0.0  ;;  %v1203_v1 = vpop.f32.mrb[26].mxu0 }
 0x12c   : > { %v911_v62 = vsel %vm783_vm0, %v1202_v56, %v847_v58  ;;  %v845_v0 = vmul.f32 0.2, %v598_v60  ;;  %v1235_v2 = vpop.f32.mrb[26].mxu1  ;;  %vm813_vm3 = vcmp.ge.f32.partialorder %v726_v61, 0.0  ;;  %v877_v3 = vmul.f32 0.2, %v726_v61 }
 0x12d   : > { %v943_v63 = vsel %vm815_vm1, %v1234_v57, %v879_v59  ;;  %975 = vst [vmem:[%s1403_s7 + $0xd0] sm:$0xff] %v911_v62  ;;  %vm784_vm4 = vcmp.ge.f32.partialorder %v1203_v1, 0.0  ;;  %v848_v4 = vmul.f32 0.2, %v1203_v1  ;;  %vm816_vm5 = vcmp.ge.f32.partialorder %v1235_v2, 0.0  ;;  %v601_v7 = vpop.f32.mrb[27].mxu0 }
 0x12e   : > { %1007 = vst [vmem:[%s1403_s7 + $0x1d0] sm:$0xff] %v943_v63  ;;  %v909_v5 = vsel %vm781_vm2, %v598_v60, %v845_v0  ;;  %v880_v6 = vmul.f32 0.2, %v1235_v2  ;;  %v729_v8 = vpop.f32.mrb[27].mxu1  ;;  %v941_v9 = vsel %vm813_vm3, %v726_v61, %v877_v3  ;;  %vm782_vm6 = vcmp.ge.f32.partialorder %v601_v7, 0.0 }
 0x12f   : > { %973 = vst [vmem:[%s1403_s7 + $0xc0] sm:$0xff] %v909_v5  ;;  %v912_v10 = vsel %vm784_vm4, %v1203_v1, %v848_v4  ;;  %v846_v11 = vmul.f32 0.2, %v601_v7  ;;  %1005 = vst [vmem:[%s1403_s7 + $0x1c0] sm:$0xff] %v941_v9  ;;  %vm814_vm7 = vcmp.ge.f32.partialorder %v729_v8, 0.0 }
 0x130   : > { %976 = vst [vmem:[%s1403_s7 + $0xd8] sm:$0xff] %v912_v10  ;;  %v944_v12 = vsel %vm816_vm5, %v1235_v2, %v880_v6  ;;  %v878_v13 = vmul.f32 0.2, %v729_v8 }
 0x131   : > { %1008 = vst [vmem:[%s1403_s7 + $0x1d8] sm:$0xff] %v944_v12  ;;  %v910_v14 = vsel %vm782_vm6, %v601_v7, %v846_v11  ;;  %v1206_v15 = vpop.f32.mrb[28].mxu0  ;;  %v1238_v16 = vpop.f32.mrb[28].mxu1 }
 0x132   : > { %974 = vst [vmem:[%s1403_s7 + $0xc8] sm:$0xff] %v910_v14  ;;  %v942_v17 = vsel %vm814_vm7, %v729_v8, %v878_v13  ;;  %vm787_vm8 = vcmp.ge.f32.partialorder %v1206_v15, 0.0  ;;  %v851_v18 = vmul.f32 0.2, %v1206_v15  ;;  %vm819_vm9 = vcmp.ge.f32.partialorder %v1238_v16, 0.0  ;;  %v614_v19 = vpop.f32.mrb[29].mxu0 }
 0x133   : > { %v742_v20 = vpop.f32.mrb[29].mxu1  ;;  %1006 = vst [vmem:[%s1403_s7 + $0x1c8] sm:$0xff] %v942_v17  ;;  %v883_v21 = vmul.f32 0.2, %v1238_v16  ;;  %vm785_vm10 = vcmp.ge.f32.partialorder %v614_v19, 0.0  ;;  %v1207_v25 = vpop.f32.mrb[30].mxu0 }
 0x134   : > { %v849_v22 = vmul.f32 0.2, %v614_v19  ;;  %vm817_vm11 = vcmp.ge.f32.partialorder %v742_v20, 0.0  ;;  %v915_v23 = vsel %vm787_vm8, %v1206_v15, %v851_v18  ;;  %v881_v24 = vmul.f32 0.2, %v742_v20  ;;  %v1239_v26 = vpop.f32.mrb[30].mxu1 }
 0x135   : > { %979 = vst [vmem:[%s1403_s7 + $0xf0] sm:$0xff] %v915_v23  ;;  %v947_v27 = vsel %vm819_vm9, %v1238_v16, %v883_v21  ;;  %vm788_vm12 = vcmp.ge.f32.partialorder %v1207_v25, 0.0  ;;  %v852_v29 = vmul.f32 0.2, %v1207_v25  ;;  %v617_v30 = vpop.f32.mrb[31].mxu0  ;;  %v745_v31 = vpop.f32.mrb[31].mxu1 }
 0x136   : > { %v913_v28 = vsel %vm785_vm10, %v614_v19, %v849_v22  ;;  %1011 = vst [vmem:[%s1403_s7 + $0x1f0] sm:$0xff] %v947_v27  ;;  %v945_v32 = vsel %vm817_vm11, %v742_v20, %v881_v24  ;;  %vm820_vm13 = vcmp.ge.f32.partialorder %v1239_v26, 0.0  ;;  %v884_v33 = vmul.f32 0.2, %v1239_v26 }
 0x137   : > { %977 = vst [vmem:[%s1403_s7 + $0xe0] sm:$0xff] %v913_v28  ;;  %vm786_vm14 = vcmp.ge.f32.partialorder %v617_v30, 0.0  ;;  %1009 = vst [vmem:[%s1403_s7 + $0x1e0] sm:$0xff] %v945_v32  ;;  %v916_v34 = vsel %vm788_vm12, %v1207_v25, %v852_v29  ;;  %v850_v35 = vmul.f32 0.2, %v617_v30  ;;  %vm818_vm15 = vcmp.ge.f32.partialorder %v745_v31, 0.0 }
 0x138   : > { %v882_v36 = vmul.f32 0.2, %v745_v31  ;;  %980 = vst [vmem:[%s1403_s7 + $0xf8] sm:$0xff] %v916_v34  ;;  %v948_v37 = vsel %vm820_vm13, %v1239_v26, %v884_v33 }
 0x139   : > { %1012 = vst [vmem:[%s1403_s7 + $0x1f8] sm:$0xff] %v948_v37  ;;  %v914_v38 = vsel %vm786_vm14, %v617_v30, %v850_v35 }
 0x13a   : > { %v946_v39 = vsel %vm818_vm15, %v745_v31, %v882_v36  ;;  %978 = vst [vmem:[%s1403_s7 + $0xe8] sm:$0xff] %v914_v38 }
 0x13b   : > { %1010 = vst [vmem:[%s1403_s7 + $0x1e8] sm:$0xff] %v946_v39 }
 0x13c PF: > { %s12_s9 = sadd.s32 1, %s1310_s9  }
 0x13d   : > { %p9_p4 = scmp.ge.s32.totalorder %s12_s9, 6  }
 0x13f   :  { %11 = sbr.rel (!%p9_p4) target bundleno = 1 (0x1), region = 58 }

// kernel: dcgan_discriminator_forward.9
= control target key start
LH: loop header
LB: loop body
LE: loop exit
PB: predicated region body
PF: predicated region fallthrough
CT: control target
= control target key end

     0   :  { %v1309_v0 = vmov 0   ;;  %s1997_s1 = inlined_call_operand.vmem [shape: bf16[256,128], index: 1, kind: input, shape index: {}]   ;;  %s1998_s0 = inlined_call_operand.vmem [shape: bf16[512,256], index: 0, kind: input, shape index: {}]   ;;  %s1999_s2 = inlined_call_operand.vmem [shape: f32[512,128], index: 2, kind: output, shape index: {0}]   ;;  %s2000_s3 = inlined_call_operand.vmem [shape: f32[1,8,128], index: 3, kind: output, shape index: {1}]   ;;  %s2001_s4 = inlined_call_operand.vmem [shape: f32[1,8,128], index: 4, kind: output, shape index: {2}]  }
   0x1   :  { %527 = vmatprep.subr.bf16.mxu0 %v1309_v0  ;;  %v1197_v1 = vld [vmem:[%s1997_s1] sm:$0xff]   ;;  %1164 = vmatprep.subr.bf16.mxu1 %v1309_v0  ;;  %v1198_v2 = vld [vmem:[%s1997_s1 + $0x8] sm:$0xff]   ;;  %v1199_v3 = vld [vmem:[%s1997_s1 + $0x10] sm:$0xff]  }
   0x2   :  { %528 = vmatpush1.bf16.msra.mxu0 %v1197_v1  ;;  %1180 = vmatpush1.bf16.msra.mxu1 %v1197_v1  ;;  %v1200_v4 = vld [vmem:[%s1997_s1 + $0x18] sm:$0xff]   ;;  %v1201_v5 = vld [vmem:[%s1997_s1 + $0x20] sm:$0xff]   ;;  %v1202_v7 = vld [vmem:[%s1997_s1 + $0x28] sm:$0xff]  }
   0x3   :  { %529 = vmatprep.subr.bf16.mxu0 %v1309_v0  ;;  %1165 = vmatprep.subr.bf16.mxu1 %v1309_v0  ;;  %v1215_v6 = vld [vmem:[%s1998_s0 + $0x4] ss:$8 sps:$4 sm:$0xff]   ;;  %v1203_v8 = vld [vmem:[%s1997_s1 + $0x30] sm:$0xff]   ;;  %v1204_v9 = vld [vmem:[%s1997_s1 + $0x38] sm:$0xff]  }
   0x4   :  { %559 = vmatprep.mubr.bf16.mxu0 %v1215_v6  ;;  %v1239_v10 = vld [vmem:[%s1998_s0 + $0x104] ss:$8 sps:$4 sm:$0xff]   ;;  %v1207_v13 = vld [vmem:[%s1997_s1 + $0x50] sm:$0xff]   ;;  %v1208_v14 = vld [vmem:[%s1997_s1 + $0x58] sm:$0xff]  }
   0x5   :  { %687 = vmatprep.mubr.bf16.mxu1 %v1239_v10  ;;  %v1205_v11 = vld [vmem:[%s1997_s1 + $0x40] sm:$0xff]   ;;  %v1206_v12 = vld [vmem:[%s1997_s1 + $0x48] sm:$0xff]   ;;  %v1211_v17 = vld [vmem:[%s1997_s1 + $0x70] sm:$0xff]  }
   0x6   :  { %530 = vmatpush1.bf16.msra.mxu0 %v1198_v2  ;;  %1181 = vmatpush1.bf16.msra.mxu1 %v1198_v2  ;;  %v1209_v15 = vld [vmem:[%s1997_s1 + $0x60] sm:$0xff]   ;;  %v1210_v16 = vld [vmem:[%s1997_s1 + $0x68] sm:$0xff]   ;;  %v1212_v18 = vld [vmem:[%s1997_s1 + $0x78] sm:$0xff]  }
   0x7   :  { %531 = vmatprep.subr.bf16.mxu0 %v1309_v0  ;;  %1166 = vmatprep.subr.bf16.mxu1 %v1309_v0  ;;  %v1213_v19 = vld [vmem:[%s1998_s0] ss:$8 sps:$4 sm:$0xff]   ;;  %v1216_v21 = vld [vmem:[%s1998_s0 + $0x14] ss:$8 sps:$4 sm:$0xff]   ;;  %v1218_v23 = vld [vmem:[%s1998_s0 + $0x10] ss:$8 sps:$4 sm:$0xff]  }
   0x8   :  { %v1237_v20 = vld [vmem:[%s1998_s0 + $0x100] ss:$8 sps:$4 sm:$0xff]   ;;  %v1243_v22 = vld [vmem:[%s1998_s0 + $0x114] ss:$8 sps:$4 sm:$0xff]   ;;  %v1245_v24 = vld [vmem:[%s1998_s0 + $0x110] ss:$8 sps:$4 sm:$0xff]  }
   0x9   :  { %v1219_v25 = vld [vmem:[%s1998_s0 + $0x24] ss:$8 sps:$4 sm:$0xff]   ;;  %v1221_v27 = vld [vmem:[%s1998_s0 + $0x20] ss:$8 sps:$4 sm:$0xff]   ;;  %v1222_v29 = vld [vmem:[%s1998_s0 + $0x34] ss:$8 sps:$4 sm:$0xff]  }
   0xa   :  { %532 = vmatpush1.bf16.msra.mxu0 %v1199_v3  ;;  %1182 = vmatpush1.bf16.msra.mxu1 %v1199_v3  ;;  %v1249_v26 = vld [vmem:[%s1998_s0 + $0x124] ss:$8 sps:$4 sm:$0xff]   ;;  %v1251_v28 = vld [vmem:[%s1998_s0 + $0x120] ss:$8 sps:$4 sm:$0xff]   ;;  %v1255_v30 = vld [vmem:[%s1998_s0 + $0x134] ss:$8 sps:$4 sm:$0xff]  }
   0xb   :  { %533 = vmatprep.subr.bf16.mxu0 %v1309_v0  ;;  %1167 = vmatprep.subr.bf16.mxu1 %v1309_v0  ;;  %v1224_v31 = vld [vmem:[%s1998_s0 + $0x30] ss:$8 sps:$4 sm:$0xff]   ;;  %v1225_v33 = vld [vmem:[%s1998_s0 + $0x44] ss:$8 sps:$4 sm:$0xff]   ;;  %v1227_v35 = vld [vmem:[%s1998_s0 + $0x40] ss:$8 sps:$4 sm:$0xff]  }
   0xc   :  { %v1257_v32 = vld [vmem:[%s1998_s0 + $0x130] ss:$8 sps:$4 sm:$0xff]   ;;  %v1261_v34 = vld [vmem:[%s1998_s0 + $0x144] ss:$8 sps:$4 sm:$0xff]   ;;  %v1263_v36 = vld [vmem:[%s1998_s0 + $0x140] ss:$8 sps:$4 sm:$0xff]  }
   0xd   :  { %v1228_v37 = vld [vmem:[%s1998_s0 + $0x54] ss:$8 sps:$4 sm:$0xff]   ;;  %v1230_v39 = vld [vmem:[%s1998_s0 + $0x50] ss:$8 sps:$4 sm:$0xff]   ;;  %v1231_v41 = vld [vmem:[%s1998_s0 + $0x64] ss:$8 sps:$4 sm:$0xff]  }
   0xe   :  { %534 = vmatpush1.bf16.msra.mxu0 %v1200_v4  ;;  %1183 = vmatpush1.bf16.msra.mxu1 %v1200_v4  ;;  %v1267_v38 = vld [vmem:[%s1998_s0 + $0x154] ss:$8 sps:$4 sm:$0xff]   ;;  %v1269_v40 = vld [vmem:[%s1998_s0 + $0x150] ss:$8 sps:$4 sm:$0xff]   ;;  %v1273_v42 = vld [vmem:[%s1998_s0 + $0x164] ss:$8 sps:$4 sm:$0xff]  }
   0xf   :  { %535 = vmatprep.subr.bf16.mxu0 %v1309_v0  ;;  %1168 = vmatprep.subr.bf16.mxu1 %v1309_v0  ;;  %v1233_v43 = vld [vmem:[%s1998_s0 + $0x60] ss:$8 sps:$4 sm:$0xff]   ;;  %v1234_v45 = vld [vmem:[%s1998_s0 + $0x74] ss:$8 sps:$4 sm:$0xff]   ;;  %v1236_v47 = vld [vmem:[%s1998_s0 + $0x70] ss:$8 sps:$4 sm:$0xff]  }
  0x10   :  { %v1275_v44 = vld [vmem:[%s1998_s0 + $0x160] ss:$8 sps:$4 sm:$0xff]   ;;  %v1279_v46 = vld [vmem:[%s1998_s0 + $0x174] ss:$8 sps:$4 sm:$0xff]   ;;  %v1281_v48 = vld [vmem:[%s1998_s0 + $0x170] ss:$8 sps:$4 sm:$0xff]  }
  0x11   :  { %v1240_v49 = vld [vmem:[%s1998_s0 + $0x84] ss:$8 sps:$4 sm:$0xff]   ;;  %v1242_v51 = vld [vmem:[%s1998_s0 + $0x80] ss:$8 sps:$4 sm:$0xff]   ;;  %v1246_v53 = vld [vmem:[%s1998_s0 + $0x94] ss:$8 sps:$4 sm:$0xff]  }
  0x12   :  { %536 = vmatpush1.bf16.msra.mxu0 %v1201_v5  ;;  %1184 = vmatpush1.bf16.msra.mxu1 %v1201_v5  ;;  %v1285_v50 = vld [vmem:[%s1998_s0 + $0x184] ss:$8 sps:$4 sm:$0xff]   ;;  %v1287_v52 = vld [vmem:[%s1998_s0 + $0x180] ss:$8 sps:$4 sm:$0xff]   ;;  %v1288_v54 = vld [vmem:[%s1998_s0 + $0x194] ss:$8 sps:$4 sm:$0xff]  }
  0x13   :  { %537 = vmatprep.subr.bf16.mxu0 %v1309_v0  ;;  %1169 = vmatprep.subr.bf16.mxu1 %v1309_v0  ;;  %v1248_v55 = vld [vmem:[%s1998_s0 + $0x90] ss:$8 sps:$4 sm:$0xff]   ;;  %v1252_v57 = vld [vmem:[%s1998_s0 + $0xa4] ss:$8 sps:$4 sm:$0xff]   ;;  %v1254_v59 = vld [vmem:[%s1998_s0 + $0xa0] ss:$8 sps:$4 sm:$0xff]  }
  0x14   :  { %v1290_v56 = vld [vmem:[%s1998_s0 + $0x190] ss:$8 sps:$4 sm:$0xff]   ;;  %v1291_v58 = vld [vmem:[%s1998_s0 + $0x1a4] ss:$8 sps:$4 sm:$0xff]   ;;  %v1293_v60 = vld [vmem:[%s1998_s0 + $0x1a0] ss:$8 sps:$4 sm:$0xff]  }
  0x15   :  { %v1258_v61 = vld [vmem:[%s1998_s0 + $0xb4] ss:$8 sps:$4 sm:$0xff]   ;;  %v1260_v63 = vld [vmem:[%s1998_s0 + $0xb0] ss:$8 sps:$4 sm:$0xff]   ;;  %v1264_v1 = vld [vmem:[%s1998_s0 + $0xc4] ss:$8 sps:$4 sm:$0xff]  }
  0x16   :  { %538 = vmatpush1.bf16.msra.mxu0 %v1202_v7  ;;  %1185 = vmatpush1.bf16.msra.mxu1 %v1202_v7  ;;  %v1294_v62 = vld [vmem:[%s1998_s0 + $0x1b4] ss:$8 sps:$4 sm:$0xff]   ;;  %v1297_v2 = vld [vmem:[%s1998_s0 + $0x1c4] ss:$8 sps:$4 sm:$0xff]   ;;  %v1266_v3 = vld [vmem:[%s1998_s0 + $0xc0] ss:$8 sps:$4 sm:$0xff]  }
  0x17   :  { %539 = vmatprep.subr.bf16.mxu0 %v1309_v0  ;;  %1170 = vmatprep.subr.bf16.mxu1 %v1309_v0  ;;  %v1299_v4 = vld [vmem:[%s1998_s0 + $0x1c0] ss:$8 sps:$4 sm:$0xff]   ;;  %v1270_v5 = vld [vmem:[%s1998_s0 + $0xd4] ss:$8 sps:$4 sm:$0xff]   ;;  %v1272_v7 = vld [vmem:[%s1998_s0 + $0xd0] ss:$8 sps:$4 sm:$0xff]  }
  0x18   :  { %v1300_v6 = vld [vmem:[%s1998_s0 + $0x1d4] ss:$8 sps:$4 sm:$0xff]   ;;  %v1303_v10 = vld [vmem:[%s1998_s0 + $0x1e4] ss:$8 sps:$4 sm:$0xff]  }
  0x1a   :  { %540 = vmatpush1.bf16.msra.mxu0 %v1203_v8  ;;  %1186 = vmatpush1.bf16.msra.mxu1 %v1203_v8  ;;  %v1302_v8 = vld [vmem:[%s1998_s0 + $0x1d0] ss:$8 sps:$4 sm:$0xff]  }
  0x1b   :  { %541 = vmatprep.subr.bf16.mxu0 %v1309_v0  ;;  %1171 = vmatprep.subr.bf16.mxu1 %v1309_v0 }
  0x1e   :  { %542 = vmatpush1.bf16.msra.mxu0 %v1204_v9  ;;  %1187 = vmatpush1.bf16.msra.mxu1 %v1204_v9  ;;  %v1276_v9 = vld [vmem:[%s1998_s0 + $0xe4] ss:$8 sps:$4 sm:$0xff]  }
  0x1f   :  { %543 = vmatprep.subr.bf16.mxu0 %v1309_v0  ;;  %1172 = vmatprep.subr.bf16.mxu1 %v1309_v0 }
  0x22   :  { %544 = vmatpush1.bf16.msra.mxu0 %v1205_v11  ;;  %1188 = vmatpush1.bf16.msra.mxu1 %v1205_v11  ;;  %v1278_v11 = vld [vmem:[%s1998_s0 + $0xe0] ss:$8 sps:$4 sm:$0xff]  }
  0x23   :  { %545 = vmatprep.subr.bf16.mxu0 %v1309_v0  ;;  %1173 = vmatprep.subr.bf16.mxu1 %v1309_v0 }
  0x26   :  { %546 = vmatpush1.bf16.msra.mxu0 %v1206_v12  ;;  %1189 = vmatpush1.bf16.msra.mxu1 %v1206_v12  ;;  %v1305_v12 = vld [vmem:[%s1998_s0 + $0x1e0] ss:$8 sps:$4 sm:$0xff]  }
  0x27   :  { %547 = vmatprep.subr.bf16.mxu0 %v1309_v0  ;;  %1174 = vmatprep.subr.bf16.mxu1 %v1309_v0 }
  0x2a   :  { %548 = vmatpush1.bf16.msra.mxu0 %v1207_v13  ;;  %1190 = vmatpush1.bf16.msra.mxu1 %v1207_v13  ;;  %v1282_v13 = vld [vmem:[%s1998_s0 + $0xf4] ss:$8 sps:$4 sm:$0xff]  }
  0x2b   :  { %549 = vmatprep.subr.bf16.mxu0 %v1309_v0  ;;  %1175 = vmatprep.subr.bf16.mxu1 %v1309_v0 }
  0x2e   :  { %550 = vmatpush1.bf16.msra.mxu0 %v1208_v14  ;;  %1191 = vmatpush1.bf16.msra.mxu1 %v1208_v14  ;;  %v1306_v14 = vld [vmem:[%s1998_s0 + $0x1f4] ss:$8 sps:$4 sm:$0xff]  }
  0x2f   :  { %551 = vmatprep.subr.bf16.mxu0 %v1309_v0  ;;  %1176 = vmatprep.subr.bf16.mxu1 %v1309_v0 }
  0x32   :  { %552 = vmatpush1.bf16.msra.mxu0 %v1209_v15  ;;  %1192 = vmatpush1.bf16.msra.mxu1 %v1209_v15  ;;  %v1284_v15 = vld [vmem:[%s1998_s0 + $0xf0] ss:$8 sps:$4 sm:$0xff]  }
  0x33   :  { %553 = vmatprep.subr.bf16.mxu0 %v1309_v0  ;;  %1177 = vmatprep.subr.bf16.mxu1 %v1309_v0 }
  0x36   :  { %554 = vmatpush1.bf16.msra.mxu0 %v1210_v16  ;;  %1193 = vmatpush1.bf16.msra.mxu1 %v1210_v16  ;;  %v1308_v16 = vld [vmem:[%s1998_s0 + $0x1f0] ss:$8 sps:$4 sm:$0xff]  }
  0x37   :  { %555 = vmatprep.subr.bf16.mxu0 %v1309_v0  ;;  %1178 = vmatprep.subr.bf16.mxu1 %v1309_v0 }
  0x3a   :  { %556 = vmatpush1.bf16.msra.mxu0 %v1211_v17  ;;  %1194 = vmatpush1.bf16.msra.mxu1 %v1211_v17 }
  0x3b   :  { %557 = vmatprep.subr.bf16.mxu0 %v1309_v0  ;;  %1179 = vmatprep.subr.bf16.mxu1 %v1309_v0  ;;  %v1296_v0 = vld [vmem:[%s1998_s0 + $0x1b0] ss:$8 sps:$4 sm:$0xff]  }
  0x3e   :  { %558 = vmatpush1.bf16.msra.mxu0 %v1212_v18  ;;  %1195 = vmatpush1.bf16.msra.mxu1 %v1212_v18 }
  0x41   :  { %560 = vmatmul.mubr.bf16.vlgmr.msra.gmra.mrb[0].mxu0 %v1213_v19  ;;  %688 = vmatmul.mubr.bf16.vlgmr.msra.gmra.mrb[0].mxu1 %v1237_v20 }
  0x42   :  { %567 = vmatprep.mubr.bf16.mxu0 %v1216_v21  ;;  %695 = vmatprep.mubr.bf16.mxu1 %v1243_v22 }
  0x49   :  { %568 = vmatmul.mubr.bf16.gmra.mrb[4].mxu0 %v1218_v23  ;;  %696 = vmatmul.mubr.bf16.gmra.mrb[4].mxu1 %v1245_v24 }
  0x4a   :  { %575 = vmatprep.mubr.bf16.mxu0 %v1219_v25  ;;  %703 = vmatprep.mubr.bf16.mxu1 %v1249_v26 }
  0x51   :  { %576 = vmatmul.mubr.bf16.gmra.mrb[8].mxu0 %v1221_v27  ;;  %704 = vmatmul.mubr.bf16.gmra.mrb[8].mxu1 %v1251_v28 }
  0x52   :  { %583 = vmatprep.mubr.bf16.mxu0 %v1222_v29  ;;  %711 = vmatprep.mubr.bf16.mxu1 %v1255_v30 }
  0x59   :  { %584 = vmatmul.mubr.bf16.gmra.mrb[12].mxu0 %v1224_v31  ;;  %712 = vmatmul.mubr.bf16.gmra.mrb[12].mxu1 %v1257_v32 }
  0x5a   :  { %591 = vmatprep.mubr.bf16.mxu0 %v1225_v33  ;;  %719 = vmatprep.mubr.bf16.mxu1 %v1261_v34 }
  0x61   :  { %592 = vmatmul.mubr.bf16.gmra.mrb[16].mxu0 %v1227_v35  ;;  %720 = vmatmul.mubr.bf16.gmra.mrb[16].mxu1 %v1263_v36 }
  0x62   :  { %599 = vmatprep.mubr.bf16.mxu0 %v1228_v37  ;;  %727 = vmatprep.mubr.bf16.mxu1 %v1267_v38 }
  0x69   :  { %600 = vmatmul.mubr.bf16.gmra.mrb[20].mxu0 %v1230_v39  ;;  %728 = vmatmul.mubr.bf16.gmra.mrb[20].mxu1 %v1269_v40 }
  0x6a   :  { %607 = vmatprep.mubr.bf16.mxu0 %v1231_v41  ;;  %735 = vmatprep.mubr.bf16.mxu1 %v1273_v42 }
  0x71   :  { %608 = vmatmul.mubr.bf16.gmra.mrb[24].mxu0 %v1233_v43  ;;  %736 = vmatmul.mubr.bf16.gmra.mrb[24].mxu1 %v1275_v44 }
  0x72   :  { %615 = vmatprep.mubr.bf16.mxu0 %v1234_v45  ;;  %743 = vmatprep.mubr.bf16.mxu1 %v1279_v46 }
  0x79   :  { %616 = vmatmul.mubr.bf16.gmra.mrb[28].mxu0 %v1236_v47  ;;  %744 = vmatmul.mubr.bf16.gmra.mrb[28].mxu1 %v1281_v48 }
  0x7a   :  { %623 = vmatprep.mubr.bf16.mxu0 %v1240_v49  ;;  %751 = vmatprep.mubr.bf16.mxu1 %v1285_v50 }
  0x81   :  { %624 = vmatmul.mubr.bf16.gmra.mrb[32].mxu0 %v1242_v51  ;;  %752 = vmatmul.mubr.bf16.gmra.mrb[32].mxu1 %v1287_v52 }
  0x82   :  { %631 = vmatprep.mubr.bf16.mxu0 %v1246_v53  ;;  %759 = vmatprep.mubr.bf16.mxu1 %v1288_v54 }
  0x89   :  { %632 = vmatmul.mubr.bf16.gmra.mrb[36].mxu0 %v1248_v55  ;;  %760 = vmatmul.mubr.bf16.gmra.mrb[36].mxu1 %v1290_v56 }
  0x8a   :  { %639 = vmatprep.mubr.bf16.mxu0 %v1252_v57  ;;  %767 = vmatprep.mubr.bf16.mxu1 %v1291_v58 }
  0x91   :  { %640 = vmatmul.mubr.bf16.gmra.mrb[40].mxu0 %v1254_v59  ;;  %768 = vmatmul.mubr.bf16.gmra.mrb[40].mxu1 %v1293_v60 }
  0x92   :  { %647 = vmatprep.mubr.bf16.mxu0 %v1258_v61  ;;  %775 = vmatprep.mubr.bf16.mxu1 %v1294_v62 }
  0x99   :  { %648 = vmatmul.mubr.bf16.gmra.mrb[44].mxu0 %v1260_v63  ;;  %776 = vmatmul.mubr.bf16.gmra.mrb[44].mxu1 %v1296_v0 }
  0x9a   :  { %655 = vmatprep.mubr.bf16.mxu0 %v1264_v1  ;;  %783 = vmatprep.mubr.bf16.mxu1 %v1297_v2 }
  0xa1   :  { %656 = vmatmul.mubr.bf16.gmra.mrb[48].mxu0 %v1266_v3  ;;  %784 = vmatmul.mubr.bf16.gmra.mrb[48].mxu1 %v1299_v4 }
  0xa2   :  { %663 = vmatprep.mubr.bf16.mxu0 %v1270_v5  ;;  %791 = vmatprep.mubr.bf16.mxu1 %v1300_v6 }
  0xa9   :  { %664 = vmatmul.mubr.bf16.gmra.mrb[52].mxu0 %v1272_v7  ;;  %792 = vmatmul.mubr.bf16.gmra.mrb[52].mxu1 %v1302_v8 }
  0xaa   :  { %671 = vmatprep.mubr.bf16.mxu0 %v1276_v9  ;;  %799 = vmatprep.mubr.bf16.mxu1 %v1303_v10 }
  0xb1   :  { %672 = vmatmul.mubr.bf16.gmra.mrb[56].mxu0 %v1278_v11  ;;  %800 = vmatmul.mubr.bf16.gmra.mrb[56].mxu1 %v1305_v12 }
  0xb2   :  { %679 = vmatprep.mubr.bf16.mxu0 %v1282_v13  ;;  %807 = vmatprep.mubr.bf16.mxu1 %v1306_v14 }
  0xb9   :  { %680 = vmatmul.mubr.bf16.gmra.mrb[60].mxu0 %v1284_v15  ;;  %808 = vmatmul.mubr.bf16.gmra.mrb[60].mxu1 %v1308_v16 }
 0x114   :  { %v561_v17 = vpop.f32.mrb[0].mxu0  ;;  %v1607_v18 = vpop.f32.mrb[0].mxu1 }
 0x115   :  { %816 = vst [vmem:[%s1999_s2] sm:$0xff] %v561_v17  ;;  %v563_v19 = vpop.f32.mrb[1].mxu0  ;;  %848 = vst [vmem:[%s1999_s2 + $0x100] sm:$0xff] %v1607_v18  ;;  %v691_v20 = vpop.f32.mrb[1].mxu1  ;;  %v944_v23 = vmul.f32 %v561_v17, %v561_v17 }
 0x116   :  { %v564_v21 = vpop.f32.mrb[2].mxu0  ;;  %v1616_v22 = vpop.f32.mrb[2].mxu1 }
 0x117   :  { %817 = vst [vmem:[%s1999_s2 + $0x8] sm:$0xff] %v564_v21  ;;  %v880_v24 = vadd.f32 %v564_v21, %v561_v17  ;;  %v945_v25 = vmul.f32 %v564_v21, %v564_v21  ;;  %v566_v26 = vpop.f32.mrb[3].mxu0  ;;  %849 = vst [vmem:[%s1999_s2 + $0x108] sm:$0xff] %v1616_v22  ;;  %v694_v27 = vpop.f32.mrb[3].mxu1 }
 0x119   :  { %v1008_v28 = vadd.f32 %v945_v25, %v944_v23 }
 0x11c   :  { %v569_v29 = vpop.f32.mrb[4].mxu0  ;;  %v1625_v30 = vpop.f32.mrb[4].mxu1 }
 0x11d   :  { %818 = vst [vmem:[%s1999_s2 + $0x10] sm:$0xff] %v569_v29  ;;  %v881_v31 = vadd.f32 %v880_v24, %v569_v29  ;;  %v946_v32 = vmul.f32 %v569_v29, %v569_v29  ;;  %v571_v33 = vpop.f32.mrb[5].mxu0  ;;  %850 = vst [vmem:[%s1999_s2 + $0x110] sm:$0xff] %v1625_v30  ;;  %v699_v34 = vpop.f32.mrb[5].mxu1 }
 0x11e   :  { %v572_v35 = vpop.f32.mrb[6].mxu0  ;;  %v1634_v36 = vpop.f32.mrb[6].mxu1 }
 0x11f   :  { %v1009_v37 = vadd.f32 %v1008_v28, %v946_v32  ;;  %819 = vst [vmem:[%s1999_s2 + $0x18] sm:$0xff] %v572_v35  ;;  %v882_v38 = vadd.f32 %v881_v31, %v572_v35  ;;  %v947_v39 = vmul.f32 %v572_v35, %v572_v35  ;;  %v574_v40 = vpop.f32.mrb[7].mxu0  ;;  %851 = vst [vmem:[%s1999_s2 + $0x118] sm:$0xff] %v1634_v36  ;;  %v702_v41 = vpop.f32.mrb[7].mxu1 }
 0x121   :  { %v1010_v42 = vadd.f32 %v1009_v37, %v947_v39 }
 0x124   :  { %v577_v43 = vpop.f32.mrb[8].mxu0  ;;  %v1643_v44 = vpop.f32.mrb[8].mxu1 }
 0x125   :  { %820 = vst [vmem:[%s1999_s2 + $0x20] sm:$0xff] %v577_v43  ;;  %v883_v45 = vadd.f32 %v882_v38, %v577_v43  ;;  %v948_v46 = vmul.f32 %v577_v43, %v577_v43  ;;  %v579_v47 = vpop.f32.mrb[9].mxu0  ;;  %852 = vst [vmem:[%s1999_s2 + $0x120] sm:$0xff] %v1643_v44  ;;  %v707_v48 = vpop.f32.mrb[9].mxu1 }
 0x126   :  { %v580_v49 = vpop.f32.mrb[10].mxu0  ;;  %v1652_v50 = vpop.f32.mrb[10].mxu1 }
 0x127   :  { %v1011_v51 = vadd.f32 %v1010_v42, %v948_v46  ;;  %821 = vst [vmem:[%s1999_s2 + $0x28] sm:$0xff] %v580_v49  ;;  %v884_v52 = vadd.f32 %v883_v45, %v580_v49  ;;  %v949_v53 = vmul.f32 %v580_v49, %v580_v49  ;;  %v582_v54 = vpop.f32.mrb[11].mxu0  ;;  %853 = vst [vmem:[%s1999_s2 + $0x128] sm:$0xff] %v1652_v50  ;;  %v710_v55 = vpop.f32.mrb[11].mxu1 }
 0x129   :  { %v1012_v56 = vadd.f32 %v1011_v51, %v949_v53 }
 0x12c   :  { %v585_v57 = vpop.f32.mrb[12].mxu0  ;;  %v1661_v58 = vpop.f32.mrb[12].mxu1 }
 0x12d   :  { %822 = vst [vmem:[%s1999_s2 + $0x30] sm:$0xff] %v585_v57  ;;  %v885_v59 = vadd.f32 %v884_v52, %v585_v57  ;;  %v950_v60 = vmul.f32 %v585_v57, %v585_v57  ;;  %v587_v61 = vpop.f32.mrb[13].mxu0  ;;  %854 = vst [vmem:[%s1999_s2 + $0x130] sm:$0xff] %v1661_v58  ;;  %v715_v62 = vpop.f32.mrb[13].mxu1 }
 0x12e   :  { %v588_v63 = vpop.f32.mrb[14].mxu0  ;;  %v1670_v0 = vpop.f32.mrb[14].mxu1 }
 0x12f   :  { %v1013_v1 = vadd.f32 %v1012_v56, %v950_v60  ;;  %823 = vst [vmem:[%s1999_s2 + $0x38] sm:$0xff] %v588_v63  ;;  %v886_v2 = vadd.f32 %v885_v59, %v588_v63  ;;  %v951_v3 = vmul.f32 %v588_v63, %v588_v63  ;;  %v590_v4 = vpop.f32.mrb[15].mxu0  ;;  %855 = vst [vmem:[%s1999_s2 + $0x138] sm:$0xff] %v1670_v0  ;;  %v718_v5 = vpop.f32.mrb[15].mxu1 }
 0x131   :  { %v1014_v6 = vadd.f32 %v1013_v1, %v951_v3 }
 0x134   :  { %v593_v7 = vpop.f32.mrb[16].mxu0  ;;  %v1679_v8 = vpop.f32.mrb[16].mxu1 }
 0x135   :  { %824 = vst [vmem:[%s1999_s2 + $0x40] sm:$0xff] %v593_v7  ;;  %v887_v9 = vadd.f32 %v886_v2, %v593_v7  ;;  %v952_v10 = vmul.f32 %v593_v7, %v593_v7  ;;  %v595_v11 = vpop.f32.mrb[17].mxu0  ;;  %856 = vst [vmem:[%s1999_s2 + $0x140] sm:$0xff] %v1679_v8  ;;  %v723_v12 = vpop.f32.mrb[17].mxu1 }
 0x136   :  { %v596_v13 = vpop.f32.mrb[18].mxu0  ;;  %v1688_v14 = vpop.f32.mrb[18].mxu1 }
 0x137   :  { %v1015_v15 = vadd.f32 %v1014_v6, %v952_v10  ;;  %825 = vst [vmem:[%s1999_s2 + $0x48] sm:$0xff] %v596_v13  ;;  %v888_v16 = vadd.f32 %v887_v9, %v596_v13  ;;  %v953_v17 = vmul.f32 %v596_v13, %v596_v13  ;;  %v598_v19 = vpop.f32.mrb[19].mxu0  ;;  %857 = vst [vmem:[%s1999_s2 + $0x148] sm:$0xff] %v1688_v14  ;;  %v726_v20 = vpop.f32.mrb[19].mxu1 }
 0x139   :  { %v1016_v21 = vadd.f32 %v1015_v15, %v953_v17 }
 0x13c   :  { %v601_v23 = vpop.f32.mrb[20].mxu0  ;;  %v1697_v24 = vpop.f32.mrb[20].mxu1 }
 0x13d   :  { %826 = vst [vmem:[%s1999_s2 + $0x50] sm:$0xff] %v601_v23  ;;  %v889_v25 = vadd.f32 %v888_v16, %v601_v23  ;;  %v954_v26 = vmul.f32 %v601_v23, %v601_v23  ;;  %v603_v27 = vpop.f32.mrb[21].mxu0  ;;  %858 = vst [vmem:[%s1999_s2 + $0x150] sm:$0xff] %v1697_v24  ;;  %v731_v28 = vpop.f32.mrb[21].mxu1 }
 0x13e   :  { %v604_v29 = vpop.f32.mrb[22].mxu0  ;;  %v1706_v31 = vpop.f32.mrb[22].mxu1 }
 0x13f   :  { %v1017_v32 = vadd.f32 %v1016_v21, %v954_v26  ;;  %827 = vst [vmem:[%s1999_s2 + $0x58] sm:$0xff] %v604_v29  ;;  %v890_v33 = vadd.f32 %v889_v25, %v604_v29  ;;  %v955_v34 = vmul.f32 %v604_v29, %v604_v29  ;;  %v606_v35 = vpop.f32.mrb[23].mxu0  ;;  %859 = vst [vmem:[%s1999_s2 + $0x158] sm:$0xff] %v1706_v31  ;;  %v734_v37 = vpop.f32.mrb[23].mxu1 }
 0x141   :  { %v1018_v38 = vadd.f32 %v1017_v32, %v955_v34 }
 0x144   :  { %v609_v39 = vpop.f32.mrb[24].mxu0  ;;  %v1715_v40 = vpop.f32.mrb[24].mxu1 }
 0x145   :  { %828 = vst [vmem:[%s1999_s2 + $0x60] sm:$0xff] %v609_v39  ;;  %v891_v41 = vadd.f32 %v890_v33, %v609_v39  ;;  %v956_v42 = vmul.f32 %v609_v39, %v609_v39  ;;  %v611_v43 = vpop.f32.mrb[25].mxu0  ;;  %860 = vst [vmem:[%s1999_s2 + $0x160] sm:$0xff] %v1715_v40  ;;  %v739_v45 = vpop.f32.mrb[25].mxu1 }
 0x146   :  { %v612_v46 = vpop.f32.mrb[26].mxu0  ;;  %v1724_v47 = vpop.f32.mrb[26].mxu1 }
 0x147   :  { %v1019_v48 = vadd.f32 %v1018_v38, %v956_v42  ;;  %829 = vst [vmem:[%s1999_s2 + $0x68] sm:$0xff] %v612_v46  ;;  %v892_v49 = vadd.f32 %v891_v41, %v612_v46  ;;  %v957_v51 = vmul.f32 %v612_v46, %v612_v46  ;;  %v614_v52 = vpop.f32.mrb[27].mxu0  ;;  %861 = vst [vmem:[%s1999_s2 + $0x168] sm:$0xff] %v1724_v47  ;;  %v742_v53 = vpop.f32.mrb[27].mxu1 }
 0x149   :  { %v1020_v54 = vadd.f32 %v1019_v48, %v957_v51 }
 0x14c   :  { %v617_v55 = vpop.f32.mrb[28].mxu0  ;;  %v1733_v56 = vpop.f32.mrb[28].mxu1 }
 0x14d   :  { %830 = vst [vmem:[%s1999_s2 + $0x70] sm:$0xff] %v617_v55  ;;  %v893_v57 = vadd.f32 %v892_v49, %v617_v55  ;;  %v958_v59 = vmul.f32 %v617_v55, %v617_v55  ;;  %v619_v60 = vpop.f32.mrb[29].mxu0  ;;  %862 = vst [vmem:[%s1999_s2 + $0x170] sm:$0xff] %v1733_v56  ;;  %v747_v61 = vpop.f32.mrb[29].mxu1 }
 0x14e   :  { %v620_v62 = vpop.f32.mrb[30].mxu0  ;;  %v1742_v63 = vpop.f32.mrb[30].mxu1 }
 0x14f   :  { %v1021_v1 = vadd.f32 %v1020_v54, %v958_v59  ;;  %831 = vst [vmem:[%s1999_s2 + $0x78] sm:$0xff] %v620_v62  ;;  %v894_v2 = vadd.f32 %v893_v57, %v620_v62  ;;  %v959_v3 = vmul.f32 %v620_v62, %v620_v62  ;;  %v622_v4 = vpop.f32.mrb[31].mxu0  ;;  %863 = vst [vmem:[%s1999_s2 + $0x178] sm:$0xff] %v1742_v63  ;;  %v750_v5 = vpop.f32.mrb[31].mxu1 }
 0x151   :  { %v1022_v6 = vadd.f32 %v1021_v1, %v959_v3 }
 0x154   :  { %v625_v7 = vpop.f32.mrb[32].mxu0  ;;  %v1751_v9 = vpop.f32.mrb[32].mxu1 }
 0x155   :  { %832 = vst [vmem:[%s1999_s2 + $0x80] sm:$0xff] %v625_v7  ;;  %v895_v10 = vadd.f32 %v894_v2, %v625_v7  ;;  %v960_v11 = vmul.f32 %v625_v7, %v625_v7  ;;  %v627_v12 = vpop.f32.mrb[33].mxu0  ;;  %864 = vst [vmem:[%s1999_s2 + $0x180] sm:$0xff] %v1751_v9  ;;  %v755_v13 = vpop.f32.mrb[33].mxu1 }
 0x156   :  { %v628_v15 = vpop.f32.mrb[34].mxu0  ;;  %v1760_v16 = vpop.f32.mrb[34].mxu1 }
 0x157   :  { %v1023_v17 = vadd.f32 %v1022_v6, %v960_v11  ;;  %833 = vst [vmem:[%s1999_s2 + $0x88] sm:$0xff] %v628_v15  ;;  %v896_v19 = vadd.f32 %v895_v10, %v628_v15  ;;  %v961_v20 = vmul.f32 %v628_v15, %v628_v15  ;;  %v630_v21 = vpop.f32.mrb[35].mxu0  ;;  %865 = vst [vmem:[%s1999_s2 + $0x188] sm:$0xff] %v1760_v16  ;;  %v758_v23 = vpop.f32.mrb[35].mxu1 }
 0x159   :  { %v1024_v25 = vadd.f32 %v1023_v17, %v961_v20 }
 0x15c   :  { %v633_v26 = vpop.f32.mrb[36].mxu0  ;;  %v1769_v27 = vpop.f32.mrb[36].mxu1 }
 0x15d   :  { %834 = vst [vmem:[%s1999_s2 + $0x90] sm:$0xff] %v633_v26  ;;  %v897_v28 = vadd.f32 %v896_v19, %v633_v26  ;;  %v962_v29 = vmul.f32 %v633_v26, %v633_v26  ;;  %v635_v32 = vpop.f32.mrb[37].mxu0  ;;  %866 = vst [vmem:[%s1999_s2 + $0x190] sm:$0xff] %v1769_v27  ;;  %v763_v33 = vpop.f32.mrb[37].mxu1 }
 0x15e   :  { %v636_v34 = vpop.f32.mrb[38].mxu0  ;;  %v1778_v35 = vpop.f32.mrb[38].mxu1 }
 0x15f   :  { %v1025_v37 = vadd.f32 %v1024_v25, %v962_v29  ;;  %835 = vst [vmem:[%s1999_s2 + $0x98] sm:$0xff] %v636_v34  ;;  %v898_v38 = vadd.f32 %v897_v28, %v636_v34  ;;  %v963_v39 = vmul.f32 %v636_v34, %v636_v34  ;;  %v638_v41 = vpop.f32.mrb[39].mxu0  ;;  %867 = vst [vmem:[%s1999_s2 + $0x198] sm:$0xff] %v1778_v35  ;;  %v766_v42 = vpop.f32.mrb[39].mxu1 }
 0x161   :  { %v1026_v43 = vadd.f32 %v1025_v37, %v963_v39 }
 0x164   :  { %v641_v45 = vpop.f32.mrb[40].mxu0  ;;  %v1787_v46 = vpop.f32.mrb[40].mxu1 }
 0x165   :  { %836 = vst [vmem:[%s1999_s2 + $0xa0] sm:$0xff] %v641_v45  ;;  %v899_v48 = vadd.f32 %v898_v38, %v641_v45  ;;  %v964_v49 = vmul.f32 %v641_v45, %v641_v45  ;;  %v643_v51 = vpop.f32.mrb[41].mxu0  ;;  %868 = vst [vmem:[%s1999_s2 + $0x1a0] sm:$0xff] %v1787_v46  ;;  %v771_v52 = vpop.f32.mrb[41].mxu1 }
 0x166   :  { %v644_v53 = vpop.f32.mrb[42].mxu0  ;;  %v1796_v54 = vpop.f32.mrb[42].mxu1 }
 0x167   :  { %v1027_v55 = vadd.f32 %v1026_v43, %v964_v49  ;;  %837 = vst [vmem:[%s1999_s2 + $0xa8] sm:$0xff] %v644_v53  ;;  %v900_v57 = vadd.f32 %v899_v48, %v644_v53  ;;  %v965_v59 = vmul.f32 %v644_v53, %v644_v53  ;;  %v646_v60 = vpop.f32.mrb[43].mxu0  ;;  %869 = vst [vmem:[%s1999_s2 + $0x1a8] sm:$0xff] %v1796_v54  ;;  %v774_v61 = vpop.f32.mrb[43].mxu1 }
 0x169   :  { %v1028_v62 = vadd.f32 %v1027_v55, %v965_v59 }
 0x16c   :  { %v649_v1 = vpop.f32.mrb[44].mxu0  ;;  %v1805_v2 = vpop.f32.mrb[44].mxu1 }
 0x16d   :  { %838 = vst [vmem:[%s1999_s2 + $0xb0] sm:$0xff] %v649_v1  ;;  %v901_v3 = vadd.f32 %v900_v57, %v649_v1  ;;  %v966_v4 = vmul.f32 %v649_v1, %v649_v1  ;;  %v651_v5 = vpop.f32.mrb[45].mxu0  ;;  %870 = vst [vmem:[%s1999_s2 + $0x1b0] sm:$0xff] %v1805_v2  ;;  %v779_v6 = vpop.f32.mrb[45].mxu1 }
 0x16e   :  { %v652_v7 = vpop.f32.mrb[46].mxu0  ;;  %v1814_v10 = vpop.f32.mrb[46].mxu1 }
 0x16f   :  { %v1029_v11 = vadd.f32 %v1028_v62, %v966_v4  ;;  %839 = vst [vmem:[%s1999_s2 + $0xb8] sm:$0xff] %v652_v7  ;;  %v902_v12 = vadd.f32 %v901_v3, %v652_v7  ;;  %v967_v13 = vmul.f32 %v652_v7, %v652_v7  ;;  %v654_v15 = vpop.f32.mrb[47].mxu0  ;;  %871 = vst [vmem:[%s1999_s2 + $0x1b8] sm:$0xff] %v1814_v10  ;;  %v782_v17 = vpop.f32.mrb[47].mxu1 }
 0x171   :  { %v1030_v19 = vadd.f32 %v1029_v11, %v967_v13 }
 0x174   :  { %v657_v20 = vpop.f32.mrb[48].mxu0  ;;  %v1823_v21 = vpop.f32.mrb[48].mxu1 }
 0x175   :  { %840 = vst [vmem:[%s1999_s2 + $0xc0] sm:$0xff] %v657_v20  ;;  %v903_v23 = vadd.f32 %v902_v12, %v657_v20  ;;  %v968_v25 = vmul.f32 %v657_v20, %v657_v20  ;;  %v659_v26 = vpop.f32.mrb[49].mxu0  ;;  %872 = vst [vmem:[%s1999_s2 + $0x1c0] sm:$0xff] %v1823_v21  ;;  %v787_v28 = vpop.f32.mrb[49].mxu1 }
 0x176   :  { %v660_v29 = vpop.f32.mrb[50].mxu0  ;;  %v1832_v32 = vpop.f32.mrb[50].mxu1 }
 0x177   :  { %v1031_v33 = vadd.f32 %v1030_v19, %v968_v25  ;;  %841 = vst [vmem:[%s1999_s2 + $0xc8] sm:$0xff] %v660_v29  ;;  %v904_v34 = vadd.f32 %v903_v23, %v660_v29  ;;  %v969_v37 = vmul.f32 %v660_v29, %v660_v29  ;;  %v662_v38 = vpop.f32.mrb[51].mxu0  ;;  %873 = vst [vmem:[%s1999_s2 + $0x1c8] sm:$0xff] %v1832_v32  ;;  %v790_v39 = vpop.f32.mrb[51].mxu1 }
 0x179   :  { %v1032_v41 = vadd.f32 %v1031_v33, %v969_v37 }
 0x17c   :  { %v665_v42 = vpop.f32.mrb[52].mxu0  ;;  %v1841_v43 = vpop.f32.mrb[52].mxu1 }
 0x17d   :  { %842 = vst [vmem:[%s1999_s2 + $0xd0] sm:$0xff] %v665_v42  ;;  %v905_v45 = vadd.f32 %v904_v34, %v665_v42  ;;  %v970_v48 = vmul.f32 %v665_v42, %v665_v42  ;;  %v667_v49 = vpop.f32.mrb[53].mxu0  ;;  %874 = vst [vmem:[%s1999_s2 + $0x1d0] sm:$0xff] %v1841_v43  ;;  %v795_v51 = vpop.f32.mrb[53].mxu1 }
 0x17e   :  { %v668_v52 = vpop.f32.mrb[54].mxu0  ;;  %v1850_v53 = vpop.f32.mrb[54].mxu1  ;;  %v976_v49 = vmul.f32 %v1607_v18, %v1607_v18 }
 0x17f   :  { %v1033_v55 = vadd.f32 %v1032_v41, %v970_v48  ;;  %843 = vst [vmem:[%s1999_s2 + $0xd8] sm:$0xff] %v668_v52  ;;  %v906_v57 = vadd.f32 %v905_v45, %v668_v52  ;;  %v971_v59 = vmul.f32 %v668_v52, %v668_v52  ;;  %v670_v60 = vpop.f32.mrb[55].mxu0  ;;  %875 = vst [vmem:[%s1999_s2 + $0x1d8] sm:$0xff] %v1850_v53  ;;  %v798_v61 = vpop.f32.mrb[55].mxu1 }
 0x180   :  { %v978_v60 = vmul.f32 %v1625_v30, %v1625_v30 }
 0x181   :  { %v1034_v62 = vadd.f32 %v1033_v55, %v971_v59  ;;  %v977_v55 = vmul.f32 %v1616_v22, %v1616_v22 }
 0x184   :  { %v673_v1 = vpop.f32.mrb[56].mxu0  ;;  %v1859_v3 = vpop.f32.mrb[56].mxu1 }
 0x185   :  { %844 = vst [vmem:[%s1999_s2 + $0xe0] sm:$0xff] %v673_v1  ;;  %v907_v4 = vadd.f32 %v906_v57, %v673_v1  ;;  %v972_v5 = vmul.f32 %v673_v1, %v673_v1  ;;  %v675_v6 = vpop.f32.mrb[57].mxu0  ;;  %876 = vst [vmem:[%s1999_s2 + $0x1e0] sm:$0xff] %v1859_v3  ;;  %v803_v7 = vpop.f32.mrb[57].mxu1  ;;  %v979_v1 = vmul.f32 %v1634_v36, %v1634_v36 }
 0x186   :  { %v676_v11 = vpop.f32.mrb[58].mxu0  ;;  %v1868_v12 = vpop.f32.mrb[58].mxu1 }
 0x187   :  { %v1035_v13 = vadd.f32 %v1034_v62, %v972_v5  ;;  %845 = vst [vmem:[%s1999_s2 + $0xe8] sm:$0xff] %v676_v11  ;;  %v908_v15 = vadd.f32 %v907_v4, %v676_v11  ;;  %v973_v17 = vmul.f32 %v676_v11, %v676_v11  ;;  %v678_v19 = vpop.f32.mrb[59].mxu0  ;;  %877 = vst [vmem:[%s1999_s2 + $0x1e8] sm:$0xff] %v1868_v12  ;;  %v806_v20 = vpop.f32.mrb[59].mxu1 }
 0x189   :  { %v1036_v23 = vadd.f32 %v1035_v13, %v973_v17 }
 0x18c   :  { %v681_v25 = vpop.f32.mrb[60].mxu0  ;;  %v1877_v26 = vpop.f32.mrb[60].mxu1 }
 0x18d   :  { %846 = vst [vmem:[%s1999_s2 + $0xf0] sm:$0xff] %v681_v25  ;;  %v909_v28 = vadd.f32 %v908_v15, %v681_v25  ;;  %v974_v29 = vmul.f32 %v681_v25, %v681_v25  ;;  %v683_v33 = vpop.f32.mrb[61].mxu0  ;;  %878 = vst [vmem:[%s1999_s2 + $0x1f0] sm:$0xff] %v1877_v26  ;;  %v811_v34 = vpop.f32.mrb[61].mxu1 }
 0x18e   :  { %v684_v37 = vpop.f32.mrb[62].mxu0  ;;  %v1886_v38 = vpop.f32.mrb[62].mxu1 }
 0x18f   :  { %v1037_v39 = vadd.f32 %v1036_v23, %v974_v29  ;;  %847 = vst [vmem:[%s1999_s2 + $0xf8] sm:$0xff] %v684_v37  ;;  %v910_v41 = vadd.f32 %v909_v28, %v684_v37  ;;  %v975_v42 = vmul.f32 %v684_v37, %v684_v37  ;;  %v686_v45 = vpop.f32.mrb[63].mxu0  ;;  %879 = vst [vmem:[%s1999_s2 + $0x1f8] sm:$0xff] %v1886_v38  ;;  %v814_v48 = vpop.f32.mrb[63].mxu1 }
 0x191   :  { %v911_v51 = vadd.f32 %v910_v41, %v1607_v18  ;;  %v1038_v52 = vadd.f32 %v1037_v39, %v975_v42  ;;  %v980_v18 = vmul.f32 %v1643_v44, %v1643_v44 }
 0x193   :  { %v912_v57 = vadd.f32 %v911_v51, %v1616_v22  ;;  %v1039_v59 = vadd.f32 %v1038_v52, %v976_v49  ;;  %v981_v22 = vmul.f32 %v1652_v50, %v1652_v50 }
 0x195   :  { %v913_v61 = vadd.f32 %v912_v57, %v1625_v30  ;;  %v1040_v62 = vadd.f32 %v1039_v59, %v977_v55  ;;  %v982_v30 = vmul.f32 %v1661_v58, %v1661_v58  ;;  %v992_v57 = vmul.f32 %v1751_v9, %v1751_v9 }
 0x197   :  { %v914_v4 = vadd.f32 %v913_v61, %v1634_v36  ;;  %v1041_v5 = vadd.f32 %v1040_v62, %v978_v60  ;;  %v983_v36 = vmul.f32 %v1670_v0, %v1670_v0  ;;  %v993_v61 = vmul.f32 %v1760_v16, %v1760_v16 }
 0x199   :  { %v915_v6 = vadd.f32 %v914_v4, %v1643_v44  ;;  %v1042_v7 = vadd.f32 %v1041_v5, %v979_v1  ;;  %v984_v44 = vmul.f32 %v1679_v8, %v1679_v8  ;;  %v994_v1 = vmul.f32 %v1769_v27, %v1769_v27 }
 0x19a   :  { %v995_v5 = vmul.f32 %v1778_v35, %v1778_v35 }
 0x19b   :  { %v916_v11 = vadd.f32 %v915_v6, %v1652_v50  ;;  %v1043_v13 = vadd.f32 %v1042_v7, %v980_v18  ;;  %v985_v50 = vmul.f32 %v1688_v14, %v1688_v14  ;;  %v996_v6 = vmul.f32 %v1787_v46, %v1787_v46 }
 0x19d   :  { %v917_v15 = vadd.f32 %v916_v11, %v1661_v58  ;;  %v1044_v17 = vadd.f32 %v1043_v13, %v981_v22  ;;  %v986_v58 = vmul.f32 %v1697_v24, %v1697_v24  ;;  %v997_v22 = vmul.f32 %v1796_v54, %v1796_v54 }
 0x19e   :  { %v998_v13 = vmul.f32 %v1805_v2, %v1805_v2 }
 0x19f   :  { %v918_v19 = vadd.f32 %v917_v15, %v1670_v0  ;;  %v1045_v20 = vadd.f32 %v1044_v17, %v982_v30  ;;  %v987_v0 = vmul.f32 %v1706_v31, %v1706_v31  ;;  %v999_v15 = vmul.f32 %v1814_v10, %v1814_v10 }
 0x1a1   :  { %v1046_v23 = vadd.f32 %v1045_v20, %v983_v36  ;;  %v919_v25 = vadd.f32 %v918_v19, %v1679_v8  ;;  %v988_v8 = vmul.f32 %v1715_v40, %v1715_v40  ;;  %v1000_v36 = vmul.f32 %v1823_v21, %v1823_v21 }
 0x1a2   :  { %v1001_v20 = vmul.f32 %v1832_v32, %v1832_v32 }
 0x1a3   :  { %v920_v28 = vadd.f32 %v919_v25, %v1688_v14  ;;  %v1047_v29 = vadd.f32 %v1046_v23, %v984_v44  ;;  %v989_v14 = vmul.f32 %v1724_v47, %v1724_v47  ;;  %v1002_v23 = vmul.f32 %v1841_v43, %v1841_v43 }
 0x1a5   :  { %v921_v33 = vadd.f32 %v920_v28, %v1697_v24  ;;  %v1048_v34 = vadd.f32 %v1047_v29, %v985_v50  ;;  %v990_v24 = vmul.f32 %v1733_v56, %v1733_v56  ;;  %v1003_v50 = vmul.f32 %v1850_v53, %v1850_v53 }
 0x1a6   :  { %v1004_v29 = vmul.f32 %v1859_v3, %v1859_v3 }
 0x1a7   :  { %v922_v37 = vadd.f32 %v921_v33, %v1706_v31  ;;  %v1049_v39 = vadd.f32 %v1048_v34, %v986_v58  ;;  %v991_v31 = vmul.f32 %v1742_v63, %v1742_v63  ;;  %v1005_v33 = vmul.f32 %v1868_v12, %v1868_v12 }
 0x1a9   :  { %v923_v41 = vadd.f32 %v922_v37, %v1715_v40  ;;  %v1050_v42 = vadd.f32 %v1049_v39, %v987_v0  ;;  %v1007_v39 = vmul.f32 %v1886_v38, %v1886_v38 }
 0x1ab   :  { %v924_v45 = vadd.f32 %v923_v41, %v1724_v47  ;;  %v1051_v48 = vadd.f32 %v1050_v42, %v988_v8 }
 0x1ad   :  { %v925_v49 = vadd.f32 %v924_v45, %v1733_v56  ;;  %v1052_v51 = vadd.f32 %v1051_v48, %v989_v14 }
 0x1af   :  { %v926_v52 = vadd.f32 %v925_v49, %v1742_v63  ;;  %v1053_v55 = vadd.f32 %v1052_v51, %v990_v24 }
 0x1b1   :  { %v927_v40 = vadd.f32 %v926_v52, %v1751_v9  ;;  %v1054_v59 = vadd.f32 %v1053_v55, %v991_v31 }
 0x1b3   :  { %v1055_v47 = vadd.f32 %v1054_v59, %v992_v57  ;;  %v928_v60 = vadd.f32 %v927_v40, %v1760_v16 }
 0x1b5   :  { %v1056_v56 = vadd.f32 %v1055_v47, %v993_v61  ;;  %v929_v62 = vadd.f32 %v928_v60, %v1769_v27 }
 0x1b7   :  { %v1057_v63 = vadd.f32 %v1056_v56, %v994_v1  ;;  %v930_v4 = vadd.f32 %v929_v62, %v1778_v35 }
 0x1b9   :  { %v1058_v9 = vadd.f32 %v1057_v63, %v995_v5  ;;  %v931_v18 = vadd.f32 %v930_v4, %v1787_v46 }
 0x1bb   :  { %v1059_v7 = vadd.f32 %v1058_v9, %v996_v6  ;;  %v932_v16 = vadd.f32 %v931_v18, %v1796_v54 }
 0x1bd   :  { %v1060_v11 = vadd.f32 %v1059_v7, %v997_v22  ;;  %v933_v27 = vadd.f32 %v932_v16, %v1805_v2 }
 0x1bf   :  { %v1061_v30 = vadd.f32 %v1060_v11, %v998_v13  ;;  %v934_v35 = vadd.f32 %v933_v27, %v1814_v10 }
 0x1c1   :  { %v1062_v17 = vadd.f32 %v1061_v30, %v999_v15  ;;  %v935_v46 = vadd.f32 %v934_v35, %v1823_v21 }
 0x1c3   :  { %v1063_v19 = vadd.f32 %v1062_v17, %v1000_v36  ;;  %v936_v54 = vadd.f32 %v935_v46, %v1832_v32 }
 0x1c5   :  { %v1064_v44 = vadd.f32 %v1063_v19, %v1001_v20  ;;  %v937_v2 = vadd.f32 %v936_v54, %v1841_v43  ;;  %v1006_v43 = vmul.f32 %v1877_v26, %v1877_v26 }
 0x1c7   :  { %v1065_v25 = vadd.f32 %v1064_v44, %v1002_v23  ;;  %v938_v10 = vadd.f32 %v937_v2, %v1850_v53 }
 0x1c9   :  { %v1066_v28 = vadd.f32 %v1065_v25, %v1003_v50  ;;  %v939_v21 = vadd.f32 %v938_v10, %v1859_v3 }
 0x1cb   :  { %v1067_v58 = vadd.f32 %v1066_v28, %v1004_v29  ;;  %v940_v32 = vadd.f32 %v939_v21, %v1868_v12 }
 0x1cd   :  { %v1068_v34 = vadd.f32 %v1067_v58, %v1005_v33  ;;  %v941_v0 = vadd.f32 %v940_v32, %v1877_v26 }
 0x1cf   :  { %v1069_v37 = vadd.f32 %v1068_v34, %v1006_v43  ;;  %v942_v53 = vadd.f32 %v941_v0, %v1886_v38 }
 0x1d1   :  { %943 = vst [vmem:[%s2000_s3] sm:$0xff] %v942_v53  ;;  %v1070_v3 = vadd.f32 %v1069_v37, %v1007_v39 }
 0x1d3   :  { %1071 = vst [vmem:[%s2001_s4] sm:$0xff] %v1070_v3 }

// kernel: dcgan_discriminator_forward.10
= control target key start
LH: loop header
LB: loop body
LE: loop exit
PB: predicated region body
PF: predicated region fallthrough
CT: control target
= control target key end

     0   :  { %s1030_s0 = inlined_call_operand.vmem [shape: f32[512,128], index: 0, kind: input, shape index: {}, may-alias: {0,3}]   ;;  %s1031_s1 = inlined_call_operand.vmem [shape: f32[1,128], index: 1, kind: input, shape index: {}]   ;;  %s1032_s2 = inlined_call_operand.vmem [shape: f32[1,128], index: 2, kind: input, shape index: {}]   ;;  %s1033_s3 = inlined_call_operand.vmem [shape: f32[512,128], index: 3, kind: output, shape index: {}, may-alias: {0,3}]  }
   0x1   :  { %v14_v0 = vld [vmem:[%s1030_s0] sm:$0xff]  ;;  %v15_v4 = vld [vmem:[%s1030_s0 + $0x8] sm:$0xff]  ;;  %v16_v5 = vld [vmem:[%s1030_s0 + $0x10] sm:$0xff] }
   0x2   :  { %v508_v1 = vld [vmem:[%s1031_s1] ss:$0 sm:$0xff]  ;;  %v17_v6 = vld [vmem:[%s1030_s0 + $0x18] sm:$0xff]  ;;  %v19_v11 = vld [vmem:[%s1030_s0 + $0x28] sm:$0xff] }
   0x3   :  { %v513_v2 = vld [vmem:[%s1032_s2] ss:$0 sm:$0xff]  ;;  %v85_v3 = vmul.f32 %v508_v1, %v14_v0  ;;  %v86_v7 = vmul.f32 %v508_v1, %v15_v4  ;;  %v87_v8 = vmul.f32 %v508_v1, %v16_v5  ;;  %v88_v9 = vmul.f32 %v508_v1, %v17_v6  ;;  %v20_v12 = vld [vmem:[%s1030_s0 + $0x30] sm:$0xff]  ;;  %v21_v17 = vld [vmem:[%s1030_s0 + $0x38] sm:$0xff] }
   0x4   :  { %v18_v10 = vld [vmem:[%s1030_s0 + $0x20] sm:$0xff]  ;;  %v90_v15 = vmul.f32 %v508_v1, %v19_v11  ;;  %v91_v16 = vmul.f32 %v508_v1, %v20_v12  ;;  %v92_v21 = vmul.f32 %v508_v1, %v21_v17  ;;  %v23_v30 = vld [vmem:[%s1030_s0 + $0x48] sm:$0xff]  ;;  %v24_v31 = vld [vmem:[%s1030_s0 + $0x50] sm:$0xff] }
   0x5   :  { %v156_v13 = vadd.f32 %v513_v2, %v85_v3  ;;  %v89_v14 = vmul.f32 %v508_v1, %v18_v10  ;;  %v157_v18 = vadd.f32 %v513_v2, %v86_v7  ;;  %v158_v19 = vadd.f32 %v513_v2, %v87_v8  ;;  %v22_v25 = vld [vmem:[%s1030_s0 + $0x40] sm:$0xff] }
   0x6   :  { %v159_v20 = vadd.f32 %v513_v2, %v88_v9  ;;  %v161_v24 = vadd.f32 %v513_v2, %v90_v15  ;;  %v162_v37 = vadd.f32 %v513_v2, %v91_v16  ;;  %v163_v38 = vadd.f32 %v513_v2, %v92_v21 }
   0x7   :  { %vm220_vm0 = vcmp.ge.f32.partialorder %v156_v13, 0.0  ;;  %v284_v22 = vmul.f32 0.2, %v156_v13  ;;  %v160_v23 = vadd.f32 %v513_v2, %v89_v14  ;;  %vm221_vm1 = vcmp.ge.f32.partialorder %v157_v18, 0.0 }
   0x8   :  { %v285_v26 = vmul.f32 0.2, %v157_v18  ;;  %vm222_vm2 = vcmp.ge.f32.partialorder %v158_v19, 0.0  ;;  %v286_v27 = vmul.f32 0.2, %v158_v19  ;;  %vm223_vm3 = vcmp.ge.f32.partialorder %v159_v20, 0.0 }
   0x9   :  { %v348_v28 = vsel %vm220_vm0, %v156_v13, %v284_v22  ;;  %v287_v29 = vmul.f32 0.2, %v159_v20  ;;  %vm224_vm4 = vcmp.ge.f32.partialorder %v160_v23, 0.0  ;;  %v288_v34 = vmul.f32 0.2, %v160_v23 }
   0xa   :  { %412 = vst [vmem:[%s1033_s3] sm:$0xff] %v348_v28  ;;  %v349_v32 = vsel %vm221_vm1, %v157_v18, %v285_v26  ;;  %v350_v33 = vsel %vm222_vm2, %v158_v19, %v286_v27  ;;  %vm225_vm5 = vcmp.ge.f32.partialorder %v161_v24, 0.0  ;;  %v289_v36 = vmul.f32 0.2, %v161_v24 }
   0xb   :  { %413 = vst [vmem:[%s1033_s3 + $0x8] sm:$0xff] %v349_v32  ;;  %414 = vst [vmem:[%s1033_s3 + $0x10] sm:$0xff] %v350_v33  ;;  %v351_v35 = vsel %vm223_vm3, %v159_v20, %v287_v29  ;;  %v352_v39 = vsel %vm224_vm4, %v160_v23, %v288_v34  ;;  %v93_v40 = vmul.f32 %v508_v1, %v22_v25  ;;  %vm226_vm6 = vcmp.ge.f32.partialorder %v162_v37, 0.0 }
   0xc   :  { %415 = vst [vmem:[%s1033_s3 + $0x18] sm:$0xff] %v351_v35  ;;  %v94_v41 = vmul.f32 %v508_v1, %v23_v30  ;;  %v95_v42 = vmul.f32 %v508_v1, %v24_v31  ;;  %v353_v46 = vsel %vm225_vm5, %v161_v24, %v289_v36  ;;  %v290_v47 = vmul.f32 0.2, %v162_v37 }
   0xd   :  { %vm227_vm7 = vcmp.ge.f32.partialorder %v163_v38, 0.0  ;;  %v291_v48 = vmul.f32 0.2, %v163_v38  ;;  %v164_v49 = vadd.f32 %v513_v2, %v93_v40 }
   0xe   :  { %v165_v50 = vadd.f32 %v513_v2, %v94_v41  ;;  %v166_v51 = vadd.f32 %v513_v2, %v95_v42  ;;  %v354_v52 = vsel %vm226_vm6, %v162_v37, %v290_v47 }
   0xf   :  { %v355_v57 = vsel %vm227_vm7, %v163_v38, %v291_v48  ;;  %vm228_vm8 = vcmp.ge.f32.partialorder %v164_v49, 0.0  ;;  %v292_v58 = vmul.f32 0.2, %v164_v49 }
  0x10   :  { %vm229_vm9 = vcmp.ge.f32.partialorder %v165_v50, 0.0  ;;  %v293_v59 = vmul.f32 0.2, %v165_v50  ;;  %vm230_vm10 = vcmp.ge.f32.partialorder %v166_v51, 0.0  ;;  %v294_v60 = vmul.f32 0.2, %v166_v51 }
  0x11   :  { %v356_v62 = vsel %vm228_vm8, %v164_v49, %v292_v58 }
  0x12   :  { %v357_v6 = vsel %vm229_vm9, %v165_v50, %v293_v59  ;;  %v358_v7 = vsel %vm230_vm10, %v166_v51, %v294_v60 }
  0x13   :  { %v25_v43 = vld [vmem:[%s1030_s0 + $0x58] sm:$0xff]  ;;  %v26_v44 = vld [vmem:[%s1030_s0 + $0x60] sm:$0xff]  ;;  %v27_v45 = vld [vmem:[%s1030_s0 + $0x68] sm:$0xff] }
  0x14   :  { %416 = vst [vmem:[%s1033_s3 + $0x20] sm:$0xff] %v352_v39  ;;  %417 = vst [vmem:[%s1033_s3 + $0x28] sm:$0xff] %v353_v46  ;;  %v96_v53 = vmul.f32 %v508_v1, %v25_v43  ;;  %v97_v54 = vmul.f32 %v508_v1, %v26_v44  ;;  %v98_v55 = vmul.f32 %v508_v1, %v27_v45 }
  0x16   :  { %v167_v61 = vadd.f32 %v513_v2, %v96_v53  ;;  %v168_v63 = vadd.f32 %v513_v2, %v97_v54  ;;  %v169_v0 = vadd.f32 %v513_v2, %v98_v55 }
  0x18   :  { %vm231_vm11 = vcmp.ge.f32.partialorder %v167_v61, 0.0  ;;  %v295_v8 = vmul.f32 0.2, %v167_v61  ;;  %vm232_vm12 = vcmp.ge.f32.partialorder %v168_v63, 0.0  ;;  %v296_v11 = vmul.f32 0.2, %v168_v63 }
  0x19   :  { %vm233_vm13 = vcmp.ge.f32.partialorder %v169_v0, 0.0  ;;  %v297_v12 = vmul.f32 0.2, %v169_v0 }
  0x1a   :  { %v359_v13 = vsel %vm231_vm11, %v167_v61, %v295_v8  ;;  %v360_v19 = vsel %vm232_vm12, %v168_v63, %v296_v11 }
  0x1b   :  { %v28_v56 = vld [vmem:[%s1030_s0 + $0x70] sm:$0xff]  ;;  %v361_v20 = vsel %vm233_vm13, %v169_v0, %v297_v12 }
  0x1c   :  { %418 = vst [vmem:[%s1033_s3 + $0x30] sm:$0xff] %v354_v52  ;;  %419 = vst [vmem:[%s1033_s3 + $0x38] sm:$0xff] %v355_v57  ;;  %v99_v3 = vmul.f32 %v508_v1, %v28_v56 }
  0x1e   :  { %v170_v14 = vadd.f32 %v513_v2, %v99_v3 }
  0x20   :  { %vm234_vm14 = vcmp.ge.f32.partialorder %v170_v14, 0.0  ;;  %v298_v23 = vmul.f32 0.2, %v170_v14 }
  0x22   :  { %v362_v30 = vsel %vm234_vm14, %v170_v14, %v298_v23 }
  0x23   :  { %v29_v4 = vld [vmem:[%s1030_s0 + $0x78] sm:$0xff]  ;;  %v30_v5 = vld [vmem:[%s1030_s0 + $0x80] sm:$0xff] }
  0x24   :  { %420 = vst [vmem:[%s1033_s3 + $0x40] sm:$0xff] %v356_v62  ;;  %v100_v15 = vmul.f32 %v508_v1, %v29_v4  ;;  %v101_v16 = vmul.f32 %v508_v1, %v30_v5 }
  0x26   :  { %v171_v24 = vadd.f32 %v513_v2, %v100_v15  ;;  %v172_v25 = vadd.f32 %v513_v2, %v101_v16 }
  0x28   :  { %vm235_vm15 = vcmp.ge.f32.partialorder %v171_v24, 0.0  ;;  %v299_v31 = vmul.f32 0.2, %v171_v24  ;;  %vm236_vm0 = vcmp.ge.f32.partialorder %v172_v25, 0.0  ;;  %v300_v34 = vmul.f32 0.2, %v172_v25 }
  0x2a   :  { %v363_v36 = vsel %vm235_vm15, %v171_v24, %v299_v31  ;;  %v364_v41 = vsel %vm236_vm0, %v172_v25, %v300_v34 }
  0x2b   :  { %v31_v9 = vld [vmem:[%s1030_s0 + $0x88] sm:$0xff]  ;;  %v32_v10 = vld [vmem:[%s1030_s0 + $0x90] sm:$0xff] }
  0x2c   :  { %421 = vst [vmem:[%s1033_s3 + $0x48] sm:$0xff] %v357_v6  ;;  %422 = vst [vmem:[%s1033_s3 + $0x50] sm:$0xff] %v358_v7  ;;  %v102_v21 = vmul.f32 %v508_v1, %v31_v9  ;;  %v103_v22 = vmul.f32 %v508_v1, %v32_v10 }
  0x2e   :  { %v173_v26 = vadd.f32 %v513_v2, %v102_v21  ;;  %v174_v27 = vadd.f32 %v513_v2, %v103_v22 }
  0x30   :  { %vm237_vm1 = vcmp.ge.f32.partialorder %v173_v26, 0.0  ;;  %v301_v35 = vmul.f32 0.2, %v173_v26  ;;  %vm238_vm2 = vcmp.ge.f32.partialorder %v174_v27, 0.0  ;;  %v302_v37 = vmul.f32 0.2, %v174_v27 }
  0x32   :  { %v365_v42 = vsel %vm237_vm1, %v173_v26, %v301_v35  ;;  %v366_v48 = vsel %vm238_vm2, %v174_v27, %v302_v37 }
  0x33   :  { %v33_v17 = vld [vmem:[%s1030_s0 + $0x98] sm:$0xff]  ;;  %v34_v18 = vld [vmem:[%s1030_s0 + $0xa0] sm:$0xff] }
  0x34   :  { %423 = vst [vmem:[%s1033_s3 + $0x58] sm:$0xff] %v359_v13  ;;  %424 = vst [vmem:[%s1033_s3 + $0x60] sm:$0xff] %v360_v19  ;;  %v104_v28 = vmul.f32 %v508_v1, %v33_v17  ;;  %v105_v29 = vmul.f32 %v508_v1, %v34_v18 }
  0x35   :  { %425 = vst [vmem:[%s1033_s3 + $0x68] sm:$0xff] %v361_v20 }
  0x36   :  { %v175_v38 = vadd.f32 %v513_v2, %v104_v28  ;;  %v176_v39 = vadd.f32 %v513_v2, %v105_v29 }
  0x38   :  { %vm239_vm3 = vcmp.ge.f32.partialorder %v175_v38, 0.0  ;;  %v303_v49 = vmul.f32 0.2, %v175_v38  ;;  %vm240_vm4 = vcmp.ge.f32.partialorder %v176_v39, 0.0  ;;  %v304_v50 = vmul.f32 0.2, %v176_v39 }
  0x3a   :  { %v367_v54 = vsel %vm239_vm3, %v175_v38, %v303_v49  ;;  %v368_v60 = vsel %vm240_vm4, %v176_v39, %v304_v50 }
  0x3c   :  { %v35_v32 = vld [vmem:[%s1030_s0 + $0xa8] sm:$0xff]  ;;  %v36_v33 = vld [vmem:[%s1030_s0 + $0xb0] sm:$0xff] }
  0x3d   :  { %426 = vst [vmem:[%s1033_s3 + $0x70] sm:$0xff] %v362_v30  ;;  %v106_v43 = vmul.f32 %v508_v1, %v35_v32  ;;  %v107_v44 = vmul.f32 %v508_v1, %v36_v33 }
  0x3f   :  { %v177_v51 = vadd.f32 %v513_v2, %v106_v43  ;;  %v178_v52 = vadd.f32 %v513_v2, %v107_v44 }
  0x41   :  { %vm241_vm5 = vcmp.ge.f32.partialorder %v177_v51, 0.0  ;;  %v305_v61 = vmul.f32 0.2, %v177_v51  ;;  %vm242_vm6 = vcmp.ge.f32.partialorder %v178_v52, 0.0  ;;  %v306_v62 = vmul.f32 0.2, %v178_v52 }
  0x43   :  { %v369_v4 = vsel %vm241_vm5, %v177_v51, %v305_v61  ;;  %v370_v8 = vsel %vm242_vm6, %v178_v52, %v306_v62 }
  0x44   :  { %v37_v40 = vld [vmem:[%s1030_s0 + $0xb8] sm:$0xff] }
  0x45   :  { %427 = vst [vmem:[%s1033_s3 + $0x78] sm:$0xff] %v363_v36  ;;  %v108_v53 = vmul.f32 %v508_v1, %v37_v40 }
  0x47   :  { %v179_v63 = vadd.f32 %v513_v2, %v108_v53 }
  0x49   :  { %vm243_vm7 = vcmp.ge.f32.partialorder %v179_v63, 0.0  ;;  %v307_v9 = vmul.f32 0.2, %v179_v63 }
  0x4b   :  { %v371_v14 = vsel %vm243_vm7, %v179_v63, %v307_v9 }
  0x4c   :  { %v38_v45 = vld [vmem:[%s1030_s0 + $0xc0] sm:$0xff]  ;;  %v39_v46 = vld [vmem:[%s1030_s0 + $0xc8] sm:$0xff]  ;;  %v40_v47 = vld [vmem:[%s1030_s0 + $0xd0] sm:$0xff] }
  0x4d   :  { %428 = vst [vmem:[%s1033_s3 + $0x80] sm:$0xff] %v364_v41  ;;  %429 = vst [vmem:[%s1033_s3 + $0x88] sm:$0xff] %v365_v42  ;;  %v109_v55 = vmul.f32 %v508_v1, %v38_v45  ;;  %v110_v56 = vmul.f32 %v508_v1, %v39_v46  ;;  %v111_v57 = vmul.f32 %v508_v1, %v40_v47 }
  0x4e   :  { %430 = vst [vmem:[%s1033_s3 + $0x90] sm:$0xff] %v366_v48 }
  0x4f   :  { %v180_v0 = vadd.f32 %v513_v2, %v109_v55  ;;  %v181_v3 = vadd.f32 %v513_v2, %v110_v56  ;;  %v182_v5 = vadd.f32 %v513_v2, %v111_v57 }
  0x51   :  { %vm244_vm8 = vcmp.ge.f32.partialorder %v180_v0, 0.0  ;;  %v308_v12 = vmul.f32 0.2, %v180_v0  ;;  %vm245_vm9 = vcmp.ge.f32.partialorder %v181_v3, 0.0  ;;  %v309_v13 = vmul.f32 0.2, %v181_v3 }
  0x52   :  { %vm246_vm10 = vcmp.ge.f32.partialorder %v182_v5, 0.0  ;;  %v310_v15 = vmul.f32 0.2, %v182_v5 }
  0x53   :  { %v372_v19 = vsel %vm244_vm8, %v180_v0, %v308_v12  ;;  %v373_v20 = vsel %vm245_vm9, %v181_v3, %v309_v13 }
  0x54   :  { %v374_v26 = vsel %vm246_vm10, %v182_v5, %v310_v15 }
  0x55   :  { %v41_v58 = vld [vmem:[%s1030_s0 + $0xd8] sm:$0xff]  ;;  %v42_v59 = vld [vmem:[%s1030_s0 + $0xe0] sm:$0xff] }
  0x56   :  { %431 = vst [vmem:[%s1033_s3 + $0x98] sm:$0xff] %v367_v54  ;;  %432 = vst [vmem:[%s1033_s3 + $0xa0] sm:$0xff] %v368_v60  ;;  %v112_v6 = vmul.f32 %v508_v1, %v41_v58  ;;  %v113_v7 = vmul.f32 %v508_v1, %v42_v59 }
  0x57   :  { %433 = vst [vmem:[%s1033_s3 + $0xa8] sm:$0xff] %v369_v4 }
  0x58   :  { %v183_v16 = vadd.f32 %v513_v2, %v112_v6  ;;  %v184_v17 = vadd.f32 %v513_v2, %v113_v7 }
  0x5a   :  { %vm247_vm11 = vcmp.ge.f32.partialorder %v183_v16, 0.0  ;;  %v311_v27 = vmul.f32 0.2, %v183_v16  ;;  %vm248_vm12 = vcmp.ge.f32.partialorder %v184_v17, 0.0  ;;  %v312_v28 = vmul.f32 0.2, %v184_v17 }
  0x5c   :  { %v375_v32 = vsel %vm247_vm11, %v183_v16, %v311_v27  ;;  %v376_v38 = vsel %vm248_vm12, %v184_v17, %v312_v28 }
  0x5e   :  { %v43_v10 = vld [vmem:[%s1030_s0 + $0xe8] sm:$0xff]  ;;  %v44_v11 = vld [vmem:[%s1030_s0 + $0xf0] sm:$0xff] }
  0x5f   :  { %434 = vst [vmem:[%s1033_s3 + $0xb0] sm:$0xff] %v370_v8  ;;  %v114_v21 = vmul.f32 %v508_v1, %v43_v10  ;;  %v115_v22 = vmul.f32 %v508_v1, %v44_v11 }
  0x61   :  { %v185_v29 = vadd.f32 %v513_v2, %v114_v21  ;;  %v186_v30 = vadd.f32 %v513_v2, %v115_v22 }
  0x63   :  { %vm249_vm13 = vcmp.ge.f32.partialorder %v185_v29, 0.0  ;;  %v313_v39 = vmul.f32 0.2, %v185_v29  ;;  %vm250_vm14 = vcmp.ge.f32.partialorder %v186_v30, 0.0  ;;  %v314_v40 = vmul.f32 0.2, %v186_v30 }
  0x65   :  { %v377_v44 = vsel %vm249_vm13, %v185_v29, %v313_v39  ;;  %v378_v48 = vsel %vm250_vm14, %v186_v30, %v314_v40 }
  0x66   :  { %v45_v18 = vld [vmem:[%s1030_s0 + $0xf8] sm:$0xff] }
  0x67   :  { %435 = vst [vmem:[%s1033_s3 + $0xb8] sm:$0xff] %v371_v14  ;;  %v116_v31 = vmul.f32 %v508_v1, %v45_v18 }
  0x69   :  { %v187_v41 = vadd.f32 %v513_v2, %v116_v31 }
  0x6b   :  { %vm251_vm15 = vcmp.ge.f32.partialorder %v187_v41, 0.0  ;;  %v315_v49 = vmul.f32 0.2, %v187_v41 }
  0x6d   :  { %v379_v54 = vsel %vm251_vm15, %v187_v41, %v315_v49 }
  0x6e   :  { %v46_v23 = vld [vmem:[%s1030_s0 + $0x100] sm:$0xff]  ;;  %v47_v24 = vld [vmem:[%s1030_s0 + $0x108] sm:$0xff]  ;;  %v48_v25 = vld [vmem:[%s1030_s0 + $0x110] sm:$0xff] }
  0x6f   :  { %436 = vst [vmem:[%s1033_s3 + $0xc0] sm:$0xff] %v372_v19  ;;  %437 = vst [vmem:[%s1033_s3 + $0xc8] sm:$0xff] %v373_v20  ;;  %v117_v33 = vmul.f32 %v508_v1, %v46_v23  ;;  %v118_v34 = vmul.f32 %v508_v1, %v47_v24  ;;  %v119_v35 = vmul.f32 %v508_v1, %v48_v25 }
  0x70   :  { %438 = vst [vmem:[%s1033_s3 + $0xd0] sm:$0xff] %v374_v26 }
  0x71   :  { %v188_v42 = vadd.f32 %v513_v2, %v117_v33  ;;  %v189_v43 = vadd.f32 %v513_v2, %v118_v34  ;;  %v190_v45 = vadd.f32 %v513_v2, %v119_v35 }
  0x73   :  { %vm252_vm0 = vcmp.ge.f32.partialorder %v188_v42, 0.0  ;;  %v316_v52 = vmul.f32 0.2, %v188_v42  ;;  %vm253_vm1 = vcmp.ge.f32.partialorder %v189_v43, 0.0  ;;  %v317_v53 = vmul.f32 0.2, %v189_v43 }
  0x74   :  { %vm254_vm2 = vcmp.ge.f32.partialorder %v190_v45, 0.0  ;;  %v318_v55 = vmul.f32 0.2, %v190_v45 }
  0x75   :  { %v380_v59 = vsel %vm252_vm0, %v188_v42, %v316_v52  ;;  %v381_v60 = vsel %vm253_vm1, %v189_v43, %v317_v53 }
  0x76   :  { %v382_v4 = vsel %vm254_vm2, %v190_v45, %v318_v55 }
  0x77   :  { %v49_v36 = vld [vmem:[%s1030_s0 + $0x118] sm:$0xff]  ;;  %v50_v37 = vld [vmem:[%s1030_s0 + $0x120] sm:$0xff] }
  0x78   :  { %439 = vst [vmem:[%s1033_s3 + $0xd8] sm:$0xff] %v375_v32  ;;  %440 = vst [vmem:[%s1033_s3 + $0xe0] sm:$0xff] %v376_v38  ;;  %v120_v46 = vmul.f32 %v508_v1, %v49_v36  ;;  %v121_v47 = vmul.f32 %v508_v1, %v50_v37 }
  0x79   :  { %441 = vst [vmem:[%s1033_s3 + $0xe8] sm:$0xff] %v377_v44 }
  0x7a   :  { %v191_v56 = vadd.f32 %v513_v2, %v120_v46  ;;  %v192_v57 = vadd.f32 %v513_v2, %v121_v47 }
  0x7c   :  { %vm255_vm3 = vcmp.ge.f32.partialorder %v191_v56, 0.0  ;;  %v319_v5 = vmul.f32 0.2, %v191_v56  ;;  %vm256_vm4 = vcmp.ge.f32.partialorder %v192_v57, 0.0  ;;  %v320_v6 = vmul.f32 0.2, %v192_v57 }
  0x7e   :  { %v383_v10 = vsel %vm255_vm3, %v191_v56, %v319_v5  ;;  %v384_v16 = vsel %vm256_vm4, %v192_v57, %v320_v6 }
  0x80   :  { %v51_v50 = vld [vmem:[%s1030_s0 + $0x128] sm:$0xff]  ;;  %v52_v51 = vld [vmem:[%s1030_s0 + $0x130] sm:$0xff] }
  0x81   :  { %442 = vst [vmem:[%s1033_s3 + $0xf0] sm:$0xff] %v378_v48  ;;  %v122_v61 = vmul.f32 %v508_v1, %v51_v50  ;;  %v123_v62 = vmul.f32 %v508_v1, %v52_v51 }
  0x83   :  { %v193_v7 = vadd.f32 %v513_v2, %v122_v61  ;;  %v194_v8 = vadd.f32 %v513_v2, %v123_v62 }
  0x85   :  { %vm257_vm5 = vcmp.ge.f32.partialorder %v193_v7, 0.0  ;;  %v321_v17 = vmul.f32 0.2, %v193_v7  ;;  %vm258_vm6 = vcmp.ge.f32.partialorder %v194_v8, 0.0  ;;  %v322_v18 = vmul.f32 0.2, %v194_v8 }
  0x87   :  { %v385_v22 = vsel %vm257_vm5, %v193_v7, %v321_v17  ;;  %v386_v26 = vsel %vm258_vm6, %v194_v8, %v322_v18 }
  0x88   :  { %v53_v58 = vld [vmem:[%s1030_s0 + $0x138] sm:$0xff] }
  0x89   :  { %443 = vst [vmem:[%s1033_s3 + $0xf8] sm:$0xff] %v379_v54  ;;  %v124_v9 = vmul.f32 %v508_v1, %v53_v58 }
  0x8b   :  { %v195_v19 = vadd.f32 %v513_v2, %v124_v9 }
  0x8d   :  { %vm259_vm7 = vcmp.ge.f32.partialorder %v195_v19, 0.0  ;;  %v323_v27 = vmul.f32 0.2, %v195_v19 }
  0x8f   :  { %v387_v32 = vsel %vm259_vm7, %v195_v19, %v323_v27 }
  0x90   :  { %v54_v63 = vld [vmem:[%s1030_s0 + $0x140] sm:$0xff]  ;;  %v55_v0 = vld [vmem:[%s1030_s0 + $0x148] sm:$0xff]  ;;  %v56_v3 = vld [vmem:[%s1030_s0 + $0x150] sm:$0xff] }
  0x91   :  { %444 = vst [vmem:[%s1033_s3 + $0x100] sm:$0xff] %v380_v59  ;;  %445 = vst [vmem:[%s1033_s3 + $0x108] sm:$0xff] %v381_v60  ;;  %v125_v11 = vmul.f32 %v508_v1, %v54_v63  ;;  %v126_v12 = vmul.f32 %v508_v1, %v55_v0  ;;  %v127_v13 = vmul.f32 %v508_v1, %v56_v3 }
  0x92   :  { %446 = vst [vmem:[%s1033_s3 + $0x110] sm:$0xff] %v382_v4 }
  0x93   :  { %v196_v20 = vadd.f32 %v513_v2, %v125_v11  ;;  %v197_v21 = vadd.f32 %v513_v2, %v126_v12  ;;  %v198_v23 = vadd.f32 %v513_v2, %v127_v13 }
  0x95   :  { %vm260_vm8 = vcmp.ge.f32.partialorder %v196_v20, 0.0  ;;  %v324_v30 = vmul.f32 0.2, %v196_v20  ;;  %vm261_vm9 = vcmp.ge.f32.partialorder %v197_v21, 0.0  ;;  %v325_v31 = vmul.f32 0.2, %v197_v21 }
  0x96   :  { %vm262_vm10 = vcmp.ge.f32.partialorder %v198_v23, 0.0  ;;  %v326_v33 = vmul.f32 0.2, %v198_v23 }
  0x97   :  { %v388_v37 = vsel %vm260_vm8, %v196_v20, %v324_v30  ;;  %v389_v38 = vsel %vm261_vm9, %v197_v21, %v325_v31 }
  0x98   :  { %v390_v44 = vsel %vm262_vm10, %v198_v23, %v326_v33 }
  0x99   :  { %v57_v14 = vld [vmem:[%s1030_s0 + $0x158] sm:$0xff]  ;;  %v58_v15 = vld [vmem:[%s1030_s0 + $0x160] sm:$0xff] }
  0x9a   :  { %447 = vst [vmem:[%s1033_s3 + $0x118] sm:$0xff] %v383_v10  ;;  %448 = vst [vmem:[%s1033_s3 + $0x120] sm:$0xff] %v384_v16  ;;  %v128_v24 = vmul.f32 %v508_v1, %v57_v14  ;;  %v129_v25 = vmul.f32 %v508_v1, %v58_v15 }
  0x9b   :  { %449 = vst [vmem:[%s1033_s3 + $0x128] sm:$0xff] %v385_v22 }
  0x9c   :  { %v199_v34 = vadd.f32 %v513_v2, %v128_v24  ;;  %v200_v35 = vadd.f32 %v513_v2, %v129_v25 }
  0x9e   :  { %vm263_vm11 = vcmp.ge.f32.partialorder %v199_v34, 0.0  ;;  %v327_v45 = vmul.f32 0.2, %v199_v34  ;;  %vm264_vm12 = vcmp.ge.f32.partialorder %v200_v35, 0.0  ;;  %v328_v46 = vmul.f32 0.2, %v200_v35 }
  0xa0   :  { %v391_v50 = vsel %vm263_vm11, %v199_v34, %v327_v45  ;;  %v392_v56 = vsel %vm264_vm12, %v200_v35, %v328_v46 }
  0xa2   :  { %v59_v28 = vld [vmem:[%s1030_s0 + $0x168] sm:$0xff]  ;;  %v60_v29 = vld [vmem:[%s1030_s0 + $0x170] sm:$0xff] }
  0xa3   :  { %450 = vst [vmem:[%s1033_s3 + $0x130] sm:$0xff] %v386_v26  ;;  %v130_v39 = vmul.f32 %v508_v1, %v59_v28  ;;  %v131_v40 = vmul.f32 %v508_v1, %v60_v29 }
  0xa5   :  { %v201_v47 = vadd.f32 %v513_v2, %v130_v39  ;;  %v202_v48 = vadd.f32 %v513_v2, %v131_v40 }
  0xa7   :  { %vm265_vm13 = vcmp.ge.f32.partialorder %v201_v47, 0.0  ;;  %v329_v57 = vmul.f32 0.2, %v201_v47  ;;  %vm266_vm14 = vcmp.ge.f32.partialorder %v202_v48, 0.0  ;;  %v330_v58 = vmul.f32 0.2, %v202_v48 }
  0xa9   :  { %v393_v62 = vsel %vm265_vm13, %v201_v47, %v329_v57  ;;  %v394_v4 = vsel %vm266_vm14, %v202_v48, %v330_v58 }
  0xaa   :  { %v61_v36 = vld [vmem:[%s1030_s0 + $0x178] sm:$0xff] }
  0xab   :  { %451 = vst [vmem:[%s1033_s3 + $0x138] sm:$0xff] %v387_v32  ;;  %v132_v49 = vmul.f32 %v508_v1, %v61_v36 }
  0xad   :  { %v203_v59 = vadd.f32 %v513_v2, %v132_v49 }
  0xaf   :  { %vm267_vm15 = vcmp.ge.f32.partialorder %v203_v59, 0.0  ;;  %v331_v5 = vmul.f32 0.2, %v203_v59 }
  0xb1   :  { %v395_v10 = vsel %vm267_vm15, %v203_v59, %v331_v5 }
  0xb2   :  { %v62_v41 = vld [vmem:[%s1030_s0 + $0x180] sm:$0xff]  ;;  %v63_v42 = vld [vmem:[%s1030_s0 + $0x188] sm:$0xff]  ;;  %v64_v43 = vld [vmem:[%s1030_s0 + $0x190] sm:$0xff] }
  0xb3   :  { %452 = vst [vmem:[%s1033_s3 + $0x140] sm:$0xff] %v388_v37  ;;  %453 = vst [vmem:[%s1033_s3 + $0x148] sm:$0xff] %v389_v38  ;;  %v133_v51 = vmul.f32 %v508_v1, %v62_v41  ;;  %v134_v52 = vmul.f32 %v508_v1, %v63_v42  ;;  %v135_v53 = vmul.f32 %v508_v1, %v64_v43 }
  0xb4   :  { %454 = vst [vmem:[%s1033_s3 + $0x150] sm:$0xff] %v390_v44 }
  0xb5   :  { %v204_v60 = vadd.f32 %v513_v2, %v133_v51  ;;  %v205_v61 = vadd.f32 %v513_v2, %v134_v52  ;;  %v206_v63 = vadd.f32 %v513_v2, %v135_v53 }
  0xb7   :  { %vm268_vm0 = vcmp.ge.f32.partialorder %v204_v60, 0.0  ;;  %v332_v8 = vmul.f32 0.2, %v204_v60  ;;  %vm269_vm1 = vcmp.ge.f32.partialorder %v205_v61, 0.0  ;;  %v333_v9 = vmul.f32 0.2, %v205_v61 }
  0xb8   :  { %vm270_vm2 = vcmp.ge.f32.partialorder %v206_v63, 0.0  ;;  %v334_v11 = vmul.f32 0.2, %v206_v63 }
  0xb9   :  { %v396_v15 = vsel %vm268_vm0, %v204_v60, %v332_v8  ;;  %v397_v16 = vsel %vm269_vm1, %v205_v61, %v333_v9 }
  0xba   :  { %v398_v22 = vsel %vm270_vm2, %v206_v63, %v334_v11 }
  0xbb   :  { %v65_v54 = vld [vmem:[%s1030_s0 + $0x198] sm:$0xff]  ;;  %v66_v55 = vld [vmem:[%s1030_s0 + $0x1a0] sm:$0xff] }
  0xbc   :  { %455 = vst [vmem:[%s1033_s3 + $0x158] sm:$0xff] %v391_v50  ;;  %456 = vst [vmem:[%s1033_s3 + $0x160] sm:$0xff] %v392_v56  ;;  %v136_v0 = vmul.f32 %v508_v1, %v65_v54  ;;  %v137_v3 = vmul.f32 %v508_v1, %v66_v55 }
  0xbd   :  { %457 = vst [vmem:[%s1033_s3 + $0x168] sm:$0xff] %v393_v62 }
  0xbe   :  { %v207_v12 = vadd.f32 %v513_v2, %v136_v0  ;;  %v208_v13 = vadd.f32 %v513_v2, %v137_v3 }
  0xc0   :  { %vm271_vm3 = vcmp.ge.f32.partialorder %v207_v12, 0.0  ;;  %v335_v23 = vmul.f32 0.2, %v207_v12  ;;  %vm272_vm4 = vcmp.ge.f32.partialorder %v208_v13, 0.0  ;;  %v336_v24 = vmul.f32 0.2, %v208_v13 }
  0xc2   :  { %v399_v28 = vsel %vm271_vm3, %v207_v12, %v335_v23  ;;  %v400_v34 = vsel %vm272_vm4, %v208_v13, %v336_v24 }
  0xc4   :  { %v67_v6 = vld [vmem:[%s1030_s0 + $0x1a8] sm:$0xff]  ;;  %v68_v7 = vld [vmem:[%s1030_s0 + $0x1b0] sm:$0xff] }
  0xc5   :  { %458 = vst [vmem:[%s1033_s3 + $0x170] sm:$0xff] %v394_v4  ;;  %v138_v17 = vmul.f32 %v508_v1, %v67_v6  ;;  %v139_v18 = vmul.f32 %v508_v1, %v68_v7 }
  0xc7   :  { %v209_v25 = vadd.f32 %v513_v2, %v138_v17  ;;  %v210_v26 = vadd.f32 %v513_v2, %v139_v18 }
  0xc9   :  { %vm273_vm5 = vcmp.ge.f32.partialorder %v209_v25, 0.0  ;;  %v337_v35 = vmul.f32 0.2, %v209_v25  ;;  %vm274_vm6 = vcmp.ge.f32.partialorder %v210_v26, 0.0  ;;  %v338_v36 = vmul.f32 0.2, %v210_v26 }
  0xcb   :  { %v401_v40 = vsel %vm273_vm5, %v209_v25, %v337_v35  ;;  %v402_v44 = vsel %vm274_vm6, %v210_v26, %v338_v36 }
  0xcc   :  { %v69_v14 = vld [vmem:[%s1030_s0 + $0x1b8] sm:$0xff] }
  0xcd   :  { %459 = vst [vmem:[%s1033_s3 + $0x178] sm:$0xff] %v395_v10  ;;  %v140_v27 = vmul.f32 %v508_v1, %v69_v14 }
  0xcf   :  { %v211_v37 = vadd.f32 %v513_v2, %v140_v27 }
  0xd1   :  { %vm275_vm7 = vcmp.ge.f32.partialorder %v211_v37, 0.0  ;;  %v339_v45 = vmul.f32 0.2, %v211_v37 }
  0xd3   :  { %v403_v50 = vsel %vm275_vm7, %v211_v37, %v339_v45 }
  0xd4   :  { %v70_v19 = vld [vmem:[%s1030_s0 + $0x1c0] sm:$0xff]  ;;  %v71_v20 = vld [vmem:[%s1030_s0 + $0x1c8] sm:$0xff]  ;;  %v72_v21 = vld [vmem:[%s1030_s0 + $0x1d0] sm:$0xff] }
  0xd5   :  { %460 = vst [vmem:[%s1033_s3 + $0x180] sm:$0xff] %v396_v15  ;;  %461 = vst [vmem:[%s1033_s3 + $0x188] sm:$0xff] %v397_v16  ;;  %v141_v29 = vmul.f32 %v508_v1, %v70_v19  ;;  %v142_v30 = vmul.f32 %v508_v1, %v71_v20  ;;  %v143_v31 = vmul.f32 %v508_v1, %v72_v21 }
  0xd6   :  { %462 = vst [vmem:[%s1033_s3 + $0x190] sm:$0xff] %v398_v22 }
  0xd7   :  { %v212_v38 = vadd.f32 %v513_v2, %v141_v29  ;;  %v213_v39 = vadd.f32 %v513_v2, %v142_v30  ;;  %v214_v41 = vadd.f32 %v513_v2, %v143_v31 }
  0xd9   :  { %vm276_vm8 = vcmp.ge.f32.partialorder %v212_v38, 0.0  ;;  %v340_v48 = vmul.f32 0.2, %v212_v38  ;;  %vm277_vm9 = vcmp.ge.f32.partialorder %v213_v39, 0.0  ;;  %v341_v49 = vmul.f32 0.2, %v213_v39 }
  0xda   :  { %vm278_vm10 = vcmp.ge.f32.partialorder %v214_v41, 0.0  ;;  %v342_v51 = vmul.f32 0.2, %v214_v41 }
  0xdb   :  { %v404_v55 = vsel %vm276_vm8, %v212_v38, %v340_v48  ;;  %v405_v56 = vsel %vm277_vm9, %v213_v39, %v341_v49 }
  0xdc   :  { %v406_v59 = vsel %vm278_vm10, %v214_v41, %v342_v51 }
  0xdd   :  { %v73_v32 = vld [vmem:[%s1030_s0 + $0x1d8] sm:$0xff]  ;;  %v74_v33 = vld [vmem:[%s1030_s0 + $0x1e0] sm:$0xff] }
  0xde   :  { %463 = vst [vmem:[%s1033_s3 + $0x198] sm:$0xff] %v399_v28  ;;  %464 = vst [vmem:[%s1033_s3 + $0x1a0] sm:$0xff] %v400_v34  ;;  %v144_v42 = vmul.f32 %v508_v1, %v73_v32  ;;  %v145_v43 = vmul.f32 %v508_v1, %v74_v33 }
  0xdf   :  { %465 = vst [vmem:[%s1033_s3 + $0x1a8] sm:$0xff] %v401_v40 }
  0xe0   :  { %v215_v52 = vadd.f32 %v513_v2, %v144_v42  ;;  %v216_v53 = vadd.f32 %v513_v2, %v145_v43 }
  0xe2   :  { %vm279_vm11 = vcmp.ge.f32.partialorder %v215_v52, 0.0  ;;  %v343_v60 = vmul.f32 0.2, %v215_v52  ;;  %vm280_vm12 = vcmp.ge.f32.partialorder %v216_v53, 0.0  ;;  %v344_v61 = vmul.f32 0.2, %v216_v53 }
  0xe4   :  { %v407_v3 = vsel %vm279_vm11, %v215_v52, %v343_v60  ;;  %v408_v4 = vsel %vm280_vm12, %v216_v53, %v344_v61 }
  0xe6   :  { %v75_v46 = vld [vmem:[%s1030_s0 + $0x1e8] sm:$0xff]  ;;  %v76_v47 = vld [vmem:[%s1030_s0 + $0x1f0] sm:$0xff] }
  0xe7   :  { %466 = vst [vmem:[%s1033_s3 + $0x1b0] sm:$0xff] %v402_v44  ;;  %v146_v57 = vmul.f32 %v508_v1, %v75_v46  ;;  %v147_v58 = vmul.f32 %v508_v1, %v76_v47 }
  0xe9   :  { %v217_v62 = vadd.f32 %v513_v2, %v146_v57  ;;  %v218_v63 = vadd.f32 %v513_v2, %v147_v58 }
  0xeb   :  { %vm281_vm13 = vcmp.ge.f32.partialorder %v217_v62, 0.0  ;;  %v345_v5 = vmul.f32 0.2, %v217_v62  ;;  %vm282_vm14 = vcmp.ge.f32.partialorder %v218_v63, 0.0  ;;  %v346_v6 = vmul.f32 0.2, %v218_v63 }
  0xed   :  { %v409_v8 = vsel %vm281_vm13, %v217_v62, %v345_v5 }
  0xee   :  { %v77_v54 = vld [vmem:[%s1030_s0 + $0x1f8] sm:$0xff] }
  0xef   :  { %467 = vst [vmem:[%s1033_s3 + $0x1b8] sm:$0xff] %v403_v50  ;;  %468 = vst [vmem:[%s1033_s3 + $0x1c0] sm:$0xff] %v404_v55  ;;  %v148_v0 = vmul.f32 %v508_v1, %v77_v54  ;;  %v410_v1 = vsel %vm282_vm14, %v218_v63, %v346_v6 }
  0xf0   :  { %469 = vst [vmem:[%s1033_s3 + $0x1c8] sm:$0xff] %v405_v56  ;;  %470 = vst [vmem:[%s1033_s3 + $0x1d0] sm:$0xff] %v406_v59 }
  0xf1   :  { %471 = vst [vmem:[%s1033_s3 + $0x1d8] sm:$0xff] %v407_v3  ;;  %472 = vst [vmem:[%s1033_s3 + $0x1e0] sm:$0xff] %v408_v4  ;;  %v219_v7 = vadd.f32 %v513_v2, %v148_v0 }
  0xf2   :  { %473 = vst [vmem:[%s1033_s3 + $0x1e8] sm:$0xff] %v409_v8  ;;  %474 = vst [vmem:[%s1033_s3 + $0x1f0] sm:$0xff] %v410_v1 }
  0xf3   :  { %vm283_vm15 = vcmp.ge.f32.partialorder %v219_v7, 0.0  ;;  %v347_v9 = vmul.f32 0.2, %v219_v7 }
  0xf5   :  { %v411_v10 = vsel %vm283_vm15, %v219_v7, %v347_v9 }
  0xf6   :  { %475 = vst [vmem:[%s1033_s3 + $0x1f8] sm:$0xff] %v411_v10 }

// kernel: dcgan_discriminator_forward.11
= control target key start
LH: loop header
LB: loop body
LE: loop exit
PB: predicated region body
PF: predicated region fallthrough
CT: control target
= control target key end

     0   :  { %s1276_s1 = inlined_call_operand.vmem [shape: bf16[512,128], index: 1, kind: input, shape index: {}]   ;;  %s1277_s0 = inlined_call_operand.vmem [shape: bf16[128,512], index: 0, kind: input, shape index: {}]   ;;  %s1278_s2 = inlined_call_operand.vmem [shape: f32[128,128], index: 2, kind: output, shape index: {0}]   ;;  %s1279_s3 = inlined_call_operand.vmem [shape: f32[1,8,128], index: 3, kind: output, shape index: {1}]   ;;  %s1280_s4 = inlined_call_operand.vmem [shape: f32[1,8,128], index: 4, kind: output, shape index: {2}]  }
   0x1   :  { %v925_v0 = vld [vmem:[%s1276_s1 + $0x40] sm:$0xff]   ;;  %v929_v4 = vld [vmem:[%s1276_s1 + $0x48] sm:$0xff]   ;;  %v933_v8 = vld [vmem:[%s1276_s1 + $0x50] sm:$0xff]  }
   0x2   :  { %v926_v1 = vld [vmem:[%s1276_s1 + $0xc0] sm:$0xff]   ;;  %797 = vmatprep.subr.bf16.mxu0 %v925_v0  ;;  %v930_v5 = vld [vmem:[%s1276_s1 + $0xc8] sm:$0xff]   ;;  %v934_v9 = vld [vmem:[%s1276_s1 + $0xd0] sm:$0xff]  }
   0x3   :  { %v927_v2 = vld [vmem:[%s1276_s1] sm:$0xff]   ;;  %861 = vmatprep.subr.bf16.mxu1 %v926_v1  ;;  %v931_v6 = vld [vmem:[%s1276_s1 + $0x8] sm:$0xff]   ;;  %v935_v10 = vld [vmem:[%s1276_s1 + $0x10] sm:$0xff]  }
   0x4   :  { %v928_v3 = vld [vmem:[%s1276_s1 + $0x80] sm:$0xff]   ;;  %798 = vmatpush3.bf16.msra.mxu0 %v927_v2  ;;  %v932_v7 = vld [vmem:[%s1276_s1 + $0x88] sm:$0xff]   ;;  %v936_v11 = vld [vmem:[%s1276_s1 + $0x90] sm:$0xff]  }
   0x5   :  { %862 = vmatpush3.bf16.msra.mxu1 %v928_v3  ;;  %799 = vmatprep.subr.bf16.mxu0 %v929_v4  ;;  %v937_v12 = vld [vmem:[%s1276_s1 + $0x58] sm:$0xff]   ;;  %v941_v16 = vld [vmem:[%s1276_s1 + $0x60] sm:$0xff]   ;;  %v945_v20 = vld [vmem:[%s1276_s1 + $0x68] sm:$0xff]  }
   0x6   :  { %863 = vmatprep.subr.bf16.mxu1 %v930_v5  ;;  %v938_v13 = vld [vmem:[%s1276_s1 + $0xd8] sm:$0xff]   ;;  %v942_v17 = vld [vmem:[%s1276_s1 + $0xe0] sm:$0xff]   ;;  %v946_v21 = vld [vmem:[%s1276_s1 + $0xe8] sm:$0xff]  }
   0x7   :  { %v939_v14 = vld [vmem:[%s1276_s1 + $0x18] sm:$0xff]   ;;  %v943_v18 = vld [vmem:[%s1276_s1 + $0x20] sm:$0xff]   ;;  %v947_v22 = vld [vmem:[%s1276_s1 + $0x28] sm:$0xff]  }
   0x8   :  { %800 = vmatpush3.bf16.msra.mxu0 %v931_v6  ;;  %v940_v15 = vld [vmem:[%s1276_s1 + $0x98] sm:$0xff]   ;;  %v944_v19 = vld [vmem:[%s1276_s1 + $0xa0] sm:$0xff]   ;;  %v948_v23 = vld [vmem:[%s1276_s1 + $0xa8] sm:$0xff]  }
   0x9   :  { %864 = vmatpush3.bf16.msra.mxu1 %v932_v7  ;;  %801 = vmatprep.subr.bf16.mxu0 %v933_v8  ;;  %v949_v24 = vld [vmem:[%s1276_s1 + $0x70] sm:$0xff]   ;;  %v953_v28 = vld [vmem:[%s1276_s1 + $0x78] sm:$0xff]  }
   0xa   :  { %865 = vmatprep.subr.bf16.mxu1 %v934_v9  ;;  %v950_v25 = vld [vmem:[%s1276_s1 + $0xf0] sm:$0xff]   ;;  %v954_v29 = vld [vmem:[%s1276_s1 + $0xf8] sm:$0xff]  }
   0xb   :  { %v951_v26 = vld [vmem:[%s1276_s1 + $0x30] sm:$0xff]   ;;  %v955_v30 = vld [vmem:[%s1276_s1 + $0x38] sm:$0xff]  }
   0xc   :  { %802 = vmatpush3.bf16.msra.mxu0 %v935_v10  ;;  %v952_v27 = vld [vmem:[%s1276_s1 + $0xb0] sm:$0xff]   ;;  %v956_v31 = vld [vmem:[%s1276_s1 + $0xb8] sm:$0xff]  }
   0xd   :  { %866 = vmatpush3.bf16.msra.mxu1 %v936_v11  ;;  %803 = vmatprep.subr.bf16.mxu0 %v937_v12  ;;  %v957_v32 = vld [vmem:[%s1277_s0] ss:$16 sps:$4 sm:$0xff]   ;;  %v959_v33 = vld [vmem:[%s1277_s0 + $0x4] ss:$16 sps:$4 sm:$0xff]   ;;  %v960_v34 = vld [vmem:[%s1277_s0 + $0x8] ss:$16 sps:$4 sm:$0xff]  }
   0xe   :  { %867 = vmatprep.subr.bf16.mxu1 %v938_v13  ;;  %v962_v35 = vld [vmem:[%s1277_s0 + $0xc] ss:$16 sps:$4 sm:$0xff]   ;;  %495 = vmatprep.mubr.bf16.mxu0 %v959_v33  ;;  %v963_v36 = vld [vmem:[%s1277_s0 + $0x24] ss:$16 sps:$4 sm:$0xff]   ;;  %v967_v38 = vld [vmem:[%s1277_s0 + $0x20] ss:$16 sps:$4 sm:$0xff]  }
   0xf   :  { %592 = vmatprep.mubr.bf16.mxu1 %v962_v35  ;;  %v965_v37 = vld [vmem:[%s1277_s0 + $0x2c] ss:$16 sps:$4 sm:$0xff]   ;;  %v968_v39 = vld [vmem:[%s1277_s0 + $0x28] ss:$16 sps:$4 sm:$0xff]   ;;  %v969_v40 = vld [vmem:[%s1277_s0 + $0x44] ss:$16 sps:$4 sm:$0xff]  }
  0x10   :  { %804 = vmatpush3.bf16.msra.mxu0 %v939_v14  ;;  %v971_v41 = vld [vmem:[%s1277_s0 + $0x4c] ss:$16 sps:$4 sm:$0xff]   ;;  %v973_v42 = vld [vmem:[%s1277_s0 + $0x40] ss:$16 sps:$4 sm:$0xff]   ;;  %v974_v43 = vld [vmem:[%s1277_s0 + $0x48] ss:$16 sps:$4 sm:$0xff]  }
  0x11   :  { %868 = vmatpush3.bf16.msra.mxu1 %v940_v15  ;;  %805 = vmatprep.subr.bf16.mxu0 %v941_v16  ;;  %v975_v44 = vld [vmem:[%s1277_s0 + $0x64] ss:$16 sps:$4 sm:$0xff]   ;;  %v977_v45 = vld [vmem:[%s1277_s0 + $0x6c] ss:$16 sps:$4 sm:$0xff]   ;;  %v979_v46 = vld [vmem:[%s1277_s0 + $0x60] ss:$16 sps:$4 sm:$0xff]  }
  0x12   :  { %869 = vmatprep.subr.bf16.mxu1 %v942_v17  ;;  %v980_v47 = vld [vmem:[%s1277_s0 + $0x68] ss:$16 sps:$4 sm:$0xff]   ;;  %v981_v48 = vld [vmem:[%s1277_s0 + $0x84] ss:$16 sps:$4 sm:$0xff]   ;;  %v983_v49 = vld [vmem:[%s1277_s0 + $0x8c] ss:$16 sps:$4 sm:$0xff]  }
  0x13   :  { %v985_v50 = vld [vmem:[%s1277_s0 + $0x80] ss:$16 sps:$4 sm:$0xff]   ;;  %v986_v51 = vld [vmem:[%s1277_s0 + $0x88] ss:$16 sps:$4 sm:$0xff]   ;;  %v987_v52 = vld [vmem:[%s1277_s0 + $0xa4] ss:$16 sps:$4 sm:$0xff]  }
  0x14   :  { %806 = vmatpush3.bf16.msra.mxu0 %v943_v18  ;;  %v989_v53 = vld [vmem:[%s1277_s0 + $0xac] ss:$16 sps:$4 sm:$0xff]   ;;  %v991_v54 = vld [vmem:[%s1277_s0 + $0xa0] ss:$16 sps:$4 sm:$0xff]   ;;  %v992_v55 = vld [vmem:[%s1277_s0 + $0xa8] ss:$16 sps:$4 sm:$0xff]  }
  0x15   :  { %870 = vmatpush3.bf16.msra.mxu1 %v944_v19  ;;  %807 = vmatprep.subr.bf16.mxu0 %v945_v20  ;;  %v993_v56 = vld [vmem:[%s1277_s0 + $0xc4] ss:$16 sps:$4 sm:$0xff]   ;;  %v995_v57 = vld [vmem:[%s1277_s0 + $0xcc] ss:$16 sps:$4 sm:$0xff]   ;;  %v997_v58 = vld [vmem:[%s1277_s0 + $0xc0] ss:$16 sps:$4 sm:$0xff]  }
  0x16   :  { %871 = vmatprep.subr.bf16.mxu1 %v946_v21  ;;  %v998_v59 = vld [vmem:[%s1277_s0 + $0xc8] ss:$16 sps:$4 sm:$0xff]   ;;  %v999_v60 = vld [vmem:[%s1277_s0 + $0xe4] ss:$16 sps:$4 sm:$0xff]   ;;  %v1001_v61 = vld [vmem:[%s1277_s0 + $0xec] ss:$16 sps:$4 sm:$0xff]  }
  0x17   :  { %v1003_v62 = vld [vmem:[%s1277_s0 + $0xe0] ss:$16 sps:$4 sm:$0xff]   ;;  %v1004_v63 = vld [vmem:[%s1277_s0 + $0xe8] ss:$16 sps:$4 sm:$0xff]  }
  0x18   :  { %808 = vmatpush3.bf16.msra.mxu0 %v947_v22 }
  0x19   :  { %872 = vmatpush3.bf16.msra.mxu1 %v948_v23  ;;  %809 = vmatprep.subr.bf16.mxu0 %v949_v24 }
  0x1a   :  { %873 = vmatprep.subr.bf16.mxu1 %v950_v25 }
  0x1c   :  { %810 = vmatpush3.bf16.msra.mxu0 %v951_v26 }
  0x1d   :  { %874 = vmatpush3.bf16.msra.mxu1 %v952_v27  ;;  %811 = vmatprep.subr.bf16.mxu0 %v953_v28 }
  0x1e   :  { %875 = vmatprep.subr.bf16.mxu1 %v954_v29 }
  0x20   :  { %812 = vmatpush3.bf16.msra.mxu0 %v955_v30 }
  0x21   :  { %876 = vmatpush3.bf16.msra.mxu1 %v956_v31 }
  0x23   :  { %496 = vmatmul.mubr.bf16.vlgmr.msra.gmra.mrb[0].mxu0 %v957_v32 }
  0x24   :  { %593 = vmatmul.mubr.bf16.vlgmr.msra.gmra.mrb[0].mxu1 %v960_v34  ;;  %503 = vmatprep.mubr.bf16.mxu0 %v963_v36 }
  0x25   :  { %600 = vmatprep.mubr.bf16.mxu1 %v965_v37 }
  0x2b   :  { %504 = vmatmul.mubr.bf16.gmra.mrb[4].mxu0 %v967_v38 }
  0x2c   :  { %601 = vmatmul.mubr.bf16.gmra.mrb[4].mxu1 %v968_v39  ;;  %511 = vmatprep.mubr.bf16.mxu0 %v969_v40 }
  0x2d   :  { %608 = vmatprep.mubr.bf16.mxu1 %v971_v41 }
  0x33   :  { %512 = vmatmul.mubr.bf16.gmra.mrb[8].mxu0 %v973_v42 }
  0x34   :  { %609 = vmatmul.mubr.bf16.gmra.mrb[8].mxu1 %v974_v43  ;;  %519 = vmatprep.mubr.bf16.mxu0 %v975_v44 }
  0x35   :  { %616 = vmatprep.mubr.bf16.mxu1 %v977_v45 }
  0x3b   :  { %520 = vmatmul.mubr.bf16.gmra.mrb[12].mxu0 %v979_v46 }
  0x3c   :  { %617 = vmatmul.mubr.bf16.gmra.mrb[12].mxu1 %v980_v47  ;;  %527 = vmatprep.mubr.bf16.mxu0 %v981_v48 }
  0x3d   :  { %624 = vmatprep.mubr.bf16.mxu1 %v983_v49 }
  0x43   :  { %528 = vmatmul.mubr.bf16.gmra.mrb[16].mxu0 %v985_v50 }
  0x44   :  { %625 = vmatmul.mubr.bf16.gmra.mrb[16].mxu1 %v986_v51  ;;  %535 = vmatprep.mubr.bf16.mxu0 %v987_v52 }
  0x45   :  { %632 = vmatprep.mubr.bf16.mxu1 %v989_v53 }
  0x4b   :  { %536 = vmatmul.mubr.bf16.gmra.mrb[20].mxu0 %v991_v54 }
  0x4c   :  { %633 = vmatmul.mubr.bf16.gmra.mrb[20].mxu1 %v992_v55  ;;  %543 = vmatprep.mubr.bf16.mxu0 %v993_v56 }
  0x4d   :  { %640 = vmatprep.mubr.bf16.mxu1 %v995_v57 }
  0x53   :  { %544 = vmatmul.mubr.bf16.gmra.mrb[24].mxu0 %v997_v58 }
  0x54   :  { %641 = vmatmul.mubr.bf16.gmra.mrb[24].mxu1 %v998_v59  ;;  %551 = vmatprep.mubr.bf16.mxu0 %v999_v60 }
  0x55   :  { %648 = vmatprep.mubr.bf16.mxu1 %v1001_v61 }
  0x5b   :  { %552 = vmatmul.mubr.bf16.gmra.mrb[28].mxu0 %v1003_v62 }
  0x5c   :  { %649 = vmatmul.mubr.bf16.gmra.mrb[28].mxu1 %v1004_v63 }
  0xf6   :  { %v813_v0 = vpop.f32.mrb[0].mxu0 }
  0xf7   :  { %v877_v1 = vpop.f32.mrb[0].mxu1  ;;  %v814_v2 = vpop.f32.mrb[1].mxu0 }
  0xf8   :  { %v815_v3 = vadd.f32 %v814_v2, %v813_v0  ;;  %v878_v4 = vpop.f32.mrb[1].mxu1  ;;  %v816_v5 = vpop.f32.mrb[2].mxu0 }
  0xf9   :  { %v879_v6 = vadd.f32 %v878_v4, %v877_v1  ;;  %v880_v7 = vpop.f32.mrb[2].mxu1  ;;  %v817_v8 = vpop.f32.mrb[3].mxu0 }
  0xfa   :  { %v818_v9 = vadd.f32 %v817_v8, %v816_v5  ;;  %v881_v10 = vpop.f32.mrb[3].mxu1 }
  0xfb   :  { %v595_v11 = vadd.f32 %v879_v6, %v815_v3  ;;  %v882_v12 = vadd.f32 %v881_v10, %v880_v7 }
  0xfd   :  { %657 = vst [vmem:[%s1278_s2] sm:$0xff] %v595_v11  ;;  %v598_v13 = vadd.f32 %v882_v12, %v818_v9  ;;  %v689_v15 = vmul.f32 %v595_v11, %v595_v11 }
  0xfe   :  { %v819_v14 = vpop.f32.mrb[4].mxu0 }
  0xff   :  { %658 = vst [vmem:[%s1278_s2 + $0x8] sm:$0xff] %v598_v13  ;;  %v673_v16 = vadd.f32 %v598_v13, %v595_v11  ;;  %v690_v17 = vmul.f32 %v598_v13, %v598_v13  ;;  %v883_v18 = vpop.f32.mrb[4].mxu1  ;;  %v820_v19 = vpop.f32.mrb[5].mxu0 }
 0x100   :  { %v821_v20 = vadd.f32 %v820_v19, %v819_v14  ;;  %v884_v21 = vpop.f32.mrb[5].mxu1  ;;  %v822_v22 = vpop.f32.mrb[6].mxu0 }
 0x101   :  { %v705_v23 = vadd.f32 %v690_v17, %v689_v15  ;;  %v885_v24 = vadd.f32 %v884_v21, %v883_v18  ;;  %v886_v25 = vpop.f32.mrb[6].mxu1  ;;  %v823_v26 = vpop.f32.mrb[7].mxu0 }
 0x102   :  { %v824_v27 = vadd.f32 %v823_v26, %v822_v22  ;;  %v887_v28 = vpop.f32.mrb[7].mxu1 }
 0x103   :  { %v603_v29 = vadd.f32 %v885_v24, %v821_v20  ;;  %v888_v30 = vadd.f32 %v887_v28, %v886_v25 }
 0x105   :  { %659 = vst [vmem:[%s1278_s2 + $0x10] sm:$0xff] %v603_v29  ;;  %v674_v31 = vadd.f32 %v673_v16, %v603_v29  ;;  %v691_v32 = vmul.f32 %v603_v29, %v603_v29  ;;  %v606_v33 = vadd.f32 %v888_v30, %v824_v27 }
 0x106   :  { %v825_v34 = vpop.f32.mrb[8].mxu0 }
 0x107   :  { %v706_v35 = vadd.f32 %v705_v23, %v691_v32  ;;  %660 = vst [vmem:[%s1278_s2 + $0x18] sm:$0xff] %v606_v33  ;;  %v675_v36 = vadd.f32 %v674_v31, %v606_v33  ;;  %v692_v37 = vmul.f32 %v606_v33, %v606_v33  ;;  %v889_v38 = vpop.f32.mrb[8].mxu1  ;;  %v826_v39 = vpop.f32.mrb[9].mxu0 }
 0x108   :  { %v827_v40 = vadd.f32 %v826_v39, %v825_v34  ;;  %v890_v41 = vpop.f32.mrb[9].mxu1  ;;  %v828_v42 = vpop.f32.mrb[10].mxu0 }
 0x109   :  { %v707_v43 = vadd.f32 %v706_v35, %v692_v37  ;;  %v891_v44 = vadd.f32 %v890_v41, %v889_v38  ;;  %v892_v45 = vpop.f32.mrb[10].mxu1  ;;  %v829_v46 = vpop.f32.mrb[11].mxu0 }
 0x10a   :  { %v830_v47 = vadd.f32 %v829_v46, %v828_v42  ;;  %v893_v48 = vpop.f32.mrb[11].mxu1 }
 0x10b   :  { %v611_v49 = vadd.f32 %v891_v44, %v827_v40  ;;  %v894_v50 = vadd.f32 %v893_v48, %v892_v45 }
 0x10d   :  { %661 = vst [vmem:[%s1278_s2 + $0x20] sm:$0xff] %v611_v49  ;;  %v676_v51 = vadd.f32 %v675_v36, %v611_v49  ;;  %v693_v52 = vmul.f32 %v611_v49, %v611_v49  ;;  %v614_v53 = vadd.f32 %v894_v50, %v830_v47 }
 0x10e   :  { %v831_v54 = vpop.f32.mrb[12].mxu0 }
 0x10f   :  { %v708_v55 = vadd.f32 %v707_v43, %v693_v52  ;;  %662 = vst [vmem:[%s1278_s2 + $0x28] sm:$0xff] %v614_v53  ;;  %v677_v56 = vadd.f32 %v676_v51, %v614_v53  ;;  %v694_v57 = vmul.f32 %v614_v53, %v614_v53  ;;  %v895_v58 = vpop.f32.mrb[12].mxu1  ;;  %v832_v59 = vpop.f32.mrb[13].mxu0 }
 0x110   :  { %v833_v60 = vadd.f32 %v832_v59, %v831_v54  ;;  %v896_v61 = vpop.f32.mrb[13].mxu1  ;;  %v834_v62 = vpop.f32.mrb[14].mxu0 }
 0x111   :  { %v709_v63 = vadd.f32 %v708_v55, %v694_v57  ;;  %v897_v0 = vadd.f32 %v896_v61, %v895_v58  ;;  %v898_v1 = vpop.f32.mrb[14].mxu1  ;;  %v835_v2 = vpop.f32.mrb[15].mxu0 }
 0x112   :  { %v836_v3 = vadd.f32 %v835_v2, %v834_v62  ;;  %v899_v4 = vpop.f32.mrb[15].mxu1 }
 0x113   :  { %v619_v5 = vadd.f32 %v897_v0, %v833_v60  ;;  %v900_v6 = vadd.f32 %v899_v4, %v898_v1 }
 0x115   :  { %663 = vst [vmem:[%s1278_s2 + $0x30] sm:$0xff] %v619_v5  ;;  %v678_v7 = vadd.f32 %v677_v56, %v619_v5  ;;  %v695_v8 = vmul.f32 %v619_v5, %v619_v5  ;;  %v622_v9 = vadd.f32 %v900_v6, %v836_v3 }
 0x116   :  { %v837_v10 = vpop.f32.mrb[16].mxu0 }
 0x117   :  { %v710_v11 = vadd.f32 %v709_v63, %v695_v8  ;;  %664 = vst [vmem:[%s1278_s2 + $0x38] sm:$0xff] %v622_v9  ;;  %v679_v12 = vadd.f32 %v678_v7, %v622_v9  ;;  %v696_v13 = vmul.f32 %v622_v9, %v622_v9  ;;  %v901_v14 = vpop.f32.mrb[16].mxu1  ;;  %v838_v15 = vpop.f32.mrb[17].mxu0 }
 0x118   :  { %v839_v16 = vadd.f32 %v838_v15, %v837_v10  ;;  %v902_v17 = vpop.f32.mrb[17].mxu1  ;;  %v840_v18 = vpop.f32.mrb[18].mxu0 }
 0x119   :  { %v711_v19 = vadd.f32 %v710_v11, %v696_v13  ;;  %v903_v20 = vadd.f32 %v902_v17, %v901_v14  ;;  %v904_v21 = vpop.f32.mrb[18].mxu1  ;;  %v841_v22 = vpop.f32.mrb[19].mxu0 }
 0x11a   :  { %v842_v23 = vadd.f32 %v841_v22, %v840_v18  ;;  %v905_v24 = vpop.f32.mrb[19].mxu1 }
 0x11b   :  { %v627_v25 = vadd.f32 %v903_v20, %v839_v16  ;;  %v906_v26 = vadd.f32 %v905_v24, %v904_v21 }
 0x11d   :  { %665 = vst [vmem:[%s1278_s2 + $0x40] sm:$0xff] %v627_v25  ;;  %v680_v27 = vadd.f32 %v679_v12, %v627_v25  ;;  %v697_v28 = vmul.f32 %v627_v25, %v627_v25  ;;  %v630_v29 = vadd.f32 %v906_v26, %v842_v23 }
 0x11e   :  { %v843_v30 = vpop.f32.mrb[20].mxu0 }
 0x11f   :  { %v712_v31 = vadd.f32 %v711_v19, %v697_v28  ;;  %666 = vst [vmem:[%s1278_s2 + $0x48] sm:$0xff] %v630_v29  ;;  %v681_v32 = vadd.f32 %v680_v27, %v630_v29  ;;  %v698_v33 = vmul.f32 %v630_v29, %v630_v29  ;;  %v907_v34 = vpop.f32.mrb[20].mxu1  ;;  %v844_v35 = vpop.f32.mrb[21].mxu0 }
 0x120   :  { %v845_v36 = vadd.f32 %v844_v35, %v843_v30  ;;  %v908_v37 = vpop.f32.mrb[21].mxu1  ;;  %v846_v38 = vpop.f32.mrb[22].mxu0 }
 0x121   :  { %v713_v39 = vadd.f32 %v712_v31, %v698_v33  ;;  %v909_v40 = vadd.f32 %v908_v37, %v907_v34  ;;  %v910_v41 = vpop.f32.mrb[22].mxu1  ;;  %v847_v42 = vpop.f32.mrb[23].mxu0 }
 0x122   :  { %v848_v43 = vadd.f32 %v847_v42, %v846_v38  ;;  %v911_v44 = vpop.f32.mrb[23].mxu1 }
 0x123   :  { %v635_v45 = vadd.f32 %v909_v40, %v845_v36  ;;  %v912_v46 = vadd.f32 %v911_v44, %v910_v41 }
 0x125   :  { %667 = vst [vmem:[%s1278_s2 + $0x50] sm:$0xff] %v635_v45  ;;  %v682_v47 = vadd.f32 %v681_v32, %v635_v45  ;;  %v699_v48 = vmul.f32 %v635_v45, %v635_v45  ;;  %v638_v49 = vadd.f32 %v912_v46, %v848_v43 }
 0x126   :  { %v849_v50 = vpop.f32.mrb[24].mxu0 }
 0x127   :  { %v714_v51 = vadd.f32 %v713_v39, %v699_v48  ;;  %668 = vst [vmem:[%s1278_s2 + $0x58] sm:$0xff] %v638_v49  ;;  %v683_v52 = vadd.f32 %v682_v47, %v638_v49  ;;  %v700_v53 = vmul.f32 %v638_v49, %v638_v49  ;;  %v913_v54 = vpop.f32.mrb[24].mxu1  ;;  %v850_v55 = vpop.f32.mrb[25].mxu0 }
 0x128   :  { %v851_v56 = vadd.f32 %v850_v55, %v849_v50  ;;  %v914_v57 = vpop.f32.mrb[25].mxu1  ;;  %v852_v58 = vpop.f32.mrb[26].mxu0 }
 0x129   :  { %v715_v59 = vadd.f32 %v714_v51, %v700_v53  ;;  %v915_v60 = vadd.f32 %v914_v57, %v913_v54  ;;  %v916_v61 = vpop.f32.mrb[26].mxu1  ;;  %v853_v62 = vpop.f32.mrb[27].mxu0 }
 0x12a   :  { %v854_v63 = vadd.f32 %v853_v62, %v852_v58  ;;  %v917_v0 = vpop.f32.mrb[27].mxu1 }
 0x12b   :  { %v643_v1 = vadd.f32 %v915_v60, %v851_v56  ;;  %v918_v2 = vadd.f32 %v917_v0, %v916_v61 }
 0x12d   :  { %669 = vst [vmem:[%s1278_s2 + $0x60] sm:$0xff] %v643_v1  ;;  %v684_v3 = vadd.f32 %v683_v52, %v643_v1  ;;  %v701_v4 = vmul.f32 %v643_v1, %v643_v1  ;;  %v646_v5 = vadd.f32 %v918_v2, %v854_v63 }
 0x12e   :  { %v855_v6 = vpop.f32.mrb[28].mxu0 }
 0x12f   :  { %v716_v7 = vadd.f32 %v715_v59, %v701_v4  ;;  %670 = vst [vmem:[%s1278_s2 + $0x68] sm:$0xff] %v646_v5  ;;  %v685_v8 = vadd.f32 %v684_v3, %v646_v5  ;;  %v702_v9 = vmul.f32 %v646_v5, %v646_v5  ;;  %v919_v10 = vpop.f32.mrb[28].mxu1  ;;  %v856_v11 = vpop.f32.mrb[29].mxu0 }
 0x130   :  { %v857_v12 = vadd.f32 %v856_v11, %v855_v6  ;;  %v920_v13 = vpop.f32.mrb[29].mxu1  ;;  %v858_v14 = vpop.f32.mrb[30].mxu0 }
 0x131   :  { %v717_v15 = vadd.f32 %v716_v7, %v702_v9  ;;  %v921_v16 = vadd.f32 %v920_v13, %v919_v10  ;;  %v922_v17 = vpop.f32.mrb[30].mxu1  ;;  %v859_v18 = vpop.f32.mrb[31].mxu0 }
 0x132   :  { %v860_v19 = vadd.f32 %v859_v18, %v858_v14  ;;  %v923_v20 = vpop.f32.mrb[31].mxu1 }
 0x133   :  { %v651_v21 = vadd.f32 %v921_v16, %v857_v12  ;;  %v924_v22 = vadd.f32 %v923_v20, %v922_v17 }
 0x135   :  { %671 = vst [vmem:[%s1278_s2 + $0x70] sm:$0xff] %v651_v21  ;;  %v686_v23 = vadd.f32 %v685_v8, %v651_v21  ;;  %v703_v24 = vmul.f32 %v651_v21, %v651_v21  ;;  %v654_v25 = vadd.f32 %v924_v22, %v860_v19 }
 0x137   :  { %v718_v26 = vadd.f32 %v717_v15, %v703_v24  ;;  %672 = vst [vmem:[%s1278_s2 + $0x78] sm:$0xff] %v654_v25  ;;  %v687_v27 = vadd.f32 %v686_v23, %v654_v25  ;;  %v704_v28 = vmul.f32 %v654_v25, %v654_v25 }
 0x139   :  { %688 = vst [vmem:[%s1279_s3] sm:$0xff] %v687_v27  ;;  %v719_v29 = vadd.f32 %v718_v26, %v704_v28 }
 0x13b   :  { %720 = vst [vmem:[%s1280_s4] sm:$0xff] %v719_v29 }

// kernel: dcgan_discriminator_forward.12
= control target key start
LH: loop header
LB: loop body
LE: loop exit
PB: predicated region body
PF: predicated region fallthrough
CT: control target
= control target key end

     0   :  { %s305_s0 = inlined_call_operand.vmem [shape: f32[128,128], index: 0, kind: input, shape index: {}, may-alias: {0,3}]   ;;  %s306_s1 = inlined_call_operand.vmem [shape: f32[1,128], index: 1, kind: input, shape index: {}]   ;;  %s307_s2 = inlined_call_operand.vmem [shape: f32[1,128], index: 2, kind: input, shape index: {}]   ;;  %s308_s3 = inlined_call_operand.vmem [shape: f32[128,128], index: 3, kind: output, shape index: {}, may-alias: {0,3}]  }
   0x1   :  { %v14_v0 = vld [vmem:[%s305_s0] sm:$0xff]  ;;  %v15_v4 = vld [vmem:[%s305_s0 + $0x8] sm:$0xff]  ;;  %v16_v5 = vld [vmem:[%s305_s0 + $0x10] sm:$0xff] }
   0x2   :  { %v172_v1 = vld [vmem:[%s306_s1] ss:$0 sm:$0xff]  ;;  %v17_v6 = vld [vmem:[%s305_s0 + $0x18] sm:$0xff]  ;;  %v19_v11 = vld [vmem:[%s305_s0 + $0x28] sm:$0xff] }
   0x3   :  { %v177_v2 = vld [vmem:[%s307_s2] ss:$0 sm:$0xff]  ;;  %v37_v3 = vmul.f32 %v172_v1, %v14_v0  ;;  %v38_v7 = vmul.f32 %v172_v1, %v15_v4  ;;  %v39_v8 = vmul.f32 %v172_v1, %v16_v5  ;;  %v40_v9 = vmul.f32 %v172_v1, %v17_v6  ;;  %v20_v12 = vld [vmem:[%s305_s0 + $0x30] sm:$0xff]  ;;  %v21_v17 = vld [vmem:[%s305_s0 + $0x38] sm:$0xff] }
   0x4   :  { %v18_v10 = vld [vmem:[%s305_s0 + $0x20] sm:$0xff]  ;;  %v42_v15 = vmul.f32 %v172_v1, %v19_v11  ;;  %v43_v16 = vmul.f32 %v172_v1, %v20_v12  ;;  %v44_v21 = vmul.f32 %v172_v1, %v21_v17  ;;  %v23_v30 = vld [vmem:[%s305_s0 + $0x48] sm:$0xff]  ;;  %v24_v31 = vld [vmem:[%s305_s0 + $0x50] sm:$0xff] }
   0x5   :  { %v60_v13 = vadd.f32 %v177_v2, %v37_v3  ;;  %v41_v14 = vmul.f32 %v172_v1, %v18_v10  ;;  %v61_v18 = vadd.f32 %v177_v2, %v38_v7  ;;  %v62_v19 = vadd.f32 %v177_v2, %v39_v8  ;;  %v22_v25 = vld [vmem:[%s305_s0 + $0x40] sm:$0xff] }
   0x6   :  { %v63_v20 = vadd.f32 %v177_v2, %v40_v9  ;;  %v65_v24 = vadd.f32 %v177_v2, %v42_v15  ;;  %v66_v37 = vadd.f32 %v177_v2, %v43_v16  ;;  %v67_v38 = vadd.f32 %v177_v2, %v44_v21 }
   0x7   :  { %vm76_vm0 = vcmp.ge.f32.partialorder %v60_v13, 0.0  ;;  %v92_v22 = vmul.f32 0.2, %v60_v13  ;;  %v64_v23 = vadd.f32 %v177_v2, %v41_v14  ;;  %vm77_vm1 = vcmp.ge.f32.partialorder %v61_v18, 0.0 }
   0x8   :  { %v93_v26 = vmul.f32 0.2, %v61_v18  ;;  %vm78_vm2 = vcmp.ge.f32.partialorder %v62_v19, 0.0  ;;  %v94_v27 = vmul.f32 0.2, %v62_v19  ;;  %vm79_vm3 = vcmp.ge.f32.partialorder %v63_v20, 0.0 }
   0x9   :  { %v108_v28 = vsel %vm76_vm0, %v60_v13, %v92_v22  ;;  %v95_v29 = vmul.f32 0.2, %v63_v20  ;;  %vm80_vm4 = vcmp.ge.f32.partialorder %v64_v23, 0.0  ;;  %v96_v34 = vmul.f32 0.2, %v64_v23 }
   0xa   :  { %124 = vst [vmem:[%s308_s3] sm:$0xff] %v108_v28  ;;  %v109_v32 = vsel %vm77_vm1, %v61_v18, %v93_v26  ;;  %v110_v33 = vsel %vm78_vm2, %v62_v19, %v94_v27  ;;  %vm81_vm5 = vcmp.ge.f32.partialorder %v65_v24, 0.0  ;;  %v97_v36 = vmul.f32 0.2, %v65_v24 }
   0xb   :  { %125 = vst [vmem:[%s308_s3 + $0x8] sm:$0xff] %v109_v32  ;;  %126 = vst [vmem:[%s308_s3 + $0x10] sm:$0xff] %v110_v33  ;;  %v111_v35 = vsel %vm79_vm3, %v63_v20, %v95_v29  ;;  %v112_v39 = vsel %vm80_vm4, %v64_v23, %v96_v34  ;;  %v45_v40 = vmul.f32 %v172_v1, %v22_v25  ;;  %vm82_vm6 = vcmp.ge.f32.partialorder %v66_v37, 0.0 }
   0xc   :  { %127 = vst [vmem:[%s308_s3 + $0x18] sm:$0xff] %v111_v35  ;;  %v46_v41 = vmul.f32 %v172_v1, %v23_v30  ;;  %v47_v42 = vmul.f32 %v172_v1, %v24_v31  ;;  %v113_v46 = vsel %vm81_vm5, %v65_v24, %v97_v36  ;;  %v98_v47 = vmul.f32 0.2, %v66_v37 }
   0xd   :  { %vm83_vm7 = vcmp.ge.f32.partialorder %v67_v38, 0.0  ;;  %v99_v48 = vmul.f32 0.2, %v67_v38  ;;  %v68_v49 = vadd.f32 %v177_v2, %v45_v40 }
   0xe   :  { %v69_v50 = vadd.f32 %v177_v2, %v46_v41  ;;  %v70_v51 = vadd.f32 %v177_v2, %v47_v42  ;;  %v114_v52 = vsel %vm82_vm6, %v66_v37, %v98_v47 }
   0xf   :  { %v115_v57 = vsel %vm83_vm7, %v67_v38, %v99_v48  ;;  %vm84_vm8 = vcmp.ge.f32.partialorder %v68_v49, 0.0  ;;  %v100_v58 = vmul.f32 0.2, %v68_v49 }
  0x10   :  { %vm85_vm9 = vcmp.ge.f32.partialorder %v69_v50, 0.0  ;;  %v101_v59 = vmul.f32 0.2, %v69_v50  ;;  %vm86_vm10 = vcmp.ge.f32.partialorder %v70_v51, 0.0  ;;  %v102_v60 = vmul.f32 0.2, %v70_v51 }
  0x11   :  { %v116_v62 = vsel %vm84_vm8, %v68_v49, %v100_v58 }
  0x12   :  { %v117_v5 = vsel %vm85_vm9, %v69_v50, %v101_v59  ;;  %v118_v6 = vsel %vm86_vm10, %v70_v51, %v102_v60 }
  0x13   :  { %v25_v43 = vld [vmem:[%s305_s0 + $0x58] sm:$0xff]  ;;  %v26_v44 = vld [vmem:[%s305_s0 + $0x60] sm:$0xff]  ;;  %v27_v45 = vld [vmem:[%s305_s0 + $0x68] sm:$0xff] }
  0x14   :  { %128 = vst [vmem:[%s308_s3 + $0x20] sm:$0xff] %v112_v39  ;;  %129 = vst [vmem:[%s308_s3 + $0x28] sm:$0xff] %v113_v46  ;;  %v48_v53 = vmul.f32 %v172_v1, %v25_v43  ;;  %v49_v54 = vmul.f32 %v172_v1, %v26_v44  ;;  %v50_v55 = vmul.f32 %v172_v1, %v27_v45 }
  0x16   :  { %v71_v61 = vadd.f32 %v177_v2, %v48_v53  ;;  %v72_v63 = vadd.f32 %v177_v2, %v49_v54  ;;  %v73_v0 = vadd.f32 %v177_v2, %v50_v55 }
  0x18   :  { %vm87_vm11 = vcmp.ge.f32.partialorder %v71_v61, 0.0  ;;  %v103_v7 = vmul.f32 0.2, %v71_v61  ;;  %vm88_vm12 = vcmp.ge.f32.partialorder %v72_v63, 0.0  ;;  %v104_v8 = vmul.f32 0.2, %v72_v63 }
  0x19   :  { %vm89_vm13 = vcmp.ge.f32.partialorder %v73_v0, 0.0  ;;  %v105_v9 = vmul.f32 0.2, %v73_v0 }
  0x1a   :  { %v119_v10 = vsel %vm87_vm11, %v71_v61, %v103_v7  ;;  %v120_v13 = vsel %vm88_vm12, %v72_v63, %v104_v8 }
  0x1b   :  { %v28_v56 = vld [vmem:[%s305_s0 + $0x70] sm:$0xff]  ;;  %v121_v14 = vsel %vm89_vm13, %v73_v0, %v105_v9 }
  0x1c   :  { %130 = vst [vmem:[%s308_s3 + $0x30] sm:$0xff] %v114_v52  ;;  %131 = vst [vmem:[%s308_s3 + $0x38] sm:$0xff] %v115_v57  ;;  %v51_v3 = vmul.f32 %v172_v1, %v28_v56 }
  0x1e   :  { %v74_v11 = vadd.f32 %v177_v2, %v51_v3 }
  0x20   :  { %vm90_vm14 = vcmp.ge.f32.partialorder %v74_v11, 0.0  ;;  %v106_v15 = vmul.f32 0.2, %v74_v11 }
  0x22   :  { %v122_v17 = vsel %vm90_vm14, %v74_v11, %v106_v15 }
  0x23   :  { %v29_v4 = vld [vmem:[%s305_s0 + $0x78] sm:$0xff] }
  0x24   :  { %132 = vst [vmem:[%s308_s3 + $0x40] sm:$0xff] %v116_v62  ;;  %133 = vst [vmem:[%s308_s3 + $0x48] sm:$0xff] %v117_v5  ;;  %v52_v12 = vmul.f32 %v172_v1, %v29_v4 }
  0x25   :  { %134 = vst [vmem:[%s308_s3 + $0x50] sm:$0xff] %v118_v6  ;;  %135 = vst [vmem:[%s308_s3 + $0x58] sm:$0xff] %v119_v10 }
  0x26   :  { %136 = vst [vmem:[%s308_s3 + $0x60] sm:$0xff] %v120_v13  ;;  %137 = vst [vmem:[%s308_s3 + $0x68] sm:$0xff] %v121_v14  ;;  %v75_v16 = vadd.f32 %v177_v2, %v52_v12 }
  0x27   :  { %138 = vst [vmem:[%s308_s3 + $0x70] sm:$0xff] %v122_v17 }
  0x28   :  { %vm91_vm15 = vcmp.ge.f32.partialorder %v75_v16, 0.0  ;;  %v107_v1 = vmul.f32 0.2, %v75_v16 }
  0x2a   :  { %v123_v18 = vsel %vm91_vm15, %v75_v16, %v107_v1 }
  0x2b   :  { %139 = vst [vmem:[%s308_s3 + $0x78] sm:$0xff] %v123_v18 }

// kernel: dcgan_discriminator_forward.14
= control target key start
LH: loop header
LB: loop body
LE: loop exit
PB: predicated region body
PF: predicated region fallthrough
CT: control target
= control target key end

     0   :  { %s112_s0 = inlined_call_operand.vmem [shape: f32[32,128], index: 0, kind: input, shape index: {}, may-alias: {0,3}]   ;;  %s113_s1 = inlined_call_operand.vmem [shape: f32[1,128], index: 1, kind: input, shape index: {}]   ;;  %s114_s2 = inlined_call_operand.vmem [shape: f32[1,128], index: 2, kind: input, shape index: {}]   ;;  %s115_s3 = inlined_call_operand.vmem [shape: f32[32,128], index: 3, kind: output, shape index: {}, may-alias: {0,3}]  }
   0x1   :  { %v14_v0 = vld [vmem:[%s112_s0] sm:$0xff]  ;;  %v15_v4 = vld [vmem:[%s112_s0 + $0x8] sm:$0xff]  ;;  %v16_v5 = vld [vmem:[%s112_s0 + $0x10] sm:$0xff] }
   0x2   :  { %v60_v1 = vld [vmem:[%s113_s1] ss:$0 sm:$0xff]  ;;  %v17_v6 = vld [vmem:[%s112_s0 + $0x18] sm:$0xff] }
   0x3   :  { %v61_v2 = vld [vmem:[%s114_s2] ss:$0 sm:$0xff]  ;;  %v25_v3 = vmul.f32 %v60_v1, %v14_v0  ;;  %v26_v7 = vmul.f32 %v60_v1, %v15_v4  ;;  %v27_v8 = vmul.f32 %v60_v1, %v16_v5  ;;  %v28_v9 = vmul.f32 %v60_v1, %v17_v6 }
   0x5   :  { %v36_v10 = vadd.f32 %v61_v2, %v25_v3  ;;  %v37_v11 = vadd.f32 %v61_v2, %v26_v7  ;;  %v38_v12 = vadd.f32 %v61_v2, %v27_v8  ;;  %v39_v13 = vadd.f32 %v61_v2, %v28_v9 }
   0x7   :  { %vm40_vm0 = vcmp.ge.f32.partialorder %v36_v10, 0.0  ;;  %v44_v14 = vmul.f32 0.2, %v36_v10  ;;  %vm41_vm1 = vcmp.ge.f32.partialorder %v37_v11, 0.0  ;;  %v45_v15 = vmul.f32 0.2, %v37_v11 }
   0x8   :  { %vm42_vm2 = vcmp.ge.f32.partialorder %v38_v12, 0.0  ;;  %v46_v16 = vmul.f32 0.2, %v38_v12  ;;  %vm43_vm3 = vcmp.ge.f32.partialorder %v39_v13, 0.0  ;;  %v47_v18 = vmul.f32 0.2, %v39_v13 }
   0x9   :  { %v48_v17 = vsel %vm40_vm0, %v36_v10, %v44_v14  ;;  %v49_v19 = vsel %vm41_vm1, %v37_v11, %v45_v15 }
   0xa   :  { %52 = vst [vmem:[%s115_s3] sm:$0xff] %v48_v17  ;;  %v50_v20 = vsel %vm42_vm2, %v38_v12, %v46_v16  ;;  %53 = vst [vmem:[%s115_s3 + $0x8] sm:$0xff] %v49_v19  ;;  %v51_v21 = vsel %vm43_vm3, %v39_v13, %v47_v18 }
   0xb   :  { %54 = vst [vmem:[%s115_s3 + $0x10] sm:$0xff] %v50_v20  ;;  %55 = vst [vmem:[%s115_s3 + $0x18] sm:$0xff] %v51_v21 }

// kernel: dcgan_discriminator_forward.13
= control target key start
LH: loop header
LB: loop body
LE: loop exit
PB: predicated region body
PF: predicated region fallthrough
CT: control target
= control target key end

     0   :  { %s1386_s1 = inlined_call_operand.vmem [shape: bf16[1024,128], index: 1, kind: input, shape index: {}]   ;;  %s1387_s0 = inlined_call_operand.vmem [shape: bf16[32,1024], index: 0, kind: input, shape index: {}]   ;;  %s1388_s2 = inlined_call_operand.vmem [shape: f32[32,128], index: 2, kind: output, shape index: {0}]   ;;  %s1389_s3 = inlined_call_operand.vmem [shape: f32[1,8,128], index: 3, kind: output, shape index: {1}]   ;;  %s1390_s4 = inlined_call_operand.vmem [shape: f32[1,8,128], index: 4, kind: output, shape index: {2}]  }
   0x1   :  { %v1039_v0 = vld [vmem:[%s1386_s1 + $0x40] sm:$0xff]   ;;  %v1043_v4 = vld [vmem:[%s1386_s1 + $0x48] sm:$0xff]   ;;  %v1047_v8 = vld [vmem:[%s1386_s1 + $0x50] sm:$0xff]  }
   0x2   :  { %v1040_v1 = vld [vmem:[%s1386_s1 + $0xc0] sm:$0xff]   ;;  %927 = vmatprep.subr.bf16.mxu0 %v1039_v0  ;;  %v1044_v5 = vld [vmem:[%s1386_s1 + $0xc8] sm:$0xff]   ;;  %v1048_v9 = vld [vmem:[%s1386_s1 + $0xd0] sm:$0xff]  }
   0x3   :  { %v1041_v2 = vld [vmem:[%s1386_s1] sm:$0xff]   ;;  %955 = vmatprep.subr.bf16.mxu1 %v1040_v1  ;;  %v1045_v6 = vld [vmem:[%s1386_s1 + $0x8] sm:$0xff]   ;;  %v1049_v10 = vld [vmem:[%s1386_s1 + $0x10] sm:$0xff]  }
   0x4   :  { %v1042_v3 = vld [vmem:[%s1386_s1 + $0x80] sm:$0xff]   ;;  %928 = vmatpush3.bf16.msra.mxu0 %v1041_v2  ;;  %v1046_v7 = vld [vmem:[%s1386_s1 + $0x88] sm:$0xff]   ;;  %v1050_v11 = vld [vmem:[%s1386_s1 + $0x90] sm:$0xff]  }
   0x5   :  { %956 = vmatpush3.bf16.msra.mxu1 %v1042_v3  ;;  %929 = vmatprep.subr.bf16.mxu0 %v1043_v4  ;;  %v1051_v12 = vld [vmem:[%s1386_s1 + $0x58] sm:$0xff]   ;;  %v1055_v16 = vld [vmem:[%s1386_s1 + $0x60] sm:$0xff]   ;;  %v1059_v20 = vld [vmem:[%s1386_s1 + $0x68] sm:$0xff]  }
   0x6   :  { %957 = vmatprep.subr.bf16.mxu1 %v1044_v5  ;;  %v1052_v13 = vld [vmem:[%s1386_s1 + $0xd8] sm:$0xff]   ;;  %v1056_v17 = vld [vmem:[%s1386_s1 + $0xe0] sm:$0xff]   ;;  %v1060_v21 = vld [vmem:[%s1386_s1 + $0xe8] sm:$0xff]  }
   0x7   :  { %v1053_v14 = vld [vmem:[%s1386_s1 + $0x18] sm:$0xff]   ;;  %v1057_v18 = vld [vmem:[%s1386_s1 + $0x20] sm:$0xff]   ;;  %v1061_v22 = vld [vmem:[%s1386_s1 + $0x28] sm:$0xff]  }
   0x8   :  { %930 = vmatpush3.bf16.msra.mxu0 %v1045_v6  ;;  %v1054_v15 = vld [vmem:[%s1386_s1 + $0x98] sm:$0xff]   ;;  %v1058_v19 = vld [vmem:[%s1386_s1 + $0xa0] sm:$0xff]   ;;  %v1062_v23 = vld [vmem:[%s1386_s1 + $0xa8] sm:$0xff]  }
   0x9   :  { %958 = vmatpush3.bf16.msra.mxu1 %v1046_v7  ;;  %931 = vmatprep.subr.bf16.mxu0 %v1047_v8  ;;  %v1063_v24 = vld [vmem:[%s1386_s1 + $0x70] sm:$0xff]   ;;  %v1067_v28 = vld [vmem:[%s1386_s1 + $0x78] sm:$0xff]   ;;  %v15_v32 = vld [vmem:[%s1387_s0] sm:$0xff] }
   0xa   :  { %959 = vmatprep.subr.bf16.mxu1 %v1048_v9  ;;  %v1064_v25 = vld [vmem:[%s1386_s1 + $0xf0] sm:$0xff]   ;;  %v1068_v29 = vld [vmem:[%s1386_s1 + $0xf8] sm:$0xff]   ;;  %v19_v33 = vld [vmem:[%s1387_s0 + $0x20] sm:$0xff] }
   0xb   :  { %v1065_v26 = vld [vmem:[%s1386_s1 + $0x30] sm:$0xff]   ;;  %v1069_v30 = vld [vmem:[%s1386_s1 + $0x38] sm:$0xff]   ;;  %v16_v34 = vld [vmem:[%s1387_s0 + $0x8] sm:$0xff]  ;;  %v847_v35 = vcombine.low %v15_v32, %v19_v33  ;;  %v848_v36 = vcombine.high %v15_v32, %v19_v33 }
   0xc   :  { %932 = vmatpush3.bf16.msra.mxu0 %v1049_v10  ;;  %v1066_v27 = vld [vmem:[%s1386_s1 + $0xb0] sm:$0xff]   ;;  %v1070_v31 = vld [vmem:[%s1386_s1 + $0xb8] sm:$0xff]   ;;  %v20_v37 = vld [vmem:[%s1387_s0 + $0x28] sm:$0xff] }
   0xd   :  { %960 = vmatpush3.bf16.msra.mxu1 %v1050_v11  ;;  %933 = vmatprep.subr.bf16.mxu0 %v1051_v12  ;;  %v849_v38 = vcombine.low %v16_v34, %v20_v37  ;;  %v850_v39 = vcombine.high %v16_v34, %v20_v37  ;;  %v1071_v40 = vld [vmem:[%s1386_s1 + $0x140] sm:$0xff]   ;;  %v1075_v44 = vld [vmem:[%s1386_s1 + $0x148] sm:$0xff]   ;;  %v1079_v48 = vld [vmem:[%s1386_s1 + $0x150] sm:$0xff]  }
   0xe   :  { %961 = vmatprep.subr.bf16.mxu1 %v1052_v13  ;;  %655 = vmatprep.mubr.bf16.mxu0 %v848_v36  ;;  %v1072_v41 = vld [vmem:[%s1386_s1 + $0x1c0] sm:$0xff]   ;;  %v1076_v45 = vld [vmem:[%s1386_s1 + $0x1c8] sm:$0xff]   ;;  %v1080_v49 = vld [vmem:[%s1386_s1 + $0x1d0] sm:$0xff]  }
   0xf   :  { %704 = vmatprep.mubr.bf16.mxu1 %v850_v39  ;;  %v1073_v42 = vld [vmem:[%s1386_s1 + $0x100] sm:$0xff]   ;;  %v1077_v46 = vld [vmem:[%s1386_s1 + $0x108] sm:$0xff]   ;;  %v1081_v50 = vld [vmem:[%s1386_s1 + $0x110] sm:$0xff]  }
  0x10   :  { %934 = vmatpush3.bf16.msra.mxu0 %v1053_v14  ;;  %v1074_v43 = vld [vmem:[%s1386_s1 + $0x180] sm:$0xff]   ;;  %v1078_v47 = vld [vmem:[%s1386_s1 + $0x188] sm:$0xff]   ;;  %v1082_v51 = vld [vmem:[%s1386_s1 + $0x190] sm:$0xff]  }
  0x11   :  { %962 = vmatpush3.bf16.msra.mxu1 %v1054_v15  ;;  %935 = vmatprep.subr.bf16.mxu0 %v1055_v16  ;;  %v1083_v52 = vld [vmem:[%s1386_s1 + $0x158] sm:$0xff]   ;;  %v1087_v56 = vld [vmem:[%s1386_s1 + $0x160] sm:$0xff]   ;;  %v24_v63 = vld [vmem:[%s1387_s0 + $0x48] sm:$0xff] }
  0x12   :  { %963 = vmatprep.subr.bf16.mxu1 %v1056_v17  ;;  %v1084_v53 = vld [vmem:[%s1386_s1 + $0x1d8] sm:$0xff]   ;;  %v1088_v57 = vld [vmem:[%s1386_s1 + $0x1e0] sm:$0xff]   ;;  %v28_v0 = vld [vmem:[%s1387_s0 + $0x68] sm:$0xff] }
  0x13   :  { %v1085_v54 = vld [vmem:[%s1386_s1 + $0x118] sm:$0xff]   ;;  %v1089_v58 = vld [vmem:[%s1386_s1 + $0x120] sm:$0xff]   ;;  %v858_v2 = vcombine.high %v24_v63, %v28_v0  ;;  %v1091_v3 = vld [vmem:[%s1386_s1 + $0x168] sm:$0xff]   ;;  %v857_v4 = vcombine.low %v24_v63, %v28_v0 }
  0x14   :  { %936 = vmatpush3.bf16.msra.mxu0 %v1057_v18  ;;  %v1086_v55 = vld [vmem:[%s1386_s1 + $0x198] sm:$0xff]   ;;  %v1090_v59 = vld [vmem:[%s1386_s1 + $0x1a0] sm:$0xff]   ;;  %v1092_v5 = vld [vmem:[%s1386_s1 + $0x1e8] sm:$0xff]  }
  0x15   :  { %964 = vmatpush3.bf16.msra.mxu1 %v1058_v19  ;;  %937 = vmatprep.subr.bf16.mxu0 %v1059_v20  ;;  %v23_v60 = vld [vmem:[%s1387_s0 + $0x40] sm:$0xff]  ;;  %v1093_v6 = vld [vmem:[%s1386_s1 + $0x128] sm:$0xff]   ;;  %v1095_v8 = vld [vmem:[%s1386_s1 + $0x170] sm:$0xff]  }
  0x16   :  { %965 = vmatprep.subr.bf16.mxu1 %v1060_v21  ;;  %v27_v61 = vld [vmem:[%s1387_s0 + $0x60] sm:$0xff]  ;;  %v1094_v7 = vld [vmem:[%s1386_s1 + $0x1a8] sm:$0xff]   ;;  %v1096_v9 = vld [vmem:[%s1386_s1 + $0x1f0] sm:$0xff]  }
  0x17   :  { %v856_v62 = vcombine.high %v23_v60, %v27_v61  ;;  %v855_v1 = vcombine.low %v23_v60, %v27_v61  ;;  %v1097_v10 = vld [vmem:[%s1386_s1 + $0x130] sm:$0xff]   ;;  %v1099_v12 = vld [vmem:[%s1386_s1 + $0x178] sm:$0xff]  }
  0x18   :  { %938 = vmatpush3.bf16.msra.mxu0 %v1061_v22  ;;  %v1098_v11 = vld [vmem:[%s1386_s1 + $0x1b0] sm:$0xff]   ;;  %v1100_v13 = vld [vmem:[%s1386_s1 + $0x1f8] sm:$0xff]  }
  0x19   :  { %966 = vmatpush3.bf16.msra.mxu1 %v1062_v23  ;;  %939 = vmatprep.subr.bf16.mxu0 %v1063_v24  ;;  %v1101_v14 = vld [vmem:[%s1386_s1 + $0x138] sm:$0xff]   ;;  %v17_v16 = vld [vmem:[%s1387_s0 + $0x10] sm:$0xff] }
  0x1a   :  { %967 = vmatprep.subr.bf16.mxu1 %v1064_v25  ;;  %v1102_v15 = vld [vmem:[%s1386_s1 + $0x1b8] sm:$0xff]   ;;  %v21_v17 = vld [vmem:[%s1387_s0 + $0x30] sm:$0xff] }
  0x1b   :  { %v18_v18 = vld [vmem:[%s1387_s0 + $0x18] sm:$0xff]  ;;  %v851_v20 = vcombine.low %v17_v16, %v21_v17  ;;  %v852_v21 = vcombine.high %v17_v16, %v21_v17  ;;  %v25_v24 = vld [vmem:[%s1387_s0 + $0x50] sm:$0xff] }
  0x1c   :  { %940 = vmatpush3.bf16.msra.mxu0 %v1065_v26  ;;  %v22_v19 = vld [vmem:[%s1387_s0 + $0x38] sm:$0xff]  ;;  %v29_v25 = vld [vmem:[%s1387_s0 + $0x70] sm:$0xff] }
  0x1d   :  { %968 = vmatpush3.bf16.msra.mxu1 %v1066_v27  ;;  %941 = vmatprep.subr.bf16.mxu0 %v1067_v28  ;;  %v853_v22 = vcombine.low %v18_v18, %v22_v19  ;;  %v854_v23 = vcombine.high %v18_v18, %v22_v19  ;;  %v26_v26 = vld [vmem:[%s1387_s0 + $0x58] sm:$0xff]  ;;  %v860_v27 = vcombine.high %v25_v24, %v29_v25 }
  0x1e   :  { %969 = vmatprep.subr.bf16.mxu1 %v1068_v29  ;;  %v30_v28 = vld [vmem:[%s1387_s0 + $0x78] sm:$0xff] }
  0x1f   :  { %v862_v29 = vcombine.high %v26_v26, %v30_v28 }
  0x20   :  { %942 = vmatpush3.bf16.msra.mxu0 %v1069_v30  ;;  %v859_v30 = vcombine.low %v25_v24, %v29_v25 }
  0x21   :  { %970 = vmatpush3.bf16.msra.mxu1 %v1070_v31  ;;  %983 = vmatprep.subr.bf16.mxu0 %v1071_v40  ;;  %v861_v31 = vcombine.low %v26_v26, %v30_v28 }
  0x22   :  { %1011 = vmatprep.subr.bf16.mxu1 %v1072_v41 }
  0x23   :  { %656 = vmatmul.mubr.bf16.vlgmr.msra.gmra.mrb[0].mxu0 %v847_v35 }
  0x24   :  { %705 = vmatmul.mubr.bf16.vlgmr.msra.gmra.mrb[0].mxu1 %v849_v38  ;;  %984 = vmatpush3.bf16.msra.mxu0 %v1073_v42 }
  0x25   :  { %1012 = vmatpush3.bf16.msra.mxu1 %v1074_v43  ;;  %985 = vmatprep.subr.bf16.mxu0 %v1075_v44 }
  0x26   :  { %1013 = vmatprep.subr.bf16.mxu1 %v1076_v45  ;;  %663 = vmatprep.mubr.bf16.mxu0 %v856_v62 }
  0x27   :  { %712 = vmatprep.mubr.bf16.mxu1 %v858_v2 }
  0x28   :  { %986 = vmatpush3.bf16.msra.mxu0 %v1077_v46 }
  0x29   :  { %1014 = vmatpush3.bf16.msra.mxu1 %v1078_v47  ;;  %987 = vmatprep.subr.bf16.mxu0 %v1079_v48 }
  0x2a   :  { %1015 = vmatprep.subr.bf16.mxu1 %v1080_v49 }
  0x2b   :  { %664 = vmatmul.mubr.bf16.gmra.mrb[4].mxu0 %v855_v1 }
  0x2c   :  { %988 = vmatpush3.bf16.msra.mxu0 %v1081_v50  ;;  %713 = vmatmul.mubr.bf16.gmra.mrb[4].mxu1 %v857_v4 }
  0x2d   :  { %1016 = vmatpush3.bf16.msra.mxu1 %v1082_v51  ;;  %989 = vmatprep.subr.bf16.mxu0 %v1083_v52 }
  0x2e   :  { %1017 = vmatprep.subr.bf16.mxu1 %v1084_v53  ;;  %753 = vmatprep.mubr.bf16.mxu0 %v852_v21 }
  0x2f   :  { %802 = vmatprep.mubr.bf16.mxu1 %v854_v23 }
  0x30   :  { %990 = vmatpush3.bf16.msra.mxu0 %v1085_v54 }
  0x31   :  { %1018 = vmatpush3.bf16.msra.mxu1 %v1086_v55  ;;  %991 = vmatprep.subr.bf16.mxu0 %v1087_v56 }
  0x32   :  { %1019 = vmatprep.subr.bf16.mxu1 %v1088_v57 }
  0x34   :  { %992 = vmatpush3.bf16.msra.mxu0 %v1089_v58 }
  0x35   :  { %1020 = vmatpush3.bf16.msra.mxu1 %v1090_v59  ;;  %993 = vmatprep.subr.bf16.mxu0 %v1091_v3 }
  0x36   :  { %1021 = vmatprep.subr.bf16.mxu1 %v1092_v5 }
  0x38   :  { %994 = vmatpush3.bf16.msra.mxu0 %v1093_v6 }
  0x39   :  { %1022 = vmatpush3.bf16.msra.mxu1 %v1094_v7  ;;  %995 = vmatprep.subr.bf16.mxu0 %v1095_v8 }
  0x3a   :  { %1023 = vmatprep.subr.bf16.mxu1 %v1096_v9 }
  0x3c   :  { %996 = vmatpush3.bf16.msra.mxu0 %v1097_v10 }
  0x3d   :  { %1024 = vmatpush3.bf16.msra.mxu1 %v1098_v11  ;;  %997 = vmatprep.subr.bf16.mxu0 %v1099_v12 }
  0x3e   :  { %1025 = vmatprep.subr.bf16.mxu1 %v1100_v13 }
  0x40   :  { %998 = vmatpush3.bf16.msra.mxu0 %v1101_v14 }
  0x41   :  { %1026 = vmatpush3.bf16.msra.mxu1 %v1102_v15 }
  0x43   :  { %754 = vmatmul.mubr.bf16.vlgmr.msra.gmra.mrb[8].mxu0 %v851_v20 }
  0x44   :  { %803 = vmatmul.mubr.bf16.vlgmr.msra.gmra.mrb[8].mxu1 %v853_v22  ;;  %761 = vmatprep.mubr.bf16.mxu0 %v860_v27 }
  0x45   :  { %810 = vmatprep.mubr.bf16.mxu1 %v862_v29 }
  0x4b   :  { %762 = vmatmul.mubr.bf16.gmra.mrb[12].mxu0 %v859_v30 }
  0x4c   :  { %811 = vmatmul.mubr.bf16.gmra.mrb[12].mxu1 %v861_v31 }
  0xf6   :  { %v943_v32 = vpop.f32.mrb[0].mxu0 }
  0xf7   :  { %v971_v33 = vpop.f32.mrb[0].mxu1  ;;  %v944_v34 = vpop.f32.mrb[1].mxu0 }
  0xf8   :  { %v945_v35 = vadd.f32 %v944_v34, %v943_v32  ;;  %v972_v36 = vpop.f32.mrb[1].mxu1  ;;  %v946_v37 = vpop.f32.mrb[2].mxu0 }
  0xf9   :  { %v973_v38 = vadd.f32 %v972_v36, %v971_v33  ;;  %v974_v39 = vpop.f32.mrb[2].mxu1  ;;  %v947_v40 = vpop.f32.mrb[3].mxu0 }
  0xfa   :  { %v948_v41 = vadd.f32 %v947_v40, %v946_v37  ;;  %v975_v42 = vpop.f32.mrb[3].mxu1 }
  0xfb   :  { %v707_v43 = vadd.f32 %v973_v38, %v945_v35  ;;  %v976_v44 = vadd.f32 %v975_v42, %v974_v39 }
  0xfd   :  { %v710_v45 = vadd.f32 %v976_v44, %v948_v41 }
  0xfe   :  { %v949_v46 = vpop.f32.mrb[4].mxu0 }
  0xff   :  { %v977_v47 = vpop.f32.mrb[4].mxu1  ;;  %v950_v48 = vpop.f32.mrb[5].mxu0 }
 0x100   :  { %v951_v49 = vadd.f32 %v950_v48, %v949_v46  ;;  %v978_v50 = vpop.f32.mrb[5].mxu1  ;;  %v952_v51 = vpop.f32.mrb[6].mxu0 }
 0x101   :  { %v979_v52 = vadd.f32 %v978_v50, %v977_v47  ;;  %v980_v53 = vpop.f32.mrb[6].mxu1  ;;  %v953_v54 = vpop.f32.mrb[7].mxu0 }
 0x102   :  { %v954_v55 = vadd.f32 %v953_v54, %v952_v51  ;;  %v981_v56 = vpop.f32.mrb[7].mxu1 }
 0x103   :  { %v715_v57 = vadd.f32 %v979_v52, %v951_v49  ;;  %v982_v58 = vadd.f32 %v981_v56, %v980_v53 }
 0x105   :  { %v718_v59 = vadd.f32 %v982_v58, %v954_v55 }
 0x116   :  { %v999_v60 = vpop.f32.mrb[8].mxu0 }
 0x117   :  { %v1027_v61 = vpop.f32.mrb[8].mxu1  ;;  %v1000_v62 = vpop.f32.mrb[9].mxu0 }
 0x118   :  { %v1028_v63 = vpop.f32.mrb[9].mxu1  ;;  %v1001_v0 = vadd.f32 %v1000_v62, %v999_v60  ;;  %v1002_v2 = vpop.f32.mrb[10].mxu0 }
 0x119   :  { %v1029_v1 = vadd.f32 %v1028_v63, %v1027_v61  ;;  %v1030_v3 = vpop.f32.mrb[10].mxu1  ;;  %v1003_v4 = vpop.f32.mrb[11].mxu0 }
 0x11a   :  { %v1031_v5 = vpop.f32.mrb[11].mxu1  ;;  %v756_v6 = vadd.f32 %v1001_v0, %v707_v43  ;;  %v1004_v7 = vadd.f32 %v1003_v4, %v1002_v2 }
 0x11b   :  { %v1032_v8 = vadd.f32 %v1031_v5, %v1030_v3 }
 0x11c   :  { %v805_v9 = vadd.f32 %v1029_v1, %v756_v6  ;;  %v759_v10 = vadd.f32 %v1004_v7, %v710_v45 }
 0x11e   :  { %819 = vst [vmem:[%s1388_s2] sm:$0xff] %v805_v9  ;;  %v808_v11 = vadd.f32 %v1032_v8, %v759_v10  ;;  %v1005_v12 = vpop.f32.mrb[12].mxu0  ;;  %v827_v14 = vmul.f32 %v805_v9, %v805_v9 }
 0x11f   :  { %v1033_v13 = vpop.f32.mrb[12].mxu1  ;;  %v1006_v15 = vpop.f32.mrb[13].mxu0 }
 0x120   :  { %v1034_v16 = vpop.f32.mrb[13].mxu1  ;;  %820 = vst [vmem:[%s1388_s2 + $0x8] sm:$0xff] %v808_v11  ;;  %v823_v17 = vadd.f32 %v808_v11, %v805_v9  ;;  %v828_v18 = vmul.f32 %v808_v11, %v808_v11  ;;  %v1007_v19 = vadd.f32 %v1006_v15, %v1005_v12  ;;  %v1008_v21 = vpop.f32.mrb[14].mxu0 }
 0x121   :  { %v1035_v20 = vadd.f32 %v1034_v16, %v1033_v13  ;;  %v1036_v22 = vpop.f32.mrb[14].mxu1  ;;  %v1009_v23 = vpop.f32.mrb[15].mxu0 }
 0x122   :  { %v1037_v24 = vpop.f32.mrb[15].mxu1  ;;  %v831_v25 = vadd.f32 %v828_v18, %v827_v14  ;;  %v764_v26 = vadd.f32 %v1007_v19, %v715_v57  ;;  %v1010_v27 = vadd.f32 %v1009_v23, %v1008_v21 }
 0x123   :  { %v1038_v28 = vadd.f32 %v1037_v24, %v1036_v22 }
 0x124   :  { %v813_v29 = vadd.f32 %v1035_v20, %v764_v26  ;;  %v767_v30 = vadd.f32 %v1010_v27, %v718_v59 }
 0x126   :  { %821 = vst [vmem:[%s1388_s2 + $0x10] sm:$0xff] %v813_v29  ;;  %v824_v31 = vadd.f32 %v823_v17, %v813_v29  ;;  %v829_v32 = vmul.f32 %v813_v29, %v813_v29  ;;  %v816_v33 = vadd.f32 %v1038_v28, %v767_v30 }
 0x128   :  { %v832_v34 = vadd.f32 %v831_v25, %v829_v32  ;;  %822 = vst [vmem:[%s1388_s2 + $0x18] sm:$0xff] %v816_v33  ;;  %v825_v35 = vadd.f32 %v824_v31, %v816_v33  ;;  %v830_v36 = vmul.f32 %v816_v33, %v816_v33 }
 0x12a   :  { %826 = vst [vmem:[%s1389_s3] sm:$0xff] %v825_v35  ;;  %v833_v37 = vadd.f32 %v832_v34, %v830_v36 }
 0x12c   :  { %834 = vst [vmem:[%s1390_s4] sm:$0xff] %v833_v37 }

// kernel: dcgan_discriminator_forward.15
= control target key start
LH: loop header
LB: loop body
LE: loop exit
PB: predicated region body
PF: predicated region fallthrough
CT: control target
= control target key end

     0   :  { %s2389_s1 = inlined_call_operand.vmem [shape: bf16[2048,128], index: 1, kind: input, shape index: {}]   ;;  %s2390_s0 = inlined_call_operand.vmem [shape: bf16[16,2048], index: 0, kind: input, shape index: {}]   ;;  %s2391_s2 = inlined_call_operand.vmem [shape: f32[16,128], index: 2, kind: output, shape index: {}]  }
   0x1   :  { %v1800_v0 = vld [vmem:[%s2389_s1 + $0x40] sm:$0xff]   ;;  %v1804_v4 = vld [vmem:[%s2389_s1 + $0x48] sm:$0xff]   ;;  %v1808_v8 = vld [vmem:[%s2389_s1 + $0x50] sm:$0xff]  }
   0x2   :  { %v1801_v1 = vld [vmem:[%s2389_s1 + $0xc0] sm:$0xff]   ;;  %1624 = vmatprep.subr.bf16.mxu0 %v1800_v0  ;;  %v1805_v5 = vld [vmem:[%s2389_s1 + $0xc8] sm:$0xff]   ;;  %v1809_v9 = vld [vmem:[%s2389_s1 + $0xd0] sm:$0xff]  }
   0x3   :  { %v1802_v2 = vld [vmem:[%s2389_s1] sm:$0xff]   ;;  %1646 = vmatprep.subr.bf16.mxu1 %v1801_v1  ;;  %v1806_v6 = vld [vmem:[%s2389_s1 + $0x8] sm:$0xff]   ;;  %v1810_v10 = vld [vmem:[%s2389_s1 + $0x10] sm:$0xff]  }
   0x4   :  { %v1803_v3 = vld [vmem:[%s2389_s1 + $0x80] sm:$0xff]   ;;  %1625 = vmatpush3.bf16.msra.mxu0 %v1802_v2  ;;  %v1807_v7 = vld [vmem:[%s2389_s1 + $0x88] sm:$0xff]   ;;  %v1811_v11 = vld [vmem:[%s2389_s1 + $0x90] sm:$0xff]  }
   0x5   :  { %1647 = vmatpush3.bf16.msra.mxu1 %v1803_v3  ;;  %1626 = vmatprep.subr.bf16.mxu0 %v1804_v4  ;;  %v1812_v12 = vld [vmem:[%s2389_s1 + $0x58] sm:$0xff]   ;;  %v1816_v16 = vld [vmem:[%s2389_s1 + $0x60] sm:$0xff]   ;;  %v1820_v20 = vld [vmem:[%s2389_s1 + $0x68] sm:$0xff]  }
   0x6   :  { %1648 = vmatprep.subr.bf16.mxu1 %v1805_v5  ;;  %v1813_v13 = vld [vmem:[%s2389_s1 + $0xd8] sm:$0xff]   ;;  %v1817_v17 = vld [vmem:[%s2389_s1 + $0xe0] sm:$0xff]   ;;  %v1821_v21 = vld [vmem:[%s2389_s1 + $0xe8] sm:$0xff]  }
   0x7   :  { %v1814_v14 = vld [vmem:[%s2389_s1 + $0x18] sm:$0xff]   ;;  %v1818_v18 = vld [vmem:[%s2389_s1 + $0x20] sm:$0xff]   ;;  %v1822_v22 = vld [vmem:[%s2389_s1 + $0x28] sm:$0xff]  }
   0x8   :  { %1627 = vmatpush3.bf16.msra.mxu0 %v1806_v6  ;;  %v1815_v15 = vld [vmem:[%s2389_s1 + $0x98] sm:$0xff]   ;;  %v1819_v19 = vld [vmem:[%s2389_s1 + $0xa0] sm:$0xff]   ;;  %v1823_v23 = vld [vmem:[%s2389_s1 + $0xa8] sm:$0xff]  }
   0x9   :  { %1649 = vmatpush3.bf16.msra.mxu1 %v1807_v7  ;;  %1628 = vmatprep.subr.bf16.mxu0 %v1808_v8  ;;  %v1824_v24 = vld [vmem:[%s2389_s1 + $0x70] sm:$0xff]   ;;  %v1828_v28 = vld [vmem:[%s2389_s1 + $0x78] sm:$0xff]   ;;  %v12_v32 = vld [vmem:[%s2390_s0] sm:$0xff] }
   0xa   :  { %1650 = vmatprep.subr.bf16.mxu1 %v1809_v9  ;;  %v1825_v25 = vld [vmem:[%s2389_s1 + $0xf0] sm:$0xff]   ;;  %v1829_v29 = vld [vmem:[%s2389_s1 + $0xf8] sm:$0xff]   ;;  %v20_v33 = vld [vmem:[%s2390_s0 + $0x40] sm:$0xff] }
   0xb   :  { %v1826_v26 = vld [vmem:[%s2389_s1 + $0x30] sm:$0xff]   ;;  %v1830_v30 = vld [vmem:[%s2389_s1 + $0x38] sm:$0xff]   ;;  %v13_v34 = vld [vmem:[%s2390_s0 + $0x8] sm:$0xff]  ;;  %v1478_v35 = vcombine.low %v12_v32, %v20_v33  ;;  %v1479_v36 = vcombine.high %v12_v32, %v20_v33 }
   0xc   :  { %1629 = vmatpush3.bf16.msra.mxu0 %v1810_v10  ;;  %v1827_v27 = vld [vmem:[%s2389_s1 + $0xb0] sm:$0xff]   ;;  %v1831_v31 = vld [vmem:[%s2389_s1 + $0xb8] sm:$0xff]   ;;  %v21_v37 = vld [vmem:[%s2390_s0 + $0x48] sm:$0xff] }
   0xd   :  { %1651 = vmatpush3.bf16.msra.mxu1 %v1811_v11  ;;  %1630 = vmatprep.subr.bf16.mxu0 %v1812_v12  ;;  %v1480_v38 = vcombine.low %v13_v34, %v21_v37  ;;  %v1481_v39 = vcombine.high %v13_v34, %v21_v37  ;;  %v1832_v40 = vld [vmem:[%s2389_s1 + $0x140] sm:$0xff]   ;;  %v1836_v44 = vld [vmem:[%s2389_s1 + $0x148] sm:$0xff]   ;;  %v1840_v48 = vld [vmem:[%s2389_s1 + $0x150] sm:$0xff]  }
   0xe   :  { %1652 = vmatprep.subr.bf16.mxu1 %v1813_v13  ;;  %1164 = vmatprep.mubr.bf16.mxu0 %v1479_v36  ;;  %v1833_v41 = vld [vmem:[%s2389_s1 + $0x1c0] sm:$0xff]   ;;  %v1837_v45 = vld [vmem:[%s2389_s1 + $0x1c8] sm:$0xff]   ;;  %v1841_v49 = vld [vmem:[%s2389_s1 + $0x1d0] sm:$0xff]  }
   0xf   :  { %1205 = vmatprep.mubr.bf16.mxu1 %v1481_v39  ;;  %v1834_v42 = vld [vmem:[%s2389_s1 + $0x100] sm:$0xff]   ;;  %v1838_v46 = vld [vmem:[%s2389_s1 + $0x108] sm:$0xff]   ;;  %v1842_v50 = vld [vmem:[%s2389_s1 + $0x110] sm:$0xff]  }
  0x10   :  { %1631 = vmatpush3.bf16.msra.mxu0 %v1814_v14  ;;  %v1835_v43 = vld [vmem:[%s2389_s1 + $0x180] sm:$0xff]   ;;  %v1839_v47 = vld [vmem:[%s2389_s1 + $0x188] sm:$0xff]   ;;  %v1843_v51 = vld [vmem:[%s2389_s1 + $0x190] sm:$0xff]  }
  0x11   :  { %1653 = vmatpush3.bf16.msra.mxu1 %v1815_v15  ;;  %1632 = vmatprep.subr.bf16.mxu0 %v1816_v16  ;;  %v1844_v52 = vld [vmem:[%s2389_s1 + $0x158] sm:$0xff]   ;;  %v1848_v56 = vld [vmem:[%s2389_s1 + $0x160] sm:$0xff]   ;;  %v1852_v60 = vld [vmem:[%s2389_s1 + $0x168] sm:$0xff]  }
  0x12   :  { %1654 = vmatprep.subr.bf16.mxu1 %v1817_v17  ;;  %v1845_v53 = vld [vmem:[%s2389_s1 + $0x1d8] sm:$0xff]   ;;  %v1849_v57 = vld [vmem:[%s2389_s1 + $0x1e0] sm:$0xff]   ;;  %v1853_v61 = vld [vmem:[%s2389_s1 + $0x1e8] sm:$0xff]  }
  0x13   :  { %v1846_v54 = vld [vmem:[%s2389_s1 + $0x118] sm:$0xff]   ;;  %v1850_v58 = vld [vmem:[%s2389_s1 + $0x120] sm:$0xff]   ;;  %v1854_v62 = vld [vmem:[%s2389_s1 + $0x128] sm:$0xff]  }
  0x14   :  { %1633 = vmatpush3.bf16.msra.mxu0 %v1818_v18  ;;  %v1847_v55 = vld [vmem:[%s2389_s1 + $0x198] sm:$0xff]   ;;  %v1851_v59 = vld [vmem:[%s2389_s1 + $0x1a0] sm:$0xff]   ;;  %v1855_v63 = vld [vmem:[%s2389_s1 + $0x1a8] sm:$0xff]  }
  0x15   :  { %1655 = vmatpush3.bf16.msra.mxu1 %v1819_v19  ;;  %1634 = vmatprep.subr.bf16.mxu0 %v1820_v20  ;;  %v1856_v0 = vld [vmem:[%s2389_s1 + $0x170] sm:$0xff]   ;;  %v1860_v4 = vld [vmem:[%s2389_s1 + $0x178] sm:$0xff]   ;;  %v1864_v16 = vld [vmem:[%s2389_s1 + $0x240] sm:$0xff]  }
  0x16   :  { %1656 = vmatprep.subr.bf16.mxu1 %v1821_v21  ;;  %v1857_v1 = vld [vmem:[%s2389_s1 + $0x1f0] sm:$0xff]   ;;  %v1861_v5 = vld [vmem:[%s2389_s1 + $0x1f8] sm:$0xff]   ;;  %v1865_v17 = vld [vmem:[%s2389_s1 + $0x2c0] sm:$0xff]  }
  0x17   :  { %v1858_v2 = vld [vmem:[%s2389_s1 + $0x130] sm:$0xff]   ;;  %v1862_v6 = vld [vmem:[%s2389_s1 + $0x138] sm:$0xff]   ;;  %v1866_v18 = vld [vmem:[%s2389_s1 + $0x200] sm:$0xff]  }
  0x18   :  { %1635 = vmatpush3.bf16.msra.mxu0 %v1822_v22  ;;  %v1859_v3 = vld [vmem:[%s2389_s1 + $0x1b0] sm:$0xff]   ;;  %v1863_v7 = vld [vmem:[%s2389_s1 + $0x1b8] sm:$0xff]   ;;  %v1867_v19 = vld [vmem:[%s2389_s1 + $0x280] sm:$0xff]  }
  0x19   :  { %1657 = vmatpush3.bf16.msra.mxu1 %v1823_v23  ;;  %1636 = vmatprep.subr.bf16.mxu0 %v1824_v24  ;;  %v14_v8 = vld [vmem:[%s2390_s0 + $0x10] sm:$0xff]  ;;  %v15_v12 = vld [vmem:[%s2390_s0 + $0x18] sm:$0xff]  ;;  %v1868_v20 = vld [vmem:[%s2389_s1 + $0x248] sm:$0xff]  }
  0x1a   :  { %1658 = vmatprep.subr.bf16.mxu1 %v1825_v25  ;;  %v22_v9 = vld [vmem:[%s2390_s0 + $0x50] sm:$0xff]  ;;  %v23_v13 = vld [vmem:[%s2390_s0 + $0x58] sm:$0xff]  ;;  %v1869_v21 = vld [vmem:[%s2389_s1 + $0x2c8] sm:$0xff]  }
  0x1b   :  { %v1482_v10 = vcombine.low %v14_v8, %v22_v9  ;;  %v1483_v11 = vcombine.high %v14_v8, %v22_v9  ;;  %v1484_v14 = vcombine.low %v15_v12, %v23_v13  ;;  %v1485_v15 = vcombine.high %v15_v12, %v23_v13  ;;  %v1870_v22 = vld [vmem:[%s2389_s1 + $0x208] sm:$0xff]   ;;  %v1872_v24 = vld [vmem:[%s2389_s1 + $0x250] sm:$0xff]   ;;  %v1880_v32 = vld [vmem:[%s2389_s1 + $0x260] sm:$0xff]  }
  0x1c   :  { %1637 = vmatpush3.bf16.msra.mxu0 %v1826_v26  ;;  %v1871_v23 = vld [vmem:[%s2389_s1 + $0x288] sm:$0xff]   ;;  %v1873_v25 = vld [vmem:[%s2389_s1 + $0x2d0] sm:$0xff]   ;;  %v1881_v33 = vld [vmem:[%s2389_s1 + $0x2e0] sm:$0xff]  }
  0x1d   :  { %1659 = vmatpush3.bf16.msra.mxu1 %v1827_v27  ;;  %1638 = vmatprep.subr.bf16.mxu0 %v1828_v28  ;;  %v1874_v26 = vld [vmem:[%s2389_s1 + $0x210] sm:$0xff]   ;;  %v1876_v28 = vld [vmem:[%s2389_s1 + $0x258] sm:$0xff]   ;;  %v1882_v34 = vld [vmem:[%s2389_s1 + $0x220] sm:$0xff]  }
  0x1e   :  { %1660 = vmatprep.subr.bf16.mxu1 %v1829_v29  ;;  %v1875_v27 = vld [vmem:[%s2389_s1 + $0x290] sm:$0xff]   ;;  %v1877_v29 = vld [vmem:[%s2389_s1 + $0x2d8] sm:$0xff]   ;;  %v1884_v36 = vld [vmem:[%s2389_s1 + $0x268] sm:$0xff]  }
  0x1f   :  { %v1885_v37 = vld [vmem:[%s2389_s1 + $0x2e8] sm:$0xff]   ;;  %v1912_v8 = vld [vmem:[%s2389_s1 + $0x360] sm:$0xff]  }
  0x20   :  { %1639 = vmatpush3.bf16.msra.mxu0 %v1830_v30  ;;  %v1878_v30 = vld [vmem:[%s2389_s1 + $0x218] sm:$0xff]   ;;  %v1887_v39 = vld [vmem:[%s2389_s1 + $0x2a8] sm:$0xff]   ;;  %v1913_v9 = vld [vmem:[%s2389_s1 + $0x3e0] sm:$0xff]  }
  0x21   :  { %1661 = vmatpush3.bf16.msra.mxu1 %v1831_v31  ;;  %1668 = vmatprep.subr.bf16.mxu0 %v1832_v40  ;;  %v1879_v31 = vld [vmem:[%s2389_s1 + $0x298] sm:$0xff]   ;;  %v1888_v40 = vld [vmem:[%s2389_s1 + $0x270] sm:$0xff]   ;;  %v1916_v12 = vld [vmem:[%s2389_s1 + $0x368] sm:$0xff]  }
  0x22   :  { %1690 = vmatprep.subr.bf16.mxu1 %v1833_v41  ;;  %v1889_v41 = vld [vmem:[%s2389_s1 + $0x2f0] sm:$0xff]   ;;  %v1917_v13 = vld [vmem:[%s2389_s1 + $0x3e8] sm:$0xff]  }
  0x23   :  { %1165 = vmatmul.mubr.bf16.vlgmr.msra.gmra.mrb[0].mxu0 %v1478_v35  ;;  %v1883_v35 = vld [vmem:[%s2389_s1 + $0x2a0] sm:$0xff]  }
  0x24   :  { %1206 = vmatmul.mubr.bf16.vlgmr.msra.gmra.mrb[0].mxu1 %v1480_v38  ;;  %1669 = vmatpush3.bf16.msra.mxu0 %v1834_v42  ;;  %v1886_v38 = vld [vmem:[%s2389_s1 + $0x228] sm:$0xff]   ;;  %v1890_v42 = vld [vmem:[%s2389_s1 + $0x230] sm:$0xff]  }
  0x25   :  { %1691 = vmatpush3.bf16.msra.mxu1 %v1835_v43  ;;  %1670 = vmatprep.subr.bf16.mxu0 %v1836_v44  ;;  %v1891_v43 = vld [vmem:[%s2389_s1 + $0x2b0] sm:$0xff]   ;;  %v1892_v44 = vld [vmem:[%s2389_s1 + $0x278] sm:$0xff]  }
  0x26   :  { %1692 = vmatprep.subr.bf16.mxu1 %v1837_v45  ;;  %1246 = vmatprep.mubr.bf16.mxu0 %v1483_v11  ;;  %v1893_v45 = vld [vmem:[%s2389_s1 + $0x2f8] sm:$0xff]   ;;  %v1915_v11 = vld [vmem:[%s2389_s1 + $0x3a0] sm:$0xff]  }
  0x27   :  { %1287 = vmatprep.mubr.bf16.mxu1 %v1485_v15  ;;  %v1919_v15 = vld [vmem:[%s2389_s1 + $0x3a8] sm:$0xff]  }
  0x28   :  { %1671 = vmatpush3.bf16.msra.mxu0 %v1838_v46  ;;  %v1894_v46 = vld [vmem:[%s2389_s1 + $0x238] sm:$0xff]  }
  0x29   :  { %1693 = vmatpush3.bf16.msra.mxu1 %v1839_v47  ;;  %1672 = vmatprep.subr.bf16.mxu0 %v1840_v48  ;;  %v1895_v47 = vld [vmem:[%s2389_s1 + $0x2b8] sm:$0xff]   ;;  %v16_v48 = vld [vmem:[%s2390_s0 + $0x20] sm:$0xff] }
  0x2a   :  { %1694 = vmatprep.subr.bf16.mxu1 %v1841_v49  ;;  %v24_v49 = vld [vmem:[%s2390_s0 + $0x60] sm:$0xff] }
  0x2c   :  { %1673 = vmatpush3.bf16.msra.mxu0 %v1842_v50  ;;  %v17_v50 = vld [vmem:[%s2390_s0 + $0x28] sm:$0xff] }
  0x2d   :  { %1695 = vmatpush3.bf16.msra.mxu1 %v1843_v51  ;;  %1674 = vmatprep.subr.bf16.mxu0 %v1844_v52  ;;  %v25_v51 = vld [vmem:[%s2390_s0 + $0x68] sm:$0xff]  ;;  %v1486_v52 = vcombine.low %v16_v48, %v24_v49 }
  0x2e   :  { %1696 = vmatprep.subr.bf16.mxu1 %v1845_v53  ;;  %v1487_v53 = vcombine.high %v16_v48, %v24_v49 }
  0x30   :  { %1675 = vmatpush3.bf16.msra.mxu0 %v1846_v54  ;;  %v1488_v54 = vcombine.low %v17_v50, %v25_v51 }
  0x31   :  { %1697 = vmatpush3.bf16.msra.mxu1 %v1847_v55  ;;  %1676 = vmatprep.subr.bf16.mxu0 %v1848_v56  ;;  %v1489_v55 = vcombine.high %v17_v50, %v25_v51  ;;  %v1896_v56 = vld [vmem:[%s2389_s1 + $0x340] sm:$0xff]  }
  0x32   :  { %1698 = vmatprep.subr.bf16.mxu1 %v1849_v57  ;;  %v1897_v57 = vld [vmem:[%s2389_s1 + $0x3c0] sm:$0xff]  }
  0x34   :  { %1677 = vmatpush3.bf16.msra.mxu0 %v1850_v58  ;;  %v1898_v58 = vld [vmem:[%s2389_s1 + $0x300] sm:$0xff]  }
  0x35   :  { %1699 = vmatpush3.bf16.msra.mxu1 %v1851_v59  ;;  %1678 = vmatprep.subr.bf16.mxu0 %v1852_v60  ;;  %v1899_v59 = vld [vmem:[%s2389_s1 + $0x380] sm:$0xff]   ;;  %v1900_v60 = vld [vmem:[%s2389_s1 + $0x348] sm:$0xff]  }
  0x36   :  { %1700 = vmatprep.subr.bf16.mxu1 %v1853_v61  ;;  %v1901_v61 = vld [vmem:[%s2389_s1 + $0x3c8] sm:$0xff]  }
  0x38   :  { %1679 = vmatpush3.bf16.msra.mxu0 %v1854_v62  ;;  %v1902_v62 = vld [vmem:[%s2389_s1 + $0x308] sm:$0xff]  }
  0x39   :  { %1701 = vmatpush3.bf16.msra.mxu1 %v1855_v63  ;;  %1680 = vmatprep.subr.bf16.mxu0 %v1856_v0  ;;  %v1903_v63 = vld [vmem:[%s2389_s1 + $0x388] sm:$0xff]   ;;  %v1904_v0 = vld [vmem:[%s2389_s1 + $0x350] sm:$0xff]  }
  0x3a   :  { %1702 = vmatprep.subr.bf16.mxu1 %v1857_v1  ;;  %v1905_v1 = vld [vmem:[%s2389_s1 + $0x3d0] sm:$0xff]  }
  0x3c   :  { %1681 = vmatpush3.bf16.msra.mxu0 %v1858_v2  ;;  %v1906_v2 = vld [vmem:[%s2389_s1 + $0x310] sm:$0xff]  }
  0x3d   :  { %1703 = vmatpush3.bf16.msra.mxu1 %v1859_v3  ;;  %1682 = vmatprep.subr.bf16.mxu0 %v1860_v4  ;;  %v1907_v3 = vld [vmem:[%s2389_s1 + $0x390] sm:$0xff]   ;;  %v1908_v4 = vld [vmem:[%s2389_s1 + $0x358] sm:$0xff]  }
  0x3e   :  { %1704 = vmatprep.subr.bf16.mxu1 %v1861_v5  ;;  %v1909_v5 = vld [vmem:[%s2389_s1 + $0x3d8] sm:$0xff]  }
  0x40   :  { %1683 = vmatpush3.bf16.msra.mxu0 %v1862_v6  ;;  %v1910_v6 = vld [vmem:[%s2389_s1 + $0x318] sm:$0xff]  }
  0x41   :  { %1705 = vmatpush3.bf16.msra.mxu1 %v1863_v7  ;;  %1712 = vmatprep.subr.bf16.mxu0 %v1864_v16  ;;  %v1911_v7 = vld [vmem:[%s2389_s1 + $0x398] sm:$0xff]   ;;  %v1920_v16 = vld [vmem:[%s2389_s1 + $0x370] sm:$0xff]  }
  0x42   :  { %1734 = vmatprep.subr.bf16.mxu1 %v1865_v17  ;;  %v1921_v17 = vld [vmem:[%s2389_s1 + $0x3f0] sm:$0xff]  }
  0x43   :  { %1247 = vmatmul.mubr.bf16.vlgmr.msra.gmra.mrb[4].mxu0 %v1482_v10  ;;  %v1914_v10 = vld [vmem:[%s2389_s1 + $0x320] sm:$0xff]  }
  0x44   :  { %1288 = vmatmul.mubr.bf16.vlgmr.msra.gmra.mrb[4].mxu1 %v1484_v14  ;;  %1713 = vmatpush3.bf16.msra.mxu0 %v1866_v18  ;;  %v1918_v14 = vld [vmem:[%s2389_s1 + $0x328] sm:$0xff]   ;;  %v1922_v18 = vld [vmem:[%s2389_s1 + $0x330] sm:$0xff]  }
  0x45   :  { %1735 = vmatpush3.bf16.msra.mxu1 %v1867_v19  ;;  %1714 = vmatprep.subr.bf16.mxu0 %v1868_v20  ;;  %v1923_v19 = vld [vmem:[%s2389_s1 + $0x3b0] sm:$0xff]   ;;  %v1924_v20 = vld [vmem:[%s2389_s1 + $0x378] sm:$0xff]  }
  0x46   :  { %1736 = vmatprep.subr.bf16.mxu1 %v1869_v21  ;;  %1328 = vmatprep.mubr.bf16.mxu0 %v1487_v53  ;;  %v1925_v21 = vld [vmem:[%s2389_s1 + $0x3f8] sm:$0xff]  }
  0x47   :  { %1369 = vmatprep.mubr.bf16.mxu1 %v1489_v55 }
  0x48   :  { %1715 = vmatpush3.bf16.msra.mxu0 %v1870_v22  ;;  %v1926_v22 = vld [vmem:[%s2389_s1 + $0x338] sm:$0xff]  }
  0x49   :  { %1737 = vmatpush3.bf16.msra.mxu1 %v1871_v23  ;;  %1716 = vmatprep.subr.bf16.mxu0 %v1872_v24  ;;  %v1927_v23 = vld [vmem:[%s2389_s1 + $0x3b8] sm:$0xff]   ;;  %v18_v24 = vld [vmem:[%s2390_s0 + $0x30] sm:$0xff] }
  0x4a   :  { %1738 = vmatprep.subr.bf16.mxu1 %v1873_v25  ;;  %v26_v25 = vld [vmem:[%s2390_s0 + $0x70] sm:$0xff] }
  0x4c   :  { %1717 = vmatpush3.bf16.msra.mxu0 %v1874_v26  ;;  %v19_v26 = vld [vmem:[%s2390_s0 + $0x38] sm:$0xff] }
  0x4d   :  { %1739 = vmatpush3.bf16.msra.mxu1 %v1875_v27  ;;  %1718 = vmatprep.subr.bf16.mxu0 %v1876_v28  ;;  %v1490_v27 = vcombine.low %v18_v24, %v26_v25  ;;  %v1491_v28 = vcombine.high %v18_v24, %v26_v25 }
  0x4e   :  { %1740 = vmatprep.subr.bf16.mxu1 %v1877_v29  ;;  %v27_v29 = vld [vmem:[%s2390_s0 + $0x78] sm:$0xff] }
  0x50   :  { %1719 = vmatpush3.bf16.msra.mxu0 %v1878_v30  ;;  %v1492_v30 = vcombine.low %v19_v26, %v27_v29 }
  0x51   :  { %1741 = vmatpush3.bf16.msra.mxu1 %v1879_v31  ;;  %1720 = vmatprep.subr.bf16.mxu0 %v1880_v32  ;;  %v1493_v31 = vcombine.high %v19_v26, %v27_v29 }
  0x52   :  { %1742 = vmatprep.subr.bf16.mxu1 %v1881_v33 }
  0x54   :  { %1721 = vmatpush3.bf16.msra.mxu0 %v1882_v34 }
  0x55   :  { %1743 = vmatpush3.bf16.msra.mxu1 %v1883_v35  ;;  %1722 = vmatprep.subr.bf16.mxu0 %v1884_v36 }
  0x56   :  { %1744 = vmatprep.subr.bf16.mxu1 %v1885_v37 }
  0x58   :  { %1723 = vmatpush3.bf16.msra.mxu0 %v1886_v38 }
  0x59   :  { %1745 = vmatpush3.bf16.msra.mxu1 %v1887_v39  ;;  %1724 = vmatprep.subr.bf16.mxu0 %v1888_v40 }
  0x5a   :  { %1746 = vmatprep.subr.bf16.mxu1 %v1889_v41 }
  0x5c   :  { %1725 = vmatpush3.bf16.msra.mxu0 %v1890_v42 }
  0x5d   :  { %1747 = vmatpush3.bf16.msra.mxu1 %v1891_v43  ;;  %1726 = vmatprep.subr.bf16.mxu0 %v1892_v44 }
  0x5e   :  { %1748 = vmatprep.subr.bf16.mxu1 %v1893_v45 }
  0x60   :  { %1727 = vmatpush3.bf16.msra.mxu0 %v1894_v46 }
  0x61   :  { %1749 = vmatpush3.bf16.msra.mxu1 %v1895_v47  ;;  %1756 = vmatprep.subr.bf16.mxu0 %v1896_v56 }
  0x62   :  { %1778 = vmatprep.subr.bf16.mxu1 %v1897_v57 }
  0x63   :  { %1329 = vmatmul.mubr.bf16.vlgmr.msra.gmra.mrb[8].mxu0 %v1486_v52 }
  0x64   :  { %1370 = vmatmul.mubr.bf16.vlgmr.msra.gmra.mrb[8].mxu1 %v1488_v54  ;;  %1757 = vmatpush3.bf16.msra.mxu0 %v1898_v58 }
  0x65   :  { %1779 = vmatpush3.bf16.msra.mxu1 %v1899_v59  ;;  %1758 = vmatprep.subr.bf16.mxu0 %v1900_v60 }
  0x66   :  { %1780 = vmatprep.subr.bf16.mxu1 %v1901_v61  ;;  %1410 = vmatprep.mubr.bf16.mxu0 %v1491_v28 }
  0x67   :  { %1451 = vmatprep.mubr.bf16.mxu1 %v1493_v31 }
  0x68   :  { %1759 = vmatpush3.bf16.msra.mxu0 %v1902_v62 }
  0x69   :  { %1781 = vmatpush3.bf16.msra.mxu1 %v1903_v63  ;;  %1760 = vmatprep.subr.bf16.mxu0 %v1904_v0 }
  0x6a   :  { %1782 = vmatprep.subr.bf16.mxu1 %v1905_v1 }
  0x6c   :  { %1761 = vmatpush3.bf16.msra.mxu0 %v1906_v2 }
  0x6d   :  { %1783 = vmatpush3.bf16.msra.mxu1 %v1907_v3  ;;  %1762 = vmatprep.subr.bf16.mxu0 %v1908_v4 }
  0x6e   :  { %1784 = vmatprep.subr.bf16.mxu1 %v1909_v5 }
  0x70   :  { %1763 = vmatpush3.bf16.msra.mxu0 %v1910_v6 }
  0x71   :  { %1785 = vmatpush3.bf16.msra.mxu1 %v1911_v7  ;;  %1764 = vmatprep.subr.bf16.mxu0 %v1912_v8 }
  0x72   :  { %1786 = vmatprep.subr.bf16.mxu1 %v1913_v9 }
  0x74   :  { %1765 = vmatpush3.bf16.msra.mxu0 %v1914_v10 }
  0x75   :  { %1787 = vmatpush3.bf16.msra.mxu1 %v1915_v11  ;;  %1766 = vmatprep.subr.bf16.mxu0 %v1916_v12 }
  0x76   :  { %1788 = vmatprep.subr.bf16.mxu1 %v1917_v13 }
  0x78   :  { %1767 = vmatpush3.bf16.msra.mxu0 %v1918_v14 }
  0x79   :  { %1789 = vmatpush3.bf16.msra.mxu1 %v1919_v15  ;;  %1768 = vmatprep.subr.bf16.mxu0 %v1920_v16 }
  0x7a   :  { %1790 = vmatprep.subr.bf16.mxu1 %v1921_v17 }
  0x7c   :  { %1769 = vmatpush3.bf16.msra.mxu0 %v1922_v18 }
  0x7d   :  { %1791 = vmatpush3.bf16.msra.mxu1 %v1923_v19  ;;  %1770 = vmatprep.subr.bf16.mxu0 %v1924_v20 }
  0x7e   :  { %1792 = vmatprep.subr.bf16.mxu1 %v1925_v21 }
  0x80   :  { %1771 = vmatpush3.bf16.msra.mxu0 %v1926_v22 }
  0x81   :  { %1793 = vmatpush3.bf16.msra.mxu1 %v1927_v23 }
  0x83   :  { %1411 = vmatmul.mubr.bf16.vlgmr.msra.gmra.mrb[12].mxu0 %v1490_v27 }
  0x84   :  { %1452 = vmatmul.mubr.bf16.vlgmr.msra.gmra.mrb[12].mxu1 %v1492_v30 }
  0xf6   :  { %v1640_v32 = vpop.f32.mrb[0].mxu0 }
  0xf7   :  { %v1662_v33 = vpop.f32.mrb[0].mxu1  ;;  %v1641_v34 = vpop.f32.mrb[1].mxu0 }
  0xf8   :  { %v1642_v35 = vadd.f32 %v1641_v34, %v1640_v32  ;;  %v1663_v36 = vpop.f32.mrb[1].mxu1  ;;  %v1643_v37 = vpop.f32.mrb[2].mxu0 }
  0xf9   :  { %v1664_v38 = vadd.f32 %v1663_v36, %v1662_v33  ;;  %v1665_v39 = vpop.f32.mrb[2].mxu1  ;;  %v1644_v40 = vpop.f32.mrb[3].mxu0 }
  0xfa   :  { %v1645_v41 = vadd.f32 %v1644_v40, %v1643_v37  ;;  %v1666_v42 = vpop.f32.mrb[3].mxu1 }
  0xfb   :  { %v1208_v43 = vadd.f32 %v1664_v38, %v1642_v35  ;;  %v1667_v44 = vadd.f32 %v1666_v42, %v1665_v39 }
  0xfd   :  { %v1211_v45 = vadd.f32 %v1667_v44, %v1645_v41 }
 0x116   :  { %v1684_v46 = vpop.f32.mrb[4].mxu0 }
 0x117   :  { %v1706_v47 = vpop.f32.mrb[4].mxu1  ;;  %v1685_v48 = vpop.f32.mrb[5].mxu0 }
 0x118   :  { %v1686_v49 = vadd.f32 %v1685_v48, %v1684_v46  ;;  %v1707_v50 = vpop.f32.mrb[5].mxu1  ;;  %v1687_v51 = vpop.f32.mrb[6].mxu0 }
 0x119   :  { %v1708_v52 = vadd.f32 %v1707_v50, %v1706_v47  ;;  %v1709_v53 = vpop.f32.mrb[6].mxu1  ;;  %v1688_v54 = vpop.f32.mrb[7].mxu0 }
 0x11a   :  { %v1249_v55 = vadd.f32 %v1686_v49, %v1208_v43  ;;  %v1689_v56 = vadd.f32 %v1688_v54, %v1687_v51  ;;  %v1710_v57 = vpop.f32.mrb[7].mxu1 }
 0x11b   :  { %v1711_v58 = vadd.f32 %v1710_v57, %v1709_v53 }
 0x11c   :  { %v1290_v59 = vadd.f32 %v1708_v52, %v1249_v55  ;;  %v1252_v60 = vadd.f32 %v1689_v56, %v1211_v45 }
 0x11e   :  { %v1293_v61 = vadd.f32 %v1711_v58, %v1252_v60 }
 0x136   :  { %v1728_v62 = vpop.f32.mrb[8].mxu0 }
 0x137   :  { %v1750_v63 = vpop.f32.mrb[8].mxu1  ;;  %v1729_v0 = vpop.f32.mrb[9].mxu0 }
 0x138   :  { %v1751_v1 = vpop.f32.mrb[9].mxu1  ;;  %v1730_v2 = vadd.f32 %v1729_v0, %v1728_v62  ;;  %v1731_v4 = vpop.f32.mrb[10].mxu0 }
 0x139   :  { %v1752_v3 = vadd.f32 %v1751_v1, %v1750_v63  ;;  %v1753_v5 = vpop.f32.mrb[10].mxu1  ;;  %v1732_v6 = vpop.f32.mrb[11].mxu0 }
 0x13a   :  { %v1754_v7 = vpop.f32.mrb[11].mxu1  ;;  %v1331_v8 = vadd.f32 %v1730_v2, %v1290_v59  ;;  %v1733_v9 = vadd.f32 %v1732_v6, %v1731_v4 }
 0x13b   :  { %v1755_v10 = vadd.f32 %v1754_v7, %v1753_v5 }
 0x13c   :  { %v1372_v11 = vadd.f32 %v1752_v3, %v1331_v8  ;;  %v1334_v12 = vadd.f32 %v1733_v9, %v1293_v61 }
 0x13e   :  { %v1375_v13 = vadd.f32 %v1755_v10, %v1334_v12 }
 0x156   :  { %v1772_v14 = vpop.f32.mrb[12].mxu0 }
 0x157   :  { %v1794_v15 = vpop.f32.mrb[12].mxu1  ;;  %v1773_v16 = vpop.f32.mrb[13].mxu0 }
 0x158   :  { %v1774_v17 = vadd.f32 %v1773_v16, %v1772_v14  ;;  %v1795_v18 = vpop.f32.mrb[13].mxu1  ;;  %v1775_v19 = vpop.f32.mrb[14].mxu0 }
 0x159   :  { %v1796_v20 = vadd.f32 %v1795_v18, %v1794_v15  ;;  %v1797_v21 = vpop.f32.mrb[14].mxu1  ;;  %v1776_v22 = vpop.f32.mrb[15].mxu0 }
 0x15a   :  { %v1413_v23 = vadd.f32 %v1774_v17, %v1372_v11  ;;  %v1777_v24 = vadd.f32 %v1776_v22, %v1775_v19  ;;  %v1798_v25 = vpop.f32.mrb[15].mxu1 }
 0x15b   :  { %v1799_v26 = vadd.f32 %v1798_v25, %v1797_v21 }
 0x15c   :  { %v1454_v27 = vadd.f32 %v1796_v20, %v1413_v23  ;;  %v1416_v28 = vadd.f32 %v1777_v24, %v1375_v13 }
 0x15e   :  { %v1622_v29 = vmul.f32 -1.442695, %v1454_v27  ;;  %v1457_v30 = vadd.f32 %v1799_v26, %v1416_v28 }
 0x160   :  { %1928 = vpow2.f32 %v1622_v29  ;;  %v1623_v31 = vmul.f32 -1.442695, %v1457_v30 }
 0x162   :  { %1930 = vpow2.f32 %v1623_v31 }
 0x16a   :  { %v1929_v32 = vpop.eup %1928 }
 0x16b   :  { %v1466_v33 = vadd.f32 1.0, %v1929_v32 }
 0x16c   :  { %v1931_v34 = vpop.eup %1930 }
 0x16d   :  { %1932 = vrcp.f32 %v1466_v33  ;;  %v1467_v35 = vadd.f32 1.0, %v1931_v34 }
 0x16f   :  { %1934 = vrcp.f32 %v1467_v35 }
 0x177   :  { %v1933_v36 = vpop.eup %1932 }
 0x178   :  { %1472 = vst [vmem:[%s2391_s2] sm:$0xff] %v1933_v36 }
 0x179   :  { %v1935_v37 = vpop.eup %1934 }
 0x17a   :  { %1473 = vst [vmem:[%s2391_s2 + $0x8] sm:$0xff] %v1935_v37 }

</bundles_post_ra>
